<compile_context>
chip_gen: v6e
topology: v6e:2x2x1
jax: 0.10.0
libtpu: 0.0.40
codegen_flags: <defaults>
</compile_context>

<pallas_src>
import functools

import numpy as np
import jax
import jax.numpy as jnp
from jax.experimental import pallas as pl
from jax.experimental.pallas import tpu as pltpu

NEG = -1e30                                   # -inf stand-in (reference only)
LAYER_DIMS = [(2, 4), (4, 8), (8, 16)]        # real (in, out) channels per EdgeConv
CPAD = [max(8, -(-c // 8) * 8) for _, c in LAYER_DIMS]   # sublane-aligned widths: 8, 8, 16


# ----------------------------------------------------------------------------
# Static graph structure (mirrors create_edge_index in the PyTorch module).
# ----------------------------------------------------------------------------
def create_edge_index(C: int) -> np.ndarray:
    h1 = np.vstack([np.arange(0, C - 1), np.arange(1, C)])
    h2 = np.vstack([np.arange(C, 2 * C - 1), np.arange(C + 1, 2 * C)])
    v = np.vstack([np.arange(0, C), np.arange(C, 2 * C)])
    return np.hstack([h1, h2, v]).astype(np.int32)          # (2, E), E = 3C - 2


# ----------------------------------------------------------------------------
# Node / edge feature construction (glue, mirrors create_node_and_edge_feats).
# ----------------------------------------------------------------------------
def create_node_and_edge_feats(i1, i2, drb, eh1, eh2, ev):
    i = jnp.stack([i1, i2], axis=-1)              # (B, C, 2)
    d = jnp.stack([drb, drb], axis=-1)            # (B, C, 2)
    nodes = jnp.concatenate([i, d], axis=1)       # (B, 2C, 2)

    def ef(dx, dz, dr, dt):
        return jnp.stack([dx, dz, dr, dt], axis=-1)

    edges = jnp.concatenate([ef(*eh1), ef(*eh2), ef(*ev)], axis=1)  # (B, 3C-2, 4)
    return nodes.astype(jnp.float32), edges.astype(jnp.float32)


# ----------------------------------------------------------------------------
# Fold the fixed graph structure + MLP weights into per-layer constants.
#   Wf  : (E*cp, N*cin_p + 4E + 8)  gather + Linear1 + bias (ones-row trick), bf16
#   Bm  : (E*cp, E*cp)              block-diagonal Linear2, bf16
#   b2c : (E*cp, 1)                 Linear2 bias, f32
#   mmu : (C, N*16), bmuc : (C, 1)  mu head
# ----------------------------------------------------------------------------
def build_fused_params(params, C: int):
    edge_index = create_edge_index(C)
    src, tgt = edge_index[0], edge_index[1]
    N, E = 2 * C, edge_index.shape[1]

    # The kernel's slice-based scatter-max hard-codes this edge ordering / targets.
    assert np.array_equal(
        tgt, np.concatenate([np.arange(1, C), np.arange(C + 1, 2 * C), np.arange(C, 2 * C)]))

    consts = []
    cins_p = [2] + CPAD[:-1]                     # padded input widths: 2, 8, 8
    for li, ((cin, cout), cin_p, cp) in enumerate(zip(LAYER_DIMS, cins_p, CPAD), start=1):
        w1 = np.asarray(params[f"w1_{li}"], np.float64)      # (2*cin+4, cout)
        b1 = np.asarray(params[f"b1_{li}"], np.float64)      # (cout,)
        w2 = np.asarray(params[f"w2_{li}"], np.float64)      # (cout, cout)
        b2 = np.asarray(params[f"b2_{li}"], np.float64)      # (cout,)
        w1i, w1j, w1e = w1[:cin], w1[cin:2 * cin], w1[2 * cin:]

        K = N * cin_p + E * 4 + 8                # columns: [nodes | edges | 1 | 0*7]
        wf = np.zeros((E * cp, K), np.float64)
        bm = np.zeros((E * cp, E * cp), np.float64)
        b2c = np.zeros((E * cp, 1), np.float32)
        for ed in range(E):
            r = ed * cp
            wf[r:r + cout, tgt[ed] * cin_p: tgt[ed] * cin_p + cin] += w1i.T   # x_i
            wf[r:r + cout, src[ed] * cin_p: src[ed] * cin_p + cin] += w1j.T   # x_j
            wf[r:r + cout, N * cin_p + ed * 4: N * cin_p + (ed + 1) * 4] = w1e.T
            wf[r:r + cout, N * cin_p + E * 4] = b1                            # ones column
            bm[r:r + cout, r:r + cout] = w2.T
            b2c[r:r + cout, 0] = b2
        consts += [jnp.asarray(wf, jnp.bfloat16), jnp.asarray(bm, jnp.bfloat16),
                   jnp.asarray(b2c, jnp.float32)]

    # mu head: concat([x3[:C], x3[C:]]) @ wmu + bmu, folded into one (C, N*16) matrix.
    wmu = np.asarray(params["wmu"], np.float64)   # (32, 1)
    bmu = np.asarray(params["bmu"], np.float64)   # (1,)
    cp3, real3 = CPAD[-1], LAYER_DIMS[-1][1]
    mmu = np.zeros((C, N * cp3), np.float64)
    for c in range(C):
        mmu[c, c * cp3: c * cp3 + real3] = wmu[:real3, 0]
        mmu[c, (C + c) * cp3: (C + c) * cp3 + real3] = wmu[real3:2 * real3, 0]
    bmuc = np.full((C, 1), float(bmu[0]), np.float32)
    consts += [jnp.asarray(mmu, jnp.bfloat16), jnp.asarray(bmuc, jnp.float32)]
    return consts


# ----------------------------------------------------------------------------
# Pallas kernel: 3 fused EdgeConv layers + mu head on a (rows, TB) batch slab.
# ----------------------------------------------------------------------------
def _make_kernel(C: int):
    cps = CPAD

    def kernel(x_ref, e_ref,
               wf1, bm1, c1, wf2, bm2, c2, wf3, bm3, c3,
               mmu_ref, bmu_ref, out_ref):
        e = e_ref[...]                                       # (12C, TB) bf16: [e | 1 | 0*7]

        def layer(x_b, wf, bm, b2c, cp):
            # gather + Linear1 + bias as ONE matmul on the stacked operand.
            stacked = jnp.concatenate([x_b, e], axis=0)      # (N*cin_p + 12C_edge, TB) bf16
            h = jnp.dot(wf[...], stacked, preferred_element_type=jnp.float32)
            h = jnp.maximum(h, 0.0)                          # (E*cp, TB) f32
            # Linear2 per edge (block-diagonal) + f32 bias.
            msg = jnp.dot(bm[...], h.astype(jnp.bfloat16),
                          preferred_element_type=jnp.float32) + b2c[...]
            # Bounded in-degree (<=2) scatter-max via static sublane-aligned slices:
            #   node 0          -> no incoming edge  -> 0
            #   nodes 1..C-1    -> h1 edges 0..C-2
            #   node C          -> v  edge  2C-2
            #   nodes C+1..2C-1 -> max(h2 edges C-1..2C-3, v edges 2C-1..3C-3)
            z0 = jnp.zeros((cp, msg.shape[1]), jnp.float32)
            n_top = msg[0:(C - 1) * cp]
            n_c = msg[(2 * C - 2) * cp:(2 * C - 1) * cp]
            n_bot = jnp.maximum(msg[(C - 1) * cp:(2 * C - 2) * cp],
                                msg[(2 * C - 1) * cp:(3 * C - 2) * cp])
            return jnp.concatenate([z0, n_top, n_c, n_bot], axis=0)   # (2C*cp, TB) f32

        x1 = layer(x_ref[...], wf1, bm1, c1, cps[0])
        x2 = layer(x1.astype(jnp.bfloat16), wf2, bm2, c2, cps[1])
        x3 = layer(x2.astype(jnp.bfloat16), wf3, bm3, c3, cps[2])
        out_ref[...] = (jnp.dot(mmu_ref[...], x3.astype(jnp.bfloat16),
                                preferred_element_type=jnp.float32) + bmu_ref[...])

    return kernel


def _round_up(a: int, m: int) -> int:
    return -(-a // m) * m


# ----------------------------------------------------------------------------
# Wrapper.  x: (B, 2C, 2), e: (B, 3C-2, 4)  ->  mu: (B, C).
# ----------------------------------------------------------------------------
@functools.partial(jax.jit, static_argnames=("C", "max_tb"))
def gnn_forward(x, e, consts, *, C: int, max_tb: int = 1024):
    # TODO(synk): the PyTorch module wraps mu in td.Independent(td.Normal(mu, 1), 1);
    # the distribution object has no Pallas equivalent, so the kernel returns mu
    # (sigma is the constant 1; the unused sigma Linear head is not evaluated).
    B, N, _ = x.shape
    E = e.shape[1]

    # Lane-dense slabs: batch on the lane axis.  Done inside the same jit so the
    # transposes/pads fuse with the surrounding XLA program instead of adding
    # separate HBM round-trips.
    xf = x.reshape(B, N * 2).T.astype(jnp.bfloat16)                    # (4C, B)
    ef = e.reshape(B, E * 4).T.astype(jnp.bfloat16)                    # (12C-8, B)
    ones_pad = jnp.concatenate([jnp.ones((1, B), jnp.bfloat16),
                                jnp.zeros((7, B), jnp.bfloat16)], axis=0)
    ef = jnp.concatenate([ef, ones_pad], axis=0)                       # (12C, B)

    # >= 2 grid steps so "parallel" can use both v7x TensorCores; lane tiles are
    # multiples of 128 so every output store is a full-lane unmasked vst.
    TB = int(min(max_tb, max(128, _round_up(-(-B // 2), 128))))
    Bp = _round_up(B, TB)
    if Bp // TB < 2:
        Bp = 2 * TB
    if Bp > B:
        xf = jnp.pad(xf, ((0, 0), (0, Bp - B)))
        ef = jnp.pad(ef, ((0, 0), (0, Bp - B)))

    def full_spec(a):
        return pl.BlockSpec(a.shape, lambda b: (0, 0))

    in_specs = ([pl.BlockSpec((4 * C, TB), lambda b: (0, b)),
                 pl.BlockSpec((12 * C, TB), lambda b: (0, b))]
                + [full_spec(a) for a in consts])

    out = pl.pallas_call(
        _make_kernel(C),
        out_shape=jax.ShapeDtypeStruct((C, Bp), jnp.float32),
        grid=(Bp // TB,),
        in_specs=in_specs,
        out_specs=pl.BlockSpec((C, TB), lambda b: (0, b)),
        compiler_params=pltpu.CompilerParams(
            dimension_semantics=("parallel",),
            vmem_limit_bytes=48 * 1024 * 1024),
    )(xf, ef, *consts)

    return out[:, :B].T                                                # (B, C)


# ----------------------------------------------------------------------------
# Deterministic parameter init (Linear weights stored as (in, out)).
# ----------------------------------------------------------------------------
def init_params(key):
    params = {}
    for li, (cin, cout) in enumerate(LAYER_DIMS, start=1):
        for name, shape in [(f"w1_{li}", (2 * cin + 4, cout)), (f"b1_{li}", (cout,)),
                            (f"w2_{li}", (cout, cout)), (f"b2_{li}", (cout,))]:
            key, sub = jax.random.split(key)
            fan = shape[0] if len(shape) > 1 else 1
            params[name] = (jax.random.normal(sub, shape, jnp.float32)
                            / np.sqrt(float(max(fan, 1))))
    for name, shape in [("wmu", (32, 1)), ("bmu", (1,))]:
        key, sub = jax.random.split(key)
        fan = shape[0] if len(shape) > 1 else 1
        params[name] = (jax.random.normal(sub, shape, jnp.float32)
                        / np.sqrt(float(fan)))
    return params


# ----------------------------------------------------------------------------
# Pure-JAX reference (same semantics) for the correctness check.
# ----------------------------------------------------------------------------
def gnn_reference(x, e, src, tgt, params, C):
    N = x.shape[1]

    def edge_conv(xn, w1, b1, w2, b2):
        x_i = xn[:, tgt, :]
        x_j = xn[:, src, :]
        m_in = jnp.concatenate([x_i, x_j, e], axis=-1)
        h = jnp.maximum(m_in @ w1 + b1, 0.0)
        msg = h @ w2 + b2
        out = jnp.full((xn.shape[0], N, msg.shape[-1]), NEG, jnp.float32)
        out = out.at[:, tgt, :].max(msg)
        reached = jnp.zeros((N,), bool).at[tgt].set(True)
        return jnp.where(reached[None, :, None], out, 0.0)

    p = params
    x1 = edge_conv(x, p["w1_1"], p["b1_1"], p["w2_1"], p["b2_1"])
    x2 = edge_conv(x1, p["w1_2"], p["b1_2"], p["w2_2"], p["b2_2"])
    x3 = edge_conv(x2, p["w1_3"], p["b1_3"], p["w2_3"], p["b2_3"])
    xcat = jnp.concatenate([x3[:, :C, :], x3[:, C:, :]], axis=-1)
    mu = (xcat @ p["wmu"] + p["bmu"])[..., 0]
    return mu


if __name__ == "__main__":
    B, C = 4, 8                       # small shapes: N = 16 nodes, E = 22 edges
    key = jax.random.PRNGKey(0)
    kp, kf = jax.random.split(key)
    params = init_params(kp)

    # Synthetic per-ray features (what `Features` would carry).
    ks = jax.random.split(kf, 15)
    i1, i2, drb = (jax.random.normal(ks[j], (B, C), jnp.float32) for j in range(3))
    eh1 = tuple(jax.random.normal(ks[3 + j], (B, C - 1), jnp.float32) for j in range(4))
    eh2 = tuple(jax.random.normal(ks[7 + j], (B, C - 1), jnp.float32) for j in range(4))
    ev = tuple(jax.random.normal(ks[11 + j], (B, C), jnp.float32) for j in range(4))

    x, e = create_node_and_edge_feats(i1, i2, drb, eh1, eh2, ev)   # (B,2C,2), (B,3C-2,4)

    consts = build_fused_params(params, C)
    mu = gnn_forward(x, e, consts, C=C)
    mu = jax.block_until_ready(mu)

    edge_index = create_edge_index(C)
    mu_ref = gnn_reference(x, e, edge_index[0], edge_index[1], params, C)
    # bf16 operands with f32 accumulation -> compare at bf16-level tolerance.
    np.testing.assert_allclose(np.asarray(mu), np.asarray(mu_ref), rtol=2e-2, atol=2e-2)
    print("KERNEL_OK")
</pallas_src>

<mosaic_0001>
module attributes {stable_mosaic.version = 11 : i64} {
  func.func @kernel(%arg0: i32, %arg1: memref<32x128xbf16, #tpu.memory_space<vmem>>, %arg2: memref<96x128xbf16, #tpu.memory_space<vmem>>, %arg3: memref<176x128xbf16, #tpu.memory_space<vmem>>, %arg4: memref<176x176xbf16, #tpu.memory_space<vmem>>, %arg5: memref<176x1xf32, #tpu.memory_space<vmem>>, %arg6: memref<176x224xbf16, #tpu.memory_space<vmem>>, %arg7: memref<176x176xbf16, #tpu.memory_space<vmem>>, %arg8: memref<176x1xf32, #tpu.memory_space<vmem>>, %arg9: memref<352x224xbf16, #tpu.memory_space<vmem>>, %arg10: memref<352x352xbf16, #tpu.memory_space<vmem>>, %arg11: memref<352x1xf32, #tpu.memory_space<vmem>>, %arg12: memref<8x256xbf16, #tpu.memory_space<vmem>>, %arg13: memref<8x1xf32, #tpu.memory_space<vmem>>, %arg14: memref<8x128xf32, #tpu.memory_space<vmem>>) attributes {dimension_semantics = [#tpu.dimension_semantics<parallel>], iteration_bounds = array<i64: 2>, scalar_prefetch = 0 : i64, scratch_operands = 0 : i64, tpu.core_type = #tpu.core_type<tc>, window_params = [{transform_indices = @transform_0, window_bounds = array<i64: 32, 128>}, {transform_indices = @transform_1, window_bounds = array<i64: 96, 128>}, {pipeline_mode = #tpu.pipeline_mode<synchronous>, transform_indices = @transform_2, window_bounds = array<i64: 176, 128>}, {pipeline_mode = #tpu.pipeline_mode<synchronous>, transform_indices = @transform_3, window_bounds = array<i64: 176, 176>}, {pipeline_mode = #tpu.pipeline_mode<synchronous>, transform_indices = @transform_4, window_bounds = array<i64: 176, 1>}, {pipeline_mode = #tpu.pipeline_mode<synchronous>, transform_indices = @transform_5, window_bounds = array<i64: 176, 224>}, {pipeline_mode = #tpu.pipeline_mode<synchronous>, transform_indices = @transform_6, window_bounds = array<i64: 176, 176>}, {pipeline_mode = #tpu.pipeline_mode<synchronous>, transform_indices = @transform_7, window_bounds = array<i64: 176, 1>}, {pipeline_mode = #tpu.pipeline_mode<synchronous>, transform_indices = @transform_8, window_bounds = array<i64: 352, 224>}, {pipeline_mode = #tpu.pipeline_mode<synchronous>, transform_indices = @transform_9, window_bounds = array<i64: 352, 352>}, {pipeline_mode = #tpu.pipeline_mode<synchronous>, transform_indices = @transform_10, window_bounds = array<i64: 352, 1>}, {pipeline_mode = #tpu.pipeline_mode<synchronous>, transform_indices = @transform_11, window_bounds = array<i64: 8, 256>}, {pipeline_mode = #tpu.pipeline_mode<synchronous>, transform_indices = @transform_12, window_bounds = array<i64: 8, 1>}, {transform_indices = @transform_13, window_bounds = array<i64: 8, 128>}]} {
    %c0 = arith.constant 0 : index
    %c0_0 = arith.constant 0 : index
    %0 = vector.load %arg2[%c0, %c0_0] : memref<96x128xbf16, #tpu.memory_space<vmem>>, vector<96x128xbf16>
    %c0_1 = arith.constant 0 : index
    %c0_2 = arith.constant 0 : index
    %1 = vector.load %arg1[%c0_1, %c0_2] : memref<32x128xbf16, #tpu.memory_space<vmem>>, vector<32x128xbf16>
    %2 = tpu.concatenate %1, %0 in 0 : vector<32x128xbf16>, vector<96x128xbf16> -> vector<128x128xbf16>
    %c0_3 = arith.constant 0 : index
    %c0_4 = arith.constant 0 : index
    %3 = vector.load %arg3[%c0_3, %c0_4] : memref<176x128xbf16, #tpu.memory_space<vmem>>, vector<176x128xbf16>
    %cst = arith.constant dense<0.000000e+00> : vector<176x128xf32>
    %4 = tpu.matmul %3, %2, %cst {dimension_numbers = #tpu.dot_dimension_numbers<[1], [0], [0], [1], [0, 0, 1, 1], [], []>} : vector<176x128xbf16>, vector<128x128xbf16>, vector<176x128xf32> -> vector<176x128xf32>
    %cst_5 = arith.constant 0.000000e+00 : f32
    %5 = vector.broadcast %cst_5 : f32 to vector<176x128xf32>
    %6 = arith.maximumf %4, %5 : vector<176x128xf32>
    %c0_6 = arith.constant 0 : index
    %c0_7 = arith.constant 0 : index
    %7 = vector.load %arg4[%c0_6, %c0_7] : memref<176x176xbf16, #tpu.memory_space<vmem>>, vector<176x176xbf16>
    %8 = arith.truncf %6 : vector<176x128xf32> to vector<176x128xbf16>
    %cst_8 = arith.constant dense<0.000000e+00> : vector<176x128xf32>
    %9 = tpu.matmul %7, %8, %cst_8 {dimension_numbers = #tpu.dot_dimension_numbers<[1], [0], [0], [1], [0, 0, 1, 1], [], []>} : vector<176x176xbf16>, vector<176x128xbf16>, vector<176x128xf32> -> vector<176x128xf32>
    %c0_9 = arith.constant 0 : index
    %c0_10 = arith.constant 0 : index
    %10 = vector.load %arg5[%c0_9, %c0_10] : memref<176x1xf32, #tpu.memory_space<vmem>>, vector<176x1xf32>
    %11 = vector.broadcast %10 : vector<176x1xf32> to vector<176x128xf32>
    %12 = arith.addf %9, %11 : vector<176x128xf32>
    %cst_11 = arith.constant 0.000000e+00 : f32
    %13 = vector.broadcast %cst_11 : f32 to vector<8x128xf32>
    %14 = vector.extract_strided_slice %12 {offsets = [0, 0], sizes = [56, 128], strides = [1, 1]} : vector<176x128xf32> to vector<56x128xf32>
    %15 = vector.extract_strided_slice %12 {offsets = [112, 0], sizes = [8, 128], strides = [1, 1]} : vector<176x128xf32> to vector<8x128xf32>
    %16 = vector.extract_strided_slice %12 {offsets = [56, 0], sizes = [56, 128], strides = [1, 1]} : vector<176x128xf32> to vector<56x128xf32>
    %17 = vector.extract_strided_slice %12 {offsets = [120, 0], sizes = [56, 128], strides = [1, 1]} : vector<176x128xf32> to vector<56x128xf32>
    %18 = arith.maximumf %16, %17 : vector<56x128xf32>
    %19 = tpu.concatenate %13, %14, %15, %18 in 0 : vector<8x128xf32>, vector<56x128xf32>, vector<8x128xf32>, vector<56x128xf32> -> vector<128x128xf32>
    %20 = arith.truncf %19 : vector<128x128xf32> to vector<128x128xbf16>
    %21 = tpu.concatenate %20, %0 in 0 : vector<128x128xbf16>, vector<96x128xbf16> -> vector<224x128xbf16>
    %c0_12 = arith.constant 0 : index
    %c0_13 = arith.constant 0 : index
    %22 = vector.load %arg6[%c0_12, %c0_13] : memref<176x224xbf16, #tpu.memory_space<vmem>>, vector<176x224xbf16>
    %cst_14 = arith.constant dense<0.000000e+00> : vector<176x128xf32>
    %23 = tpu.matmul %22, %21, %cst_14 {dimension_numbers = #tpu.dot_dimension_numbers<[1], [0], [0], [1], [0, 0, 1, 1], [], []>} : vector<176x224xbf16>, vector<224x128xbf16>, vector<176x128xf32> -> vector<176x128xf32>
    %cst_15 = arith.constant 0.000000e+00 : f32
    %24 = vector.broadcast %cst_15 : f32 to vector<176x128xf32>
    %25 = arith.maximumf %23, %24 : vector<176x128xf32>
    %c0_16 = arith.constant 0 : index
    %c0_17 = arith.constant 0 : index
    %26 = vector.load %arg7[%c0_16, %c0_17] : memref<176x176xbf16, #tpu.memory_space<vmem>>, vector<176x176xbf16>
    %27 = arith.truncf %25 : vector<176x128xf32> to vector<176x128xbf16>
    %cst_18 = arith.constant dense<0.000000e+00> : vector<176x128xf32>
    %28 = tpu.matmul %26, %27, %cst_18 {dimension_numbers = #tpu.dot_dimension_numbers<[1], [0], [0], [1], [0, 0, 1, 1], [], []>} : vector<176x176xbf16>, vector<176x128xbf16>, vector<176x128xf32> -> vector<176x128xf32>
    %c0_19 = arith.constant 0 : index
    %c0_20 = arith.constant 0 : index
    %29 = vector.load %arg8[%c0_19, %c0_20] : memref<176x1xf32, #tpu.memory_space<vmem>>, vector<176x1xf32>
    %30 = vector.broadcast %29 : vector<176x1xf32> to vector<176x128xf32>
    %31 = arith.addf %28, %30 : vector<176x128xf32>
    %cst_21 = arith.constant 0.000000e+00 : f32
    %32 = vector.broadcast %cst_21 : f32 to vector<8x128xf32>
    %33 = vector.extract_strided_slice %31 {offsets = [0, 0], sizes = [56, 128], strides = [1, 1]} : vector<176x128xf32> to vector<56x128xf32>
    %34 = vector.extract_strided_slice %31 {offsets = [112, 0], sizes = [8, 128], strides = [1, 1]} : vector<176x128xf32> to vector<8x128xf32>
    %35 = vector.extract_strided_slice %31 {offsets = [56, 0], sizes = [56, 128], strides = [1, 1]} : vector<176x128xf32> to vector<56x128xf32>
    %36 = vector.extract_strided_slice %31 {offsets = [120, 0], sizes = [56, 128], strides = [1, 1]} : vector<176x128xf32> to vector<56x128xf32>
    %37 = arith.maximumf %35, %36 : vector<56x128xf32>
    %38 = tpu.concatenate %32, %33, %34, %37 in 0 : vector<8x128xf32>, vector<56x128xf32>, vector<8x128xf32>, vector<56x128xf32> -> vector<128x128xf32>
    %39 = arith.truncf %38 : vector<128x128xf32> to vector<128x128xbf16>
    %40 = tpu.concatenate %39, %0 in 0 : vector<128x128xbf16>, vector<96x128xbf16> -> vector<224x128xbf16>
    %c0_22 = arith.constant 0 : index
    %c0_23 = arith.constant 0 : index
    %41 = vector.load %arg9[%c0_22, %c0_23] : memref<352x224xbf16, #tpu.memory_space<vmem>>, vector<352x224xbf16>
    %cst_24 = arith.constant dense<0.000000e+00> : vector<352x128xf32>
    %42 = tpu.matmul %41, %40, %cst_24 {dimension_numbers = #tpu.dot_dimension_numbers<[1], [0], [0], [1], [0, 0, 1, 1], [], []>} : vector<352x224xbf16>, vector<224x128xbf16>, vector<352x128xf32> -> vector<352x128xf32>
    %cst_25 = arith.constant 0.000000e+00 : f32
    %43 = vector.broadcast %cst_25 : f32 to vector<352x128xf32>
    %44 = arith.maximumf %42, %43 : vector<352x128xf32>
    %c0_26 = arith.constant 0 : index
    %c0_27 = arith.constant 0 : index
    %45 = vector.load %arg10[%c0_26, %c0_27] : memref<352x352xbf16, #tpu.memory_space<vmem>>, vector<352x352xbf16>
    %46 = arith.truncf %44 : vector<352x128xf32> to vector<352x128xbf16>
    %cst_28 = arith.constant dense<0.000000e+00> : vector<352x128xf32>
    %47 = tpu.matmul %45, %46, %cst_28 {dimension_numbers = #tpu.dot_dimension_numbers<[1], [0], [0], [1], [0, 0, 1, 1], [], []>} : vector<352x352xbf16>, vector<352x128xbf16>, vector<352x128xf32> -> vector<352x128xf32>
    %c0_29 = arith.constant 0 : index
    %c0_30 = arith.constant 0 : index
    %48 = vector.load %arg11[%c0_29, %c0_30] : memref<352x1xf32, #tpu.memory_space<vmem>>, vector<352x1xf32>
    %49 = vector.broadcast %48 : vector<352x1xf32> to vector<352x128xf32>
    %50 = arith.addf %47, %49 : vector<352x128xf32>
    %cst_31 = arith.constant 0.000000e+00 : f32
    %51 = vector.broadcast %cst_31 : f32 to vector<16x128xf32>
    %52 = vector.extract_strided_slice %50 {offsets = [0, 0], sizes = [112, 128], strides = [1, 1]} : vector<352x128xf32> to vector<112x128xf32>
    %53 = vector.extract_strided_slice %50 {offsets = [224, 0], sizes = [16, 128], strides = [1, 1]} : vector<352x128xf32> to vector<16x128xf32>
    %54 = vector.extract_strided_slice %50 {offsets = [112, 0], sizes = [112, 128], strides = [1, 1]} : vector<352x128xf32> to vector<112x128xf32>
    %55 = vector.extract_strided_slice %50 {offsets = [240, 0], sizes = [112, 128], strides = [1, 1]} : vector<352x128xf32> to vector<112x128xf32>
    %56 = arith.maximumf %54, %55 : vector<112x128xf32>
    %57 = tpu.concatenate %51, %52, %53, %56 in 0 : vector<16x128xf32>, vector<112x128xf32>, vector<16x128xf32>, vector<112x128xf32> -> vector<256x128xf32>
    %c0_32 = arith.constant 0 : index
    %c0_33 = arith.constant 0 : index
    %58 = vector.load %arg12[%c0_32, %c0_33] : memref<8x256xbf16, #tpu.memory_space<vmem>>, vector<8x256xbf16>
    %59 = arith.truncf %57 : vector<256x128xf32> to vector<256x128xbf16>
    %cst_34 = arith.constant dense<0.000000e+00> : vector<8x128xf32>
    %60 = tpu.matmul %58, %59, %cst_34 {dimension_numbers = #tpu.dot_dimension_numbers<[1], [0], [0], [1], [0, 0, 1, 1], [], []>} : vector<8x256xbf16>, vector<256x128xbf16>, vector<8x128xf32> -> vector<8x128xf32>
    %c0_35 = arith.constant 0 : index
    %c0_36 = arith.constant 0 : index
    %61 = vector.load %arg13[%c0_35, %c0_36] : memref<8x1xf32, #tpu.memory_space<vmem>>, vector<8x1xf32>
    %62 = vector.broadcast %61 : vector<8x1xf32> to vector<8x128xf32>
    %63 = arith.addf %60, %62 : vector<8x128xf32>
    %c0_37 = arith.constant 0 : index
    %c0_38 = arith.constant 0 : index
    %64 = vector.load %arg14[%c0_37, %c0_38] : memref<8x128xf32, #tpu.memory_space<vmem>>, vector<8x128xf32>
    tpu.vector_store %arg14[%c0_37, %c0_38], %63 {strides = array<i32>} : memref<8x128xf32, #tpu.memory_space<vmem>>, vector<8x128xf32>,
    return
  }
  func.func @transform_0(%arg0: i32) -> (i32, i32) {
    %c0_i32 = arith.constant 0 : i32
    %c0_i32_0 = arith.constant 0 : i32
    return %c0_i32, %arg0 : i32, i32
  }
  func.func @transform_1(%arg0: i32) -> (i32, i32) {
    %c0_i32 = arith.constant 0 : i32
    %c0_i32_0 = arith.constant 0 : i32
    return %c0_i32, %arg0 : i32, i32
  }
  func.func @transform_2(%arg0: i32) -> (i32, i32) {
    %c0_i32 = arith.constant 0 : i32
    %c0_i32_0 = arith.constant 0 : i32
    %c0_i32_1 = arith.constant 0 : i32
    return %c0_i32, %c0_i32_0 : i32, i32
  }
  func.func @transform_3(%arg0: i32) -> (i32, i32) {
    %c0_i32 = arith.constant 0 : i32
    %c0_i32_0 = arith.constant 0 : i32
    %c0_i32_1 = arith.constant 0 : i32
    return %c0_i32, %c0_i32_0 : i32, i32
  }
  func.func @transform_4(%arg0: i32) -> (i32, i32) {
    %c0_i32 = arith.constant 0 : i32
    %c0_i32_0 = arith.constant 0 : i32
    %c0_i32_1 = arith.constant 0 : i32
    return %c0_i32, %c0_i32_0 : i32, i32
  }
  func.func @transform_5(%arg0: i32) -> (i32, i32) {
    %c0_i32 = arith.constant 0 : i32
    %c0_i32_0 = arith.constant 0 : i32
    %c0_i32_1 = arith.constant 0 : i32
    return %c0_i32, %c0_i32_0 : i32, i32
  }
  func.func @transform_6(%arg0: i32) -> (i32, i32) {
    %c0_i32 = arith.constant 0 : i32
    %c0_i32_0 = arith.constant 0 : i32
    %c0_i32_1 = arith.constant 0 : i32
    return %c0_i32, %c0_i32_0 : i32, i32
  }
  func.func @transform_7(%arg0: i32) -> (i32, i32) {
    %c0_i32 = arith.constant 0 : i32
    %c0_i32_0 = arith.constant 0 : i32
    %c0_i32_1 = arith.constant 0 : i32
    return %c0_i32, %c0_i32_0 : i32, i32
  }
  func.func @transform_8(%arg0: i32) -> (i32, i32) {
    %c0_i32 = arith.constant 0 : i32
    %c0_i32_0 = arith.constant 0 : i32
    %c0_i32_1 = arith.constant 0 : i32
    return %c0_i32, %c0_i32_0 : i32, i32
  }
  func.func @transform_9(%arg0: i32) -> (i32, i32) {
    %c0_i32 = arith.constant 0 : i32
    %c0_i32_0 = arith.constant 0 : i32
    %c0_i32_1 = arith.constant 0 : i32
    return %c0_i32, %c0_i32_0 : i32, i32
  }
  func.func @transform_10(%arg0: i32) -> (i32, i32) {
    %c0_i32 = arith.constant 0 : i32
    %c0_i32_0 = arith.constant 0 : i32
    %c0_i32_1 = arith.constant 0 : i32
    return %c0_i32, %c0_i32_0 : i32, i32
  }
  func.func @transform_11(%arg0: i32) -> (i32, i32) {
    %c0_i32 = arith.constant 0 : i32
    %c0_i32_0 = arith.constant 0 : i32
    %c0_i32_1 = arith.constant 0 : i32
    return %c0_i32, %c0_i32_0 : i32, i32
  }
  func.func @transform_12(%arg0: i32) -> (i32, i32) {
    %c0_i32 = arith.constant 0 : i32
    %c0_i32_0 = arith.constant 0 : i32
    %c0_i32_1 = arith.constant 0 : i32
    return %c0_i32, %c0_i32_0 : i32, i32
  }
  func.func @transform_13(%arg0: i32) -> (i32, i32) {
    %c0_i32 = arith.constant 0 : i32
    %c0_i32_0 = arith.constant 0 : i32
    return %c0_i32, %arg0 : i32, i32
  }
}

</mosaic_0001>

<bundles_post_ra>
// kernel: gnn_forward.1
= control target key start
LH: loop header
LB: loop body
LE: loop exit
PB: predicated region body
PF: predicated region fallthrough
CT: control target
= control target key end

     0   :  { %s4870_s25 = smov 0   ;;  %s4872_s26 = smov 0   ;;  %s6481_s0 = inlined_call_operand.vmem [shape: bf16[32,256], index: 0, kind: input, shape index: {}]   ;;  %s6482_s1 = inlined_call_operand.vmem [shape: bf16[96,256], index: 1, kind: input, shape index: {}]   ;;  %s6483_s2 = inlined_call_operand.vmem [shape: bf16[176,128], index: 2, kind: input, shape index: {}]   ;;  %s6484_s3 = inlined_call_operand.vmem [shape: bf16[176,176], index: 3, kind: input, shape index: {}]   ;;  %s6485_s4 = inlined_call_operand.vmem [shape: f32[176,1], index: 4, kind: input, shape index: {}]   ;;  %s6486_s5 = inlined_call_operand.vmem [shape: bf16[176,224], index: 5, kind: input, shape index: {}]   ;;  %s6487_s6 = inlined_call_operand.vmem [shape: bf16[176,176], index: 6, kind: input, shape index: {}]   ;;  %s6488_s7 = inlined_call_operand.vmem [shape: f32[176,1], index: 7, kind: input, shape index: {}]   ;;  %s6489_s8 = inlined_call_operand.vmem [shape: bf16[352,224], index: 8, kind: input, shape index: {}]   ;;  %s6490_s9 = inlined_call_operand.vmem [shape: bf16[352,352], index: 9, kind: input, shape index: {}]   ;;  %s6491_s10 = inlined_call_operand.vmem [shape: f32[352,1], index: 10, kind: input, shape index: {}]   ;;  %s6492_s11 = inlined_call_operand.vmem [shape: bf16[8,256], index: 11, kind: input, shape index: {}]   ;;  %s6493_s12 = inlined_call_operand.vmem [shape: f32[8,1], index: 12, kind: input, shape index: {}]   ;;  %s6494_s13 = inlined_call_operand.vmem [shape: f32[8,256], index: 13, kind: output, shape index: {}]  }
   0x1   :  { %s4874_s27 = smov 0  }
   0x2 LB: > { %s3973_s28 = sadd.s32 4294967295, %s4794_s27   ;;  %s4887_s29 = sadd.s32 1, %s4794_s27   ;;  %s4794_s27 = sphi %s4874_s27, %s6557_s27   ;;  %s4790_s26 = sphi %s4872_s26, %s6556_s26   ;;  %s4786_s25 = sphi %s4870_s25, %s6555_s25  }
   0x3   : > { %s27_s30 = ssub.s32 %s4794_s27, %s4887_s29  ;;  %s30_s14 = sadd.s32 1, %s4790_s26 }
   0x4   : > { %p28_p0 = scmp.eq.s32.totalorder %s27_s30, 0  ;;  %p37_p1 = scmp.ne.s32.totalorder %s4790_s26, %s4786_s25 }
   0x5   : > { %p38_p2 = scmp.eq.s32.totalorder %s4794_s27, 0  ;;  %p3976_p4 = scmp.ge.s32.totalorder %s4794_s27, 2 }
   0x6   : > { %s4896_s15 = scalar_select %p28_p0, %s4790_s26, %s30_s14  }
   0x7   : > { %p4898_p3 = por %p38_p2, %p37_p1  ;;  %379 = sbr.rel (%p3976_p4) target bundleno = 30 (0x1e), region = 60 }
   0xc   : > { %382 = sbr.rel (!%p4898_p3) target bundleno = 18 (0x12), region = 64  ;;  %s384_s17 = sand.u32 (%p4898_p3), 1, %s4790_s26  }
   0xd   : > { %s3978_s18 = sshll.u32 (%p4898_p3), %s4794_s27, 2  ;;  %s3977_s19 = sshll.u32 (%p4898_p3), %s384_s17, 4 }
   0xe   : > { %s388_s22 = scalar_lea.vmem (%p4898_p3), %s6481_s0, %s3978_s18  ;;  %s386_s23 = scalar_lea.vmem (%p4898_p3), [#allocation2], %s3977_s19 }
   0xf   : > { %v405_v0 = vld [vmem:[%s388_s22] sm:$0xf] (%p4898_p3)  ;;  %v407_v1 = vld [vmem:[%s388_s22 + $0x8] sm:$0xf] (%p4898_p3)  ;;  %v409_v2 = vld [vmem:[%s388_s22 + $0x10] sm:$0xf] (%p4898_p3) }
  0x10   : > { %406 = vst [vmem:[%s386_s23] sm:$0xf] (%p4898_p3), %v405_v0  ;;  %408 = vst [vmem:[%s386_s23 + $0x4] sm:$0xf] (%p4898_p3), %v407_v1  ;;  %v411_v3 = vld [vmem:[%s388_s22 + $0x18] sm:$0xf] (%p4898_p3) }
  0x11   : > { %410 = vst [vmem:[%s386_s23 + $0x8] sm:$0xf] %v409_v2  ;;  %412 = vst [vmem:[%s386_s23 + $0xc] sm:$0xf] %v411_v3 }
  0x12 PF: > { %444 = sbr.rel (!%p4898_p3) target bundleno = 30 (0x1e), region = 105  ;;  %s446_s24 = sand.u32 (%p4898_p3), 1, %s4790_s26  }
  0x13   : > { %s3979_s30 = sshll.u32 (%p4898_p3), %s4794_s27, 2  ;;  %s4460_s14 = smul.u32 (%p4898_p3), 48, %s446_s24 }
  0x14   : > { %s450_s20 = scalar_lea.vmem (%p4898_p3), %s6482_s1, %s3979_s30 }
  0x15   : > { %v467_v4 = vld [vmem:[%s450_s20] sm:$0xf] (%p4898_p3)  ;;  %v469_v5 = vld [vmem:[%s450_s20 + $0x8] sm:$0xf] (%p4898_p3)  ;;  %v471_v6 = vld [vmem:[%s450_s20 + $0x10] sm:$0xf] (%p4898_p3) }
  0x16   : > { %v473_v7 = vld [vmem:[%s450_s20 + $0x18] sm:$0xf] (%p4898_p3)  ;;  %v475_v8 = vld [vmem:[%s450_s20 + $0x20] sm:$0xf] (%p4898_p3)  ;;  %s448_s19 = scalar_lea.vmem (%p4898_p3), [#allocation3], %s4460_s14 }
  0x17   : > { %468 = vst [vmem:[%s448_s19] sm:$0xf] %v467_v4  ;;  %470 = vst [vmem:[%s448_s19 + $0x4] sm:$0xf] %v469_v5  ;;  %v477_v9 = vld [vmem:[%s450_s20 + $0x28] sm:$0xf] }
  0x18   : > { %472 = vst [vmem:[%s448_s19 + $0x8] sm:$0xf] %v471_v6  ;;  %474 = vst [vmem:[%s448_s19 + $0xc] sm:$0xf] %v473_v7  ;;  %v479_v10 = vld [vmem:[%s450_s20 + $0x30] sm:$0xf] }
  0x19   : > { %476 = vst [vmem:[%s448_s19 + $0x10] sm:$0xf] %v475_v8  ;;  %v481_v11 = vld [vmem:[%s450_s20 + $0x38] sm:$0xf]  ;;  %478 = vst [vmem:[%s448_s19 + $0x14] sm:$0xf] %v477_v9 }
  0x1a   : > { %480 = vst [vmem:[%s448_s19 + $0x18] sm:$0xf] %v479_v10  ;;  %482 = vst [vmem:[%s448_s19 + $0x1c] sm:$0xf] %v481_v11  ;;  %v483_v12 = vld [vmem:[%s450_s20 + $0x40] sm:$0xf] }
  0x1b   : > { %v485_v13 = vld [vmem:[%s450_s20 + $0x48] sm:$0xf]  ;;  %v487_v14 = vld [vmem:[%s450_s20 + $0x50] sm:$0xf]  ;;  %484 = vst [vmem:[%s448_s19 + $0x20] sm:$0xf] %v483_v12 }
  0x1c   : > { %486 = vst [vmem:[%s448_s19 + $0x24] sm:$0xf] %v485_v13  ;;  %488 = vst [vmem:[%s448_s19 + $0x28] sm:$0xf] %v487_v14  ;;  %v489_v15 = vld [vmem:[%s450_s20 + $0x58] sm:$0xf] }
  0x1d   : > { %490 = vst [vmem:[%s448_s19 + $0x2c] sm:$0xf] %v489_v15 }
  0x1e PF: > { %p3980_p5 = scmp.ge.s32.totalorder %s4794_s27, 1  ;;  %p537_p6 = scmp.lt.s32.totalorder %s4794_s27, 3 }
  0x20   : > { %p538_p7 = pnand %p3980_p5, %p537_p6 }
  0x22   : > { %541 = sbr.rel (%p538_p7) target bundleno = 2296 (0x8f8), region = 146 }
  0x27   : > { %s544_s16 = sand.u32 1, %s4786_s25   ;;  %v4796_v16 = vmov 0.0   ;;  %vm4797_vm0 = vmmov 0   ;;  %v4500_v25 = vld [vmem:[%s6483_s2] sm:$0xff]   ;;  %v4505_v26 = vld [vmem:[%s6483_s2 + $0x38] sm:$0xff]   ;;  %v4501_v27 = vld [vmem:[%s6483_s2 + $0x8] sm:$0xff]  }
  0x28   : > { %4328 = vmatprep.subr.bf16.mxu0 %v4796_v16  ;;  %s4461_s21 = smul.u32 48, %s544_s16  ;;  %s4921_s22 = sshll.u32 %s544_s16, 4  ;;  %4344 = vmatprep.mubr.msk.bf16.mxu0 %vm4797_vm0, %v4796_v16  ;;  %v4508_v28 = vld [vmem:[%s6483_s2 + $0x40] sm:$0xff]   ;;  %v4502_v29 = vld [vmem:[%s6483_s2 + $0x10] sm:$0xff]   ;;  %v4509_v30 = vld [vmem:[%s6483_s2 + $0x48] sm:$0xff]   ;;  %v4798_v36 = vmov 0  }
  0x29   : > { %4444 = vmatprep.subr.bf16.mxu1 %v4796_v16  ;;  %4372 = vmatprep.mubr.msk.bf16.mxu1 %vm4797_vm0, %v4796_v16  ;;  %s546_s23 = scalar_lea.vmem [#allocation2], %s4921_s22  ;;  %v4503_v31 = vld [vmem:[%s6483_s2 + $0x18] sm:$0xff]   ;;  %v4510_v32 = vld [vmem:[%s6483_s2 + $0x50] sm:$0xff]   ;;  %v4504_v33 = vld [vmem:[%s6483_s2 + $0x20] sm:$0xff]   ;;  %vm1161_vm1 = vcmask 392192   ;;  %vm1452_vm2 = vcmask 785408  }
  0x2a   : > { %s4929_s24 = scalar_lea.vmem [#allocation3], %s4461_s21  ;;  %v4498_v23 = vld [vmem:[%s546_s23 + $0x8] sm:$0xff]   ;;  %v4499_v24 = vld [vmem:[%s546_s23] sm:$0xff]   ;;  %4490 = vset.pattern.permute.xlu0 %v4798_v36  ;;  %4491 = vset.pattern.permute.xlu1 %v4798_v36  ;;  %p597_p8 = scmp.lt.s32.totalorder %s3973_s28, 1 }
  0x2b   : > { %v4492_v17 = vld [vmem:[%s4929_s24 + $0x28] sm:$0xff]   ;;  %v4493_v18 = vld [vmem:[%s4929_s24 + $0x20] sm:$0xff]   ;;  %v4494_v19 = vld [vmem:[%s4929_s24 + $0x18] sm:$0xff]  }
  0x2c   : > { %4329 = vmatpush3.bf16.msra.mxu0 %v4492_v17  ;;  %4452 = vmatpush3.bf16.msra.mxu1 %v4492_v17  ;;  %v4495_v20 = vld [vmem:[%s4929_s24 + $0x10] sm:$0xff]   ;;  %v4496_v21 = vld [vmem:[%s4929_s24 + $0x8] sm:$0xff]   ;;  %v4497_v22 = vld [vmem:[%s4929_s24] sm:$0xff]   ;;  %s6559_s28 = smov (!%p597_p8, %s3973_s28), 1 }
  0x2d   : > { %4330 = vmatprep.subr.bf16.mxu0 %v4796_v16  ;;  %4445 = vmatprep.subr.bf16.mxu1 %v4796_v16  ;;  %v4506_v34 = vld [vmem:[%s6483_s2 + $0x28] sm:$0xff]   ;;  %v4507_v35 = vld [vmem:[%s6483_s2 + $0x30] sm:$0xff]   ;;  %v942_v37 = vld [vmem:[%s6485_s4 + $0x60] sm:$0xff] }
  0x2e   : > { %1014 = vperm.xlu0 %4490, %v942_v37   ;;  %v943_v38 = vld [vmem:[%s6485_s4 + $0x68] sm:$0xff]  ;;  %v950_v39 = vld [vmem:[%s6485_s4 + $0xa0] sm:$0xff]  ;;  %v940_v40 = vld [vmem:[%s6485_s4 + $0x50] sm:$0xff] }
  0x2f   : > { %1054 = vperm.xlu1 %4491, %v950_v39   ;;  %v951_v41 = vld [vmem:[%s6485_s4 + $0xa8] sm:$0xff]  ;;  %v948_v42 = vld [vmem:[%s6485_s4 + $0x90] sm:$0xff]  ;;  %v941_v43 = vld [vmem:[%s6485_s4 + $0x58] sm:$0xff] }
  0x30   : > { %4331 = vmatpush3.bf16.msra.mxu0 %v4493_v18  ;;  %4453 = vmatpush3.bf16.msra.mxu1 %v4493_v18  ;;  %v938_v44 = vld [vmem:[%s6485_s4 + $0x40] sm:$0xff]  ;;  %v949_v45 = vld [vmem:[%s6485_s4 + $0x98] sm:$0xff]  ;;  %v939_v47 = vld [vmem:[%s6485_s4 + $0x48] sm:$0xff] }
  0x31   : > { %4332 = vmatprep.subr.bf16.mxu0 %v4796_v16  ;;  %4446 = vmatprep.subr.bf16.mxu1 %v4796_v16  ;;  %v946_v46 = vld [vmem:[%s6485_s4 + $0x80] sm:$0xff]  ;;  %v937_v48 = vld [vmem:[%s6485_s4 + $0x38] sm:$0xff]  ;;  %v947_v49 = vld [vmem:[%s6485_s4 + $0x88] sm:$0xff] }
  0x32   : > { %1019 = vperm.xlu0 %4490, %v943_v38   ;;  %v944_v50 = vld [vmem:[%s6485_s4 + $0x70] sm:$0xff]  ;;  %v945_v51 = vld [vmem:[%s6485_s4 + $0x78] sm:$0xff]  ;;  %v935_v53 = vld [vmem:[%s6485_s4 + $0x28] sm:$0xff] }
  0x33   : > { %1059 = vperm.xlu1 %4491, %v951_v41   ;;  %v936_v52 = vld [vmem:[%s6485_s4 + $0x30] sm:$0xff]  ;;  %v934_v54 = vld [vmem:[%s6485_s4 + $0x20] sm:$0xff]  ;;  %v933_v56 = vld [vmem:[%s6485_s4 + $0x18] sm:$0xff] }
  0x34   : > { %4333 = vmatpush3.bf16.msra.mxu0 %v4494_v19  ;;  %4454 = vmatpush3.bf16.msra.mxu1 %v4494_v19  ;;  %v4513_v55 = vld [vmem:[%s6484_s3 + $0x4] ss:$8 sps:$4 sm:$0xff]   ;;  %v932_v57 = vld [vmem:[%s6485_s4 + $0x10] sm:$0xff]  ;;  %v1673_v2 = vld [vmem:[%s6488_s7 + $0x58] sm:$0xff] }
  0x35   : > { %4334 = vmatprep.subr.bf16.mxu0 %v4796_v16  ;;  %4447 = vmatprep.subr.bf16.mxu1 %v4796_v16  ;;  %v931_v58 = vld [vmem:[%s6485_s4 + $0x8] sm:$0xff]  ;;  %v1674_v59 = vld [vmem:[%s6488_s7 + $0x60] sm:$0xff]  ;;  %v1672_v63 = vld [vmem:[%s6488_s7 + $0x50] sm:$0xff] }
  0x36   : > { %1004 = vperm.xlu0 %4490, %v940_v40   ;;  %v930_v60 = vld [vmem:[%s6485_s4] sm:$0xff]  ;;  %v1675_v62 = vld [vmem:[%s6488_s7 + $0x68] sm:$0xff]  ;;  %v1680_v1 = vld [vmem:[%s6488_s7 + $0x90] sm:$0xff] }
  0x37   : > { %1009 = vperm.xlu1 %4491, %v941_v43   ;;  %v1682_v61 = vld [vmem:[%s6488_s7 + $0xa0] sm:$0xff]  ;;  %v1683_v0 = vld [vmem:[%s6488_s7 + $0xa8] sm:$0xff]  ;;  %v1681_v4 = vld [vmem:[%s6488_s7 + $0x98] sm:$0xff] }
  0x38   : > { %4335 = vmatpush3.bf16.msra.mxu0 %v4495_v20  ;;  %4455 = vmatpush3.bf16.msra.mxu1 %v4495_v20  ;;  %v1670_v3 = vld [vmem:[%s6488_s7 + $0x40] sm:$0xff]  ;;  %v1671_v6 = vld [vmem:[%s6488_s7 + $0x48] sm:$0xff]  ;;  %v1669_v7 = vld [vmem:[%s6488_s7 + $0x38] sm:$0xff] }
  0x39   : > { %4336 = vmatprep.subr.bf16.mxu0 %v4796_v16  ;;  %4448 = vmatprep.subr.bf16.mxu1 %v4796_v16  ;;  %v1678_v5 = vld [vmem:[%s6488_s7 + $0x80] sm:$0xff]  ;;  %v1679_v10 = vld [vmem:[%s6488_s7 + $0x88] sm:$0xff]  ;;  %v1676_v11 = vld [vmem:[%s6488_s7 + $0x70] sm:$0xff] }
  0x3a   : > { %1044 = vperm.xlu0 %4490, %v948_v42   ;;  %v1677_v14 = vld [vmem:[%s6488_s7 + $0x78] sm:$0xff]  ;;  %v1668_v17 = vld [vmem:[%s6488_s7 + $0x30] sm:$0xff] }
  0x3b   : > { %1049 = vperm.xlu1 %4491, %v949_v45   ;;  %v1663_v45 = vld [vmem:[%s6488_s7 + $0x8] sm:$0xff] }
  0x3c   : > { %4337 = vmatpush3.bf16.msra.mxu0 %v4496_v21  ;;  %4456 = vmatpush3.bf16.msra.mxu1 %v4496_v21 }
  0x3d   : > { %4338 = vmatprep.subr.bf16.mxu0 %v4796_v16  ;;  %4449 = vmatprep.subr.bf16.mxu1 %v4796_v16 }
  0x3e   : > { %994 = vperm.xlu0 %4490, %v938_v44  }
  0x3f   : > { %999 = vperm.xlu1 %4491, %v939_v47  }
  0x40   : > { %4339 = vmatpush3.bf16.msra.mxu0 %v4497_v22  ;;  %4457 = vmatpush3.bf16.msra.mxu1 %v4497_v22 }
  0x41   : > { %4340 = vmatprep.subr.bf16.mxu0 %v4796_v16  ;;  %4450 = vmatprep.subr.bf16.mxu1 %v4796_v16 }
  0x42   : > { %1034 = vperm.xlu0 %4490, %v946_v46   ;;  %v2759_v46 = vld [vmem:[%s6491_s10 + $0xd0] sm:$0xff] }
  0x43   : > { %1039 = vperm.xlu1 %4491, %v947_v49   ;;  %v1662_v49 = vld [vmem:[%s6488_s7] sm:$0xff] }
  0x44   : > { %4341 = vmatpush3.bf16.msra.mxu0 %v4498_v23  ;;  %4458 = vmatpush3.bf16.msra.mxu1 %v4498_v23 }
  0x45   : > { %4342 = vmatprep.subr.bf16.mxu0 %v4796_v16  ;;  %4451 = vmatprep.subr.bf16.mxu1 %v4796_v16 }
  0x46   : > { %989 = vperm.xlu0 %4490, %v937_v48  }
  0x47   : > { %1029 = vperm.xlu1 %4491, %v945_v51   ;;  %v2775_v51 = vld [vmem:[%s6491_s10 + $0x150] sm:$0xff] }
  0x48   : > { %4343 = vmatpush3.bf16.msra.mxu0 %v4499_v24  ;;  %4459 = vmatpush3.bf16.msra.mxu1 %v4499_v24 }
  0x49   : > { %1195 = vmatprep.subr.bf16.mxu1 %v4798_v36  ;;  %1486 = vmatprep.subr.bf16.mxu0 %v4798_v36 }
  0x4a   : > { %1024 = vperm.xlu0 %4490, %v944_v50  }
  0x4b   : > { %4345 = vmatmul.mubr.bf16.vlgmr.msra.gmra.mxu0 %v4500_v25  ;;  %4373 = vmatmul.mubr.bf16.vlgmr.msra.gmra.mxu1 %v4505_v26 }
  0x4c   : > { %4348 = vmatprep.mubr.msk.bf16.mxu0 %vm4797_vm0, %v4796_v16  ;;  %4376 = vmatprep.mubr.msk.bf16.mxu1 %vm4797_vm0, %v4796_v16 }
  0x4d   : > { %979 = vperm.xlu1 %4491, %v935_v53  }
  0x4e   : > { %984 = vperm.xlu0 %4490, %v936_v52  }
  0x51   : > { %969 = vperm.xlu1 %4491, %v933_v56  }
  0x52   : > { %974 = vperm.xlu0 %4490, %v934_v54  }
  0x53   : > { %4349 = vmatmul.mubr.bf16.gmra.mxu0 %v4501_v27  ;;  %4377 = vmatmul.mubr.bf16.gmra.mxu1 %v4508_v28 }
  0x54   : > { %4352 = vmatprep.mubr.msk.bf16.mxu0 %vm4797_vm0, %v4796_v16  ;;  %4380 = vmatprep.mubr.msk.bf16.mxu1 %vm4797_vm0, %v4796_v16 }
  0x55   : > { %959 = vperm.xlu1 %4491, %v931_v58  }
  0x56   : > { %964 = vperm.xlu0 %4490, %v932_v57  }
  0x59   : > { %954 = vperm.xlu1 %4491, %v930_v60   ;;  %v2760_v60 = vld [vmem:[%s6491_s10 + $0xd8] sm:$0xff] }
  0x5a   : > { %1746 = vperm.xlu0 %4490, %v1674_v59  }
  0x5b   : > { %4353 = vmatmul.mubr.bf16.gmra.mxu0 %v4502_v29  ;;  %4381 = vmatmul.mubr.bf16.gmra.mxu1 %v4509_v30  ;;  %v1667_v29 = vld [vmem:[%s6488_s7 + $0x28] sm:$0xff]  ;;  %v1666_v30 = vld [vmem:[%s6488_s7 + $0x20] sm:$0xff] }
  0x5c   : > { %4356 = vmatprep.mubr.msk.bf16.mxu0 %vm4797_vm0, %v4796_v16  ;;  %4384 = vmatprep.mubr.msk.bf16.mxu1 %vm4797_vm0, %v4796_v16 }
  0x5d   : > { %1751 = vperm.xlu1 %4491, %v1675_v62  }
  0x5e   : > { %1786 = vperm.xlu0 %4490, %v1682_v61   ;;  %v2745_v61 = vld [vmem:[%s6491_s10 + $0x60] sm:$0xff] }
  0x61   : > { %1791 = vperm.xlu1 %4491, %v1683_v0   ;;  %v2776_v0 = vld [vmem:[%s6491_s10 + $0x158] sm:$0xff] }
  0x62   : > { %1736 = vperm.xlu0 %4490, %v1672_v63  }
  0x63   : > { %4357 = vmatmul.mubr.bf16.gmra.mxu0 %v4503_v31  ;;  %4385 = vmatmul.mubr.bf16.gmra.mxu1 %v4510_v32 }
  0x64   : > { %4360 = vmatprep.mubr.msk.bf16.mxu0 %vm4797_vm0, %v4796_v16  ;;  %4024 = vmatprep.mubr.msk.bf16.mxu1 %vm1161_vm1, %v4513_v55 }
  0x65   : > { %1741 = vperm.xlu1 %4491, %v1673_v2  }
  0x66   : > { %1776 = vperm.xlu0 %4490, %v1680_v1   ;;  %v2757_v1 = vld [vmem:[%s6491_s10 + $0xc0] sm:$0xff] }
  0x69   : > { %1781 = vperm.xlu1 %4491, %v1681_v4  }
  0x6a   : > { %1726 = vperm.xlu0 %4490, %v1670_v3  }
  0x6b   : > { %4361 = vmatmul.mubr.bf16.gmra.mxu0 %v4504_v33  ;;  %v1665_v33 = vld [vmem:[%s6488_s7 + $0x18] sm:$0xff] }
  0x6c   : > { %4364 = vmatprep.mubr.msk.bf16.mxu0 %vm4797_vm0, %v4796_v16 }
  0x6d   : > { %1731 = vperm.xlu1 %4491, %v1671_v6  }
  0x6e   : > { %1766 = vperm.xlu0 %4490, %v1678_v5  }
  0x71   : > { %1771 = vperm.xlu1 %4491, %v1679_v10   ;;  %v2758_v10 = vld [vmem:[%s6491_s10 + $0xc8] sm:$0xff] }
  0x72   : > { %1721 = vperm.xlu0 %4490, %v1669_v7   ;;  %v2746_v7 = vld [vmem:[%s6491_s10 + $0x68] sm:$0xff] }
  0x73   : > { %4365 = vmatmul.mubr.bf16.gmra.mxu0 %v4506_v34 }
  0x74   : > { %4368 = vmatprep.mubr.msk.bf16.mxu0 %vm4797_vm0, %v4796_v16 }
  0x75   : > { %1761 = vperm.xlu1 %4491, %v1677_v14  }
  0x76   : > { %1756 = vperm.xlu0 %4490, %v1676_v11   ;;  %v2743_v11 = vld [vmem:[%s6491_s10 + $0x50] sm:$0xff] }
  0x79   : > { %1711 = vperm.xlu1 %4491, %v1667_v29   ;;  %v2772_v29 = vld [vmem:[%s6491_s10 + $0x138] sm:$0xff] }
  0x7a   : > { %1716 = vperm.xlu0 %4490, %v1668_v17   ;;  %v2755_v17 = vld [vmem:[%s6491_s10 + $0xb0] sm:$0xff] }
  0x7b   : > { %4369 = vmatmul.mubr.bf16.gmra.mxu0 %v4507_v35  ;;  %v1664_v35 = vld [vmem:[%s6488_s7 + $0x10] sm:$0xff] }
  0x7d   : > { %1701 = vperm.xlu1 %4491, %v1665_v33  }
  0x7e   : > { %1706 = vperm.xlu0 %4490, %v1666_v30   ;;  %v2753_v30 = vld [vmem:[%s6491_s10 + $0xa0] sm:$0xff] }
  0x81   : > { %1691 = vperm.xlu1 %4491, %v1663_v45  }
  0x82   : > { %1696 = vperm.xlu0 %4490, %v1664_v35   ;;  %v2742_v35 = vld [vmem:[%s6491_s10 + $0x48] sm:$0xff] }
  0x85   : > { %1686 = vperm.xlu1 %4491, %v1662_v49   ;;  %v2770_v49 = vld [vmem:[%s6491_s10 + $0x128] sm:$0xff] }
  0x86   : > { %2909 = vperm.xlu0 %4490, %v2759_v46  }
  0x89   : > { %2914 = vperm.xlu1 %4491, %v2760_v60  }
  0x8a   : > { %2989 = vperm.xlu0 %4490, %v2775_v51  }
  0x8d   : > { %2994 = vperm.xlu1 %4491, %v2776_v0  }
  0x8e   : > { %2839 = vperm.xlu0 %4490, %v2745_v61   ;;  %v2767_v61 = vld [vmem:[%s6491_s10 + $0x110] sm:$0xff] }
  0x91   : > { %2844 = vperm.xlu1 %4491, %v2746_v7   ;;  %v2750_v7 = vld [vmem:[%s6491_s10 + $0x88] sm:$0xff] }
  0x92   : > { %2899 = vperm.xlu0 %4490, %v2757_v1  }
  0x95   : > { %2904 = vperm.xlu1 %4491, %v2758_v10   ;;  %v2763_v10 = vld [vmem:[%s6491_s10 + $0xf0] sm:$0xff] }
 0x10b   : > { %v788_v8 = vpop.f32.mrf.mxu0  ;;  %v844_v9 = vpop.f32.mrf.mxu1 }
 0x10c   : > { %v889_v15 = vmax.f32 %v844_v9, 0.0  ;;  %v875_v20 = vmax.f32 %v788_v8, 0.0  ;;  %v2773_v8 = vld [vmem:[%s6491_s10 + $0x140] sm:$0xff] }
 0x10d   : > { %v4346_v12 = vpop.f32.mrf.mxu0  ;;  %v4374_v13 = vpop.f32.mrf.mxu1  ;;  %2979 = vperm.xlu0 %4490, %v2773_v8  }
 0x10f   : > { %v791_v18 = vpop.f32.mrf.mxu0  ;;  %v847_v19 = vpop.f32.mrf.mxu1 }
 0x110   : > { %v876_v21 = vmax.f32 %v791_v18, 0.0  ;;  %v890_v22 = vmax.f32 %v847_v19, 0.0  ;;  %v2744_v19 = vld [vmem:[%s6491_s10 + $0x58] sm:$0xff] }
 0x111   : > { %v4347_v23 = vpop.f32.mrf.mxu0  ;;  %v4375_v24 = vpop.f32.mrf.mxu1  ;;  %2829 = vperm.xlu0 %4490, %v2743_v11   ;;  %v4511_v11 = vld [vmem:[%s6484_s3] ss:$8 sps:$4 sm:$0xff]  }
 0x112   : > { %v5128_v25 = vpack.c.bf16 %v876_v21, %v875_v20  ;;  %v926_v26 = vpack.c.bf16 %v890_v22, %v889_v15  ;;  %v2774_v15 = vld [vmem:[%s6491_s10 + $0x148] sm:$0xff]  ;;  %v2771_v20 = vld [vmem:[%s6491_s10 + $0x130] sm:$0xff]  ;;  %v2756_v24 = vld [vmem:[%s6491_s10 + $0xb8] sm:$0xff] }
 0x113   : > { %v5130_v27 = vpop.f32.mrf.mxu0  ;;  %v852_v28 = vpop.f32.mrf.mxu1  ;;  %2984 = vperm.xlu1 %4491, %v2774_v15   ;;  %v4516_v15 = vld [vmem:[%s6484_s3 + $0x10] ss:$8 sps:$4 sm:$0xff]  }
 0x114   : > { %1196 = vmatpush1.bf16.msra.mxu1 %v926_v26  ;;  %v891_v34 = vmax.f32 %v852_v28, 0.0  ;;  %v2741_v26 = vld [vmem:[%s6491_s10 + $0x40] sm:$0xff]  ;;  %v877_v1 = vmax.f32 %v5130_v27, 0.0  ;;  %v2738_v27 = vld [vmem:[%s6491_s10 + $0x28] sm:$0xff] }
 0x115   : > { %v4350_v31 = vpop.f32.mrf.mxu0  ;;  %v4378_v32 = vpop.f32.mrf.mxu1  ;;  %1197 = vmatprep.subr.bf16.mxu1 %v4798_v36  ;;  %2889 = vperm.xlu0 %4490, %v2755_v17   ;;  %v4517_v17 = vld [vmem:[%s6484_s3 + $0x24] ss:$8 sps:$4 sm:$0xff]  }
 0x117   : > { %v5145_v37 = vpop.f32.mrf.mxu0  ;;  %v855_v38 = vpop.f32.mrf.mxu1  ;;  %2834 = vperm.xlu1 %4491, %v2744_v19   ;;  %v3842_v19 = vld [vmem:[%s6493_s12] sm:$0xff] }
 0x118   : > { %v892_v39 = vmax.f32 %v855_v38, 0.0 }
 0x119   : > { %v4351_v40 = vpop.f32.mrf.mxu0  ;;  %v4379_v41 = vpop.f32.mrf.mxu1  ;;  %2969 = vperm.xlu0 %4490, %v2771_v20   ;;  %v2762_v20 = vld [vmem:[%s6491_s10 + $0xe8] sm:$0xff] }
 0x11a   : > { %v5147_v42 = vpack.c.bf16 %v892_v39, %v891_v34  ;;  %v2769_v40 = vld [vmem:[%s6491_s10 + $0x120] sm:$0xff] }
 0x11b   : > { %v5149_v43 = vpop.f32.mrf.mxu0  ;;  %v860_v44 = vpop.f32.mrf.mxu1  ;;  %2894 = vperm.xlu1 %4491, %v2756_v24   ;;  %v4523_v24 = vld [vmem:[%s6484_s3 + $0x44] ss:$8 sps:$4 sm:$0xff]  }
 0x11c   : > { %v893_v50 = vmax.f32 %v860_v44, 0.0  ;;  %v2754_v44 = vld [vmem:[%s6491_s10 + $0xa8] sm:$0xff] }
 0x11d   : > { %v4354_v47 = vpop.f32.mrf.mxu0  ;;  %v4382_v48 = vpop.f32.mrf.mxu1  ;;  %2819 = vperm.xlu0 %4490, %v2741_v26   ;;  %v4525_v26 = vld [vmem:[%s6484_s3 + $0x40] ss:$8 sps:$4 sm:$0xff]  }
 0x11e   : > { %v2739_v47 = vld [vmem:[%s6491_s10 + $0x30] sm:$0xff] }
 0x11f   : > { %v5163_v52 = vpop.f32.mrf.mxu0  ;;  %v863_v53 = vpop.f32.mrf.mxu1  ;;  %2974 = vperm.xlu1 %4491, %v2772_v29   ;;  %v4528_v29 = vld [vmem:[%s6484_s3 + $0x50] ss:$8 sps:$4 sm:$0xff]  }
 0x120   : > { %v894_v54 = vmax.f32 %v863_v53, 0.0  ;;  %v2751_v53 = vld [vmem:[%s6491_s10 + $0x90] sm:$0xff] }
 0x121   : > { %v4355_v55 = vpop.f32.mrf.mxu0  ;;  %v4383_v56 = vpop.f32.mrf.mxu1  ;;  %2879 = vperm.xlu0 %4490, %v2753_v30   ;;  %v4529_v30 = vld [vmem:[%s6484_s3 + $0x64] ss:$8 sps:$4 sm:$0xff]  }
 0x122   : > { %v5165_v57 = vpack.c.bf16 %v894_v54, %v893_v50  ;;  %v2740_v55 = vld [vmem:[%s6491_s10 + $0x38] sm:$0xff]  ;;  %v880_v56 = vmax.f32 %v5163_v52, 0.0  ;;  %v2737_v52 = vld [vmem:[%s6491_s10 + $0x20] sm:$0xff] }
 0x123   : > { %v5167_v58 = vpop.f32.mrf.mxu0  ;;  %v5169_v59 = vpop.f32.mrf.mxu1  ;;  %2824 = vperm.xlu1 %4491, %v2742_v35   ;;  %v4537_v35 = vld [vmem:[%s6484_s3 + $0x80] ss:$8 sps:$4 sm:$0xff]  }
 0x124   : > { %v881_v54 = vmax.f32 %v5167_v58, 0.0  ;;  %v2752_v58 = vld [vmem:[%s6491_s10 + $0x98] sm:$0xff] }
 0x125   : > { %v4358_v62 = vpop.f32.mrf.mxu0  ;;  %v4386_v63 = vpop.f32.mrf.mxu1  ;;  %2959 = vperm.xlu0 %4490, %v2769_v40   ;;  %v4541_v40 = vld [vmem:[%s6484_s3 + $0xa4] ss:$8 sps:$4 sm:$0xff]  }
 0x126   : > { %v879_v62 = vmax.f32 %v5149_v43, 0.0  ;;  %v878_v63 = vmax.f32 %v5145_v37, 0.0  ;;  %v2768_v43 = vld [vmem:[%s6491_s10 + $0x118] sm:$0xff]  ;;  %v2749_v37 = vld [vmem:[%s6491_s10 + $0x80] sm:$0xff] }
 0x127   : > { %v5183_v2 = vpop.f32.mrf.mxu0  ;;  %v5185_v3 = vpop.f32.mrf.mxu1  ;;  %2884 = vperm.xlu1 %4491, %v2754_v44  }
 0x128   : > { %v882_v50 = vmax.f32 %v5183_v2, 0.0  ;;  %v921_v0 = vpack.c.bf16 %v880_v56, %v879_v62  ;;  %v920_v2 = vpack.c.bf16 %v878_v63, %v877_v1  ;;  %v5398_v44 = vpop.permute.xlu0 %1014 }
 0x129   : > { %v4359_v4 = vpop.f32.mrf.mxu0  ;;  %v4387_v5 = vpop.f32.mrf.mxu1  ;;  %2809 = vperm.xlu0 %4490, %v2739_v47  }
 0x12a   : > { %v922_v60 = vpack.c.bf16 %v882_v50, %v881_v54  ;;  %v895_v4 = vmax.f32 %v5169_v59, 0.0  ;;  %v896_v5 = vmax.f32 %v5185_v3, 0.0  ;;  %v2735_v59 = vld [vmem:[%s6491_s10 + $0x10] sm:$0xff] }
 0x12b   : > { %v820_v6 = vpop.f32.mrf.mxu0  ;;  %2964 = vperm.xlu1 %4491, %v2770_v49   ;;  %v2747_v3 = vld [vmem:[%s6491_s10 + $0x70] sm:$0xff] }
 0x12c   : > { %v883_v48 = vmax.f32 %v820_v6, 0.0  ;;  %v2765_v6 = vld [vmem:[%s6491_s10 + $0x100] sm:$0xff]  ;;  %v929_v8 = vpack.c.bf16 %v896_v5, %v895_v4 }
 0x12d   : > { %v4362_v9 = vpop.f32.mrf.mxu0  ;;  %2869 = vperm.xlu0 %4490, %v2751_v53  }
 0x12e   : > { %v2736_v9 = vld [vmem:[%s6491_s10 + $0x18] sm:$0xff] }
 0x12f   : > { %v823_v12 = vpop.f32.mrf.mxu0  ;;  %2814 = vperm.xlu1 %4491, %v2740_v55  }
 0x130   : > { %v884_v45 = vmax.f32 %v823_v12, 0.0  ;;  %v2748_v12 = vld [vmem:[%s6491_s10 + $0x78] sm:$0xff] }
 0x131   : > { %v4363_v13 = vpop.f32.mrf.mxu0  ;;  %2949 = vperm.xlu0 %4490, %v2767_v61  }
 0x132   : > { %v923_v51 = vpack.c.bf16 %v884_v45, %v883_v48  ;;  %v2733_v13 = vld [vmem:[%s6491_s10] sm:$0xff]  ;;  %v5400_v45 = vpop.permute.xlu0 %1019 }
 0x133   : > { %v828_v14 = vpop.f32.mrf.mxu0  ;;  %2874 = vperm.xlu1 %4491, %v2752_v58  }
 0x134   : > { %v885_v41 = vmax.f32 %v828_v14, 0.0  ;;  %v2761_v14 = vld [vmem:[%s6491_s10 + $0xe0] sm:$0xff] }
 0x135   : > { %v4366_v18 = vpop.f32.mrf.mxu0  ;;  %2799 = vperm.xlu0 %4490, %v2737_v52  }
 0x136   : > { %v2734_v18 = vld [vmem:[%s6491_s10 + $0x8] sm:$0xff]  ;;  %v5404_v47 = vpop.permute.xlu0 %1004 }
 0x137   : > { %v831_v21 = vpop.f32.mrf.mxu0  ;;  %2954 = vperm.xlu1 %4491, %v2768_v43  }
 0x138   : > { %v886_v38 = vmax.f32 %v831_v21, 0.0  ;;  %v4519_v21 = vld [vmem:[%s6484_s3 + $0x20] ss:$8 sps:$4 sm:$0xff]  }
 0x139   : > { %v4367_v22 = vpop.f32.mrf.mxu0  ;;  %2859 = vperm.xlu0 %4490, %v2749_v37  }
 0x13a   : > { %v924_v46 = vpack.c.bf16 %v886_v38, %v885_v41  ;;  %v4520_v22 = vld [vmem:[%s6484_s3 + $0x34] ss:$8 sps:$4 sm:$0xff]   ;;  %v4543_v41 = vld [vmem:[%s6484_s3 + $0xa0] ss:$8 sps:$4 sm:$0xff]   ;;  %v5408_v49 = vpop.permute.xlu0 %1044 }
 0x13b   : > { %v836_v23 = vpop.f32.mrf.mxu0  ;;  %2804 = vperm.xlu1 %4491, %v2738_v27   ;;  %v4538_v38 = vld [vmem:[%s6484_s3 + $0x94] ss:$8 sps:$4 sm:$0xff]  }
 0x13c   : > { %v887_v32 = vmax.f32 %v836_v23, 0.0  ;;  %v4522_v23 = vld [vmem:[%s6484_s3 + $0x30] ss:$8 sps:$4 sm:$0xff]  }
 0x13d   : > { %v4370_v28 = vpop.f32.mrf.mxu0  ;;  %2939 = vperm.xlu0 %4490, %v2765_v6  }
 0x13e   : > { %v4526_v28 = vld [vmem:[%s6484_s3 + $0x54] ss:$8 sps:$4 sm:$0xff]  }
 0x13f   : > { %v839_v31 = vpop.f32.mrf.mxu0  ;;  %2864 = vperm.xlu1 %4491, %v2750_v7  }
 0x140   : > { %v888_v33 = vmax.f32 %v839_v31, 0.0  ;;  %v4531_v31 = vld [vmem:[%s6484_s3 + $0x60] ss:$8 sps:$4 sm:$0xff]  }
 0x141   : > { %v4371_v34 = vpop.f32.mrf.mxu0  ;;  %2789 = vperm.xlu0 %4490, %v2735_v59  }
 0x142   : > { %v925_v39 = vpack.c.bf16 %v888_v33, %v887_v32  ;;  %v4532_v32 = vld [vmem:[%s6484_s3 + $0x74] ss:$8 sps:$4 sm:$0xff]   ;;  %v4534_v33 = vld [vmem:[%s6484_s3 + $0x70] ss:$8 sps:$4 sm:$0xff]   ;;  %v4535_v34 = vld [vmem:[%s6484_s3 + $0x84] ss:$8 sps:$4 sm:$0xff]  }
 0x144   : > { %1198 = vmatpush1.bf16.msra.mxu1 %v925_v39  ;;  %v4540_v39 = vld [vmem:[%s6484_s3 + $0x90] ss:$8 sps:$4 sm:$0xff]  }
 0x145   : > { %1199 = vmatprep.subr.bf16.mxu1 %v4798_v36  ;;  %2849 = vperm.xlu0 %4490, %v2747_v3  }
 0x148   : > { %1200 = vmatpush1.bf16.msra.mxu1 %v924_v46  ;;  %v5402_v46 = vpop.permute.xlu1 %1054 }
 0x149   : > { %1201 = vmatprep.subr.bf16.mxu1 %v4798_v36  ;;  %2929 = vperm.xlu0 %4490, %v2763_v10  }
 0x14c   : > { %1202 = vmatpush1.bf16.msra.mxu1 %v923_v51  ;;  %v5406_v48 = vpop.permute.xlu1 %1059  ;;  %v5412_v51 = vpop.permute.xlu0 %994 }
 0x14d   : > { %1203 = vmatprep.subr.bf16.mxu1 %v4798_v36  ;;  %2779 = vperm.xlu0 %4490, %v2733_v13  }
 0x150   : > { %1204 = vmatpush1.bf16.msra.mxu1 %v922_v60  ;;  %v5410_v50 = vpop.permute.xlu1 %1009  ;;  %v5416_v54 = vpop.permute.xlu0 %1034 }
 0x151   : > { %1205 = vmatprep.subr.bf16.mxu1 %v4798_v36  ;;  %2919 = vperm.xlu0 %4490, %v2761_v14  }
 0x154   : > { %1206 = vmatpush1.bf16.msra.mxu1 %v921_v0  ;;  %v5414_v53 = vpop.permute.xlu1 %1049  ;;  %v5420_v56 = vpop.permute.xlu0 %989 }
 0x155   : > { %1207 = vmatprep.subr.bf16.mxu1 %v4798_v36  ;;  %3845 = vperm.xlu0 %4490, %v3842_v19  }
 0x158   : > { %1208 = vmatpush1.bf16.msra.mxu1 %v920_v2  ;;  %v5418_v55 = vpop.permute.xlu1 %999  ;;  %v5424_v61 = vpop.permute.xlu0 %1024 }
 0x159   : > { %1209 = vmatprep.subr.bf16.mxu1 %v4798_v36 }
 0x15c   : > { %1210 = vmatpush1.bf16.msra.mxu1 %v5128_v25  ;;  %v2766_v25 = vld [vmem:[%s6491_s10 + $0x108] sm:$0xff]  ;;  %v5422_v60 = vpop.permute.xlu1 %1039  ;;  %v985_v58 = vpop.permute.xlu0 %984 }
 0x15d   : > { %1221 = vmatprep.subr.bf16.mxu1 %v4798_v36  ;;  %2944 = vperm.xlu1 %4491, %v2766_v25  }
 0x160   : > { %1222 = vmatpush2.bf16.msra.mxu1 %v929_v8  ;;  %v5426_v62 = vpop.permute.xlu1 %1029  ;;  %v975_v52 = vpop.permute.xlu0 %974 }
 0x161   : > { %1223 = vmatprep.subr.bf16.mxu1 %v4798_v36  ;;  %2794 = vperm.xlu1 %4491, %v2736_v9   ;;  %v4546_v9 = vld [vmem:[%s6486_s5 + $0x4] ss:$8 sps:$4 sm:$0xff]  }
 0x162   : > { %4057 = vmatprep.mubr.msk.bf16.mxu0 %vm1452_vm2, %v4546_v9 }
 0x164   : > { %1224 = vmatpush2.bf16.msra.mxu1 %v5165_v57  ;;  %v4514_v57 = vld [vmem:[%s6484_s3 + $0x14] ss:$8 sps:$4 sm:$0xff]   ;;  %v980_v63 = vpop.permute.xlu1 %979  ;;  %v965_v27 = vpop.permute.xlu0 %964 }
 0x165   : > { %1225 = vmatprep.subr.bf16.mxu1 %v4798_v36  ;;  %2854 = vperm.xlu1 %4491, %v2748_v12  }
 0x168   : > { %1226 = vmatpush2.bf16.msra.mxu1 %v5147_v42  ;;  %v2764_v42 = vld [vmem:[%s6491_s10 + $0xf8] sm:$0xff]  ;;  %v970_v1 = vpop.permute.xlu1 %969 }
 0x169   : > { %1926 = vmatprep.subr.bf16.mxu1 %v4798_v36  ;;  %2934 = vperm.xlu1 %4491, %v2764_v42  }
 0x16b   : > { %1228 = vmatmul.mubr.bf16.vlgmr.msra.gmra.mxu1 %v4511_v11 }
 0x16c   : > { %4025 = vmatprep.mubr.msk.bf16.mxu1 %vm1161_vm1, %v4514_v57  ;;  %v960_v4 = vpop.permute.xlu1 %959 }
 0x16d   : > { %2784 = vperm.xlu1 %4491, %v2734_v18  }
 0x171   : > { %2924 = vperm.xlu1 %4491, %v2762_v20  }
 0x173   : > { %1236 = vmatmul.mubr.bf16.gmra.mxu1 %v4516_v15 }
 0x174   : > { %4026 = vmatprep.mubr.msk.bf16.mxu1 %vm1161_vm1, %v4517_v17 }
 0x17b   : > { %1244 = vmatmul.mubr.bf16.gmra.mxu1 %v4519_v21 }
 0x17c   : > { %4027 = vmatprep.mubr.msk.bf16.mxu1 %vm1161_vm1, %v4520_v22 }
 0x183   : > { %1252 = vmatmul.mubr.bf16.gmra.mxu1 %v4522_v23 }
 0x184   : > { %4028 = vmatprep.mubr.msk.bf16.mxu1 %vm1161_vm1, %v4523_v24 }
 0x18b   : > { %1260 = vmatmul.mubr.bf16.gmra.mxu1 %v4525_v26 }
 0x18c   : > { %4029 = vmatprep.mubr.msk.bf16.mxu1 %vm1161_vm1, %v4526_v28 }
 0x193   : > { %1268 = vmatmul.mubr.bf16.gmra.mxu1 %v4528_v29 }
 0x194   : > { %4030 = vmatprep.mubr.msk.bf16.mxu1 %vm1161_vm1, %v4529_v30 }
 0x19b   : > { %1276 = vmatmul.mubr.bf16.gmra.mxu1 %v4531_v31 }
 0x19c   : > { %4031 = vmatprep.mubr.msk.bf16.mxu1 %vm1161_vm1, %v4532_v32 }
 0x1a3   : > { %1284 = vmatmul.mubr.bf16.gmra.mxu1 %v4534_v33 }
 0x1a4   : > { %4032 = vmatprep.mubr.msk.bf16.mxu1 %vm1161_vm1, %v4535_v34 }
 0x1ab   : > { %1292 = vmatmul.mubr.bf16.gmra.mxu1 %v4537_v35 }
 0x1ac   : > { %4033 = vmatprep.mubr.msk.bf16.mxu1 %vm1161_vm1, %v4538_v38 }
 0x1b3   : > { %1300 = vmatmul.mubr.bf16.gmra.mxu1 %v4540_v39 }
 0x1b4   : > { %4034 = vmatprep.mubr.msk.bf16.mxu1 %vm1161_vm1, %v4541_v40 }
 0x1bb   : > { %1308 = vmatmul.mubr.bf16.gmra.mxu1 %v4543_v41 }
 0x22b   : > { %v5428_v0 = vpop.f32.mrf.mxu1 }
 0x22d   : > { %v1231_v43 = vpop.f32.mrf.mxu1 }
 0x22f   : > { %v1232_v2 = vpop.f32.mrf.mxu1 }
 0x230   : > { %v5430_v6 = vadd.f32 %v1232_v2, %v960_v4 }
 0x231   : > { %v1234_v37 = vpop.f32.mrf.mxu1 }
 0x233   : > { %v1237_v5 = vpop.f32.mrf.mxu1 }
 0x234   : > { %v5432_v7 = vadd.f32 %v1237_v5, %v965_v27 }
 0x235   : > { %v1239_v8 = vpop.f32.mrf.mxu1 }
 0x236   : > { %v1324_v59 = vpack.c.bf16 %v5432_v7, %v5430_v6  ;;  %v5497_v6 = vld [vmem:[%s4929_s24 + $0x18] sm:$0xff]   ;;  %v5502_v7 = vld [vmem:[%s4929_s24 + $0x10] sm:$0xff]  }
 0x237   : > { %v1240_v25 = vpop.f32.mrf.mxu1 }
 0x238   : > { %v5439_v11 = vadd.f32 %v1240_v25, %v970_v1 }
 0x239   : > { %v1242_v3 = vpop.f32.mrf.mxu1 }
 0x23b   : > { %v1245_v10 = vpop.f32.mrf.mxu1 }
 0x23c   : > { %v5441_v57 = vadd.f32 %v1245_v10, %v975_v52 }
 0x23d   : > { %v1247_v12 = vpop.f32.mrf.mxu1 }
 0x23e   : > { %v1325_v13 = vpack.c.bf16 %v5441_v57, %v5439_v11  ;;  %v4544_v11 = vld [vmem:[%s6486_s5] ss:$8 sps:$4 sm:$0xff]  }
 0x23f   : > { %v1248_v42 = vpop.f32.mrf.mxu1  ;;  %v5515_v57 = vld [vmem:[%s4929_s24] sm:$0xff]  }
 0x240   : > { %v5446_v17 = vadd.f32 %v1248_v42, %v980_v63 }
 0x241   : > { %v1250_v14 = vpop.f32.mrf.mxu1 }
 0x243   : > { %v1253_v15 = vpop.f32.mrf.mxu1 }
 0x244   : > { %v5448_v18 = vadd.f32 %v1253_v15, %v985_v58 }
 0x245   : > { %v1255_v19 = vpop.f32.mrf.mxu1 }
 0x246   : > { %v1326_v20 = vpack.c.bf16 %v5448_v18, %v5446_v17  ;;  %v4549_v17 = vld [vmem:[%s6486_s5 + $0x10] ss:$8 sps:$4 sm:$0xff]   ;;  %v4550_v18 = vld [vmem:[%s6486_s5 + $0x24] ss:$8 sps:$4 sm:$0xff]  }
 0x247   : > { %v1256_v21 = vpop.f32.mrf.mxu1 }
 0x249   : > { %v1258_v22 = vpop.f32.mrf.mxu1 }
 0x24b   : > { %v1261_v23 = vpop.f32.mrf.mxu1 }
 0x24d   : > { %v1263_v24 = vpop.f32.mrf.mxu1 }
 0x24f   : > { %v1264_v26 = vpop.f32.mrf.mxu1 }
 0x251   : > { %v1266_v28 = vpop.f32.mrf.mxu1 }
 0x253   : > { %v1269_v29 = vpop.f32.mrf.mxu1 }
 0x254   : > { %v1270_v28 = vadd.f32 %v1269_v29, %v5404_v47  ;;  %v1257_v47 = vadd.f32 %v1256_v21, %v5420_v56  ;;  %v4553_v21 = vld [vmem:[%s6486_s5 + $0x34] ss:$8 sps:$4 sm:$0xff]  }
 0x255   : > { %v1271_v30 = vpop.f32.mrf.mxu1 }
 0x257   : > { %v1272_v31 = vpop.f32.mrf.mxu1 }
 0x258   : > { %v1273_v15 = vadd.f32 %v1272_v31, %v5410_v50 }
 0x259   : > { %v1274_v32 = vpop.f32.mrf.mxu1 }
 0x25b   : > { %v1277_v33 = vpop.f32.mrf.mxu1 }
 0x25c   : > { %v1278_v9 = vadd.f32 %v1277_v33, %v5398_v44  ;;  %v1265_v44 = vadd.f32 %v1264_v26, %v5418_v55  ;;  %v4556_v33 = vld [vmem:[%s6486_s5 + $0x44] ss:$8 sps:$4 sm:$0xff]  }
 0x25d   : > { %v1279_v34 = vpop.f32.mrf.mxu1 }
 0x25e   : > { %v4558_v34 = vld [vmem:[%s6486_s5 + $0x40] ss:$8 sps:$4 sm:$0xff]  }
 0x25f   : > { %v1280_v35 = vpop.f32.mrf.mxu1 }
 0x260   : > { %v1281_v10 = vadd.f32 %v1280_v35, %v5400_v45  ;;  %v4559_v35 = vld [vmem:[%s6486_s5 + $0x54] ss:$8 sps:$4 sm:$0xff]  }
 0x261   : > { %v1282_v38 = vpop.f32.mrf.mxu1 }
 0x262   : > { %v4561_v38 = vld [vmem:[%s6486_s5 + $0x50] ss:$8 sps:$4 sm:$0xff]  }
 0x263   : > { %v1285_v39 = vpop.f32.mrf.mxu1 }
 0x265   : > { %v1287_v40 = vpop.f32.mrf.mxu1 }
 0x266   : > { %v4564_v40 = vld [vmem:[%s6486_s5 + $0x60] ss:$8 sps:$4 sm:$0xff]  }
 0x267   : > { %v1288_v41 = vpop.f32.mrf.mxu1 }
 0x269   : > { %v1290_v58 = vpop.f32.mrf.mxu1 }
 0x26a   : > { %v4567_v58 = vld [vmem:[%s6486_s5 + $0x70] ss:$8 sps:$4 sm:$0xff]  }
 0x26b   : > { %v1293_v63 = vpop.f32.mrf.mxu1 }
 0x26c   : > { %v1294_v45 = vadd.f32 %v1293_v63, %v5416_v54  ;;  %v1286_v54 = vadd.f32 %v1285_v39, %v5424_v61  ;;  %v4562_v39 = vld [vmem:[%s6486_s5 + $0x64] ss:$8 sps:$4 sm:$0xff]  }
 0x26d   : > { %v1295_v52 = vpop.f32.mrf.mxu1  ;;  %v4568_v63 = vld [vmem:[%s6486_s5 + $0x84] ss:$8 sps:$4 sm:$0xff]  }
 0x26e   : > { %v4570_v52 = vld [vmem:[%s6486_s5 + $0x80] ss:$8 sps:$4 sm:$0xff]  }
 0x26f   : > { %v1296_v1 = vpop.f32.mrf.mxu1 }
 0x271   : > { %v1298_v43 = vpop.f32.mrf.mxu1 }
 0x272   : > { %v4573_v43 = vld [vmem:[%s6486_s5 + $0x90] ss:$8 sps:$4 sm:$0xff]  }
 0x273   : > { %v1301_v2 = vpop.f32.mrf.mxu1 }
 0x274   : > { %v1302_v19 = vadd.f32 %v1301_v2, %v5408_v49  ;;  %v1289_v49 = vadd.f32 %v1288_v41, %v5426_v62  ;;  %v5487_v62 = vld [vmem:[%s4929_s24 + $0x28] sm:$0xff]  }
 0x275   : > { %v1303_v37 = vpop.f32.mrf.mxu1  ;;  %v4565_v41 = vld [vmem:[%s6486_s5 + $0x74] ss:$8 sps:$4 sm:$0xff]   ;;  %v4574_v2 = vld [vmem:[%s6486_s5 + $0xa4] ss:$8 sps:$4 sm:$0xff]  }
 0x276   : > { %v4576_v37 = vld [vmem:[%s6486_s5 + $0xa0] ss:$8 sps:$4 sm:$0xff]  }
 0x277   : > { %v1304_v27 = vpop.f32.mrf.mxu1 }
 0x278   : > { %v1305_v12 = vadd.f32 %v1304_v27, %v5414_v53  ;;  %v1319_v53 = vmax.f32 %v1270_v28, %v1302_v19  ;;  %v4579_v27 = vld [vmem:[%s6487_s6 + $0x4] ss:$8 sps:$4 sm:$0xff]  }
 0x279   : > { %v1306_v4 = vpop.f32.mrf.mxu1  ;;  %4090 = vmatprep.mubr.msk.bf16.mxu1 %vm1161_vm1, %v4579_v27 }
 0x27a   : > { %v1320_v30 = vmax.f32 %v1273_v15, %v1305_v12 }
 0x27b   : > { %v1309_v5 = vpop.f32.mrf.mxu1 }
 0x27c   : > { %v1310_v25 = vadd.f32 %v1309_v5, %v5402_v46  ;;  %v1297_v46 = vadd.f32 %v1296_v1, %v5422_v60  ;;  %v1329_v31 = vpack.c.bf16 %v1320_v30, %v1319_v53  ;;  %v1316_v60 = vmax.f32 %v1257_v47, %v1289_v49  ;;  %v4571_v1 = vld [vmem:[%s6486_s5 + $0x94] ss:$8 sps:$4 sm:$0xff]  }
 0x27d   : > { %v1311_v8 = vpop.f32.mrf.mxu1 }
 0x27e   : > { %v1321_v22 = vmax.f32 %v1278_v9, %v1310_v25  ;;  %v1318_v50 = vmax.f32 %v1265_v44, %v1297_v46  ;;  %v1327_v26 = vpack.c.bf16 %v1316_v60, %v1286_v54 }
 0x27f   : > { %v1312_v3 = vpop.f32.mrf.mxu1 }
 0x280   : > { %v1313_v42 = vadd.f32 %v1312_v3, %v5406_v48  ;;  %v1262_v48 = vadd.f32 %v1261_v23, %v5412_v51  ;;  %v955_v51 = vpop.permute.xlu1 %954  ;;  %v4555_v23 = vld [vmem:[%s6486_s5 + $0x30] ss:$8 sps:$4 sm:$0xff]  }
 0x281   : > { %v1314_v14 = vpop.f32.mrf.mxu1  ;;  %v1230_v56 = vadd.f32 %v5428_v0, %v955_v51  ;;  %v5492_v0 = vld [vmem:[%s4929_s24 + $0x20] sm:$0xff]  }
 0x282   : > { %v1322_v24 = vmax.f32 %v1281_v10, %v1313_v42  ;;  %v1317_v29 = vmax.f32 %v1262_v48, %v1294_v45 }
 0x283   : > { %v1323_v61 = vpack.c.bf16 %v1230_v56, %v4796_v16 }
 0x284   : > { %v1330_v32 = vpack.c.bf16 %v1322_v24, %v1321_v22  ;;  %v1328_v55 = vpack.c.bf16 %v1318_v50, %v1317_v29 }
 0x286   : > { %1487 = vmatpush1.bf16.msra.mxu0 %v1330_v32 }
 0x287   : > { %1488 = vmatprep.subr.bf16.mxu0 %v4798_v36 }
 0x28a   : > { %1489 = vmatpush1.bf16.msra.mxu0 %v1329_v31 }
 0x28b   : > { %1490 = vmatprep.subr.bf16.mxu0 %v4798_v36 }
 0x28e   : > { %1491 = vmatpush1.bf16.msra.mxu0 %v1328_v55 }
 0x28f   : > { %1492 = vmatprep.subr.bf16.mxu0 %v4798_v36 }
 0x292   : > { %1493 = vmatpush1.bf16.msra.mxu0 %v1327_v26 }
 0x293   : > { %1494 = vmatprep.subr.bf16.mxu0 %v4798_v36 }
 0x296   : > { %1495 = vmatpush1.bf16.msra.mxu0 %v1326_v20  ;;  %v4552_v20 = vld [vmem:[%s6486_s5 + $0x20] ss:$8 sps:$4 sm:$0xff]  }
 0x297   : > { %1496 = vmatprep.subr.bf16.mxu0 %v4798_v36 }
 0x29a   : > { %1497 = vmatpush1.bf16.msra.mxu0 %v1325_v13  ;;  %v4547_v13 = vld [vmem:[%s6486_s5 + $0x14] ss:$8 sps:$4 sm:$0xff]  }
 0x29b   : > { %1498 = vmatprep.subr.bf16.mxu0 %v4798_v36 }
 0x29e   : > { %1499 = vmatpush1.bf16.msra.mxu0 %v1324_v59  ;;  %v5507_v59 = vld [vmem:[%s4929_s24 + $0x8] sm:$0xff]   ;;  %s3982_s24 = sshll.u32 %s6559_s28, 3 }
 0x29f   : > { %1500 = vmatprep.subr.bf16.mxu0 %v4798_v36  ;;  %s600_s17 = scalar_lea.vmem %s6494_s13, %s3982_s24 }
 0x2a2   : > { %1501 = vmatpush1.bf16.msra.mxu0 %v1323_v61 }
 0x2a3   : > { %1506 = vmatprep.subr.bf16.mxu0 %v4798_v36 }
 0x2a6   : > { %1507 = vmatpush2.bf16.msra.mxu0 %v5487_v62 }
 0x2a7   : > { %1508 = vmatprep.subr.bf16.mxu0 %v4798_v36 }
 0x2aa   : > { %1509 = vmatpush2.bf16.msra.mxu0 %v5492_v0 }
 0x2ab   : > { %1510 = vmatprep.subr.bf16.mxu0 %v4798_v36 }
 0x2ae   : > { %1511 = vmatpush2.bf16.msra.mxu0 %v5497_v6 }
 0x2af   : > { %1512 = vmatprep.subr.bf16.mxu0 %v4798_v36 }
 0x2b2   : > { %1513 = vmatpush2.bf16.msra.mxu0 %v5502_v7 }
 0x2b3   : > { %1514 = vmatprep.subr.bf16.mxu0 %v4798_v36 }
 0x2b6   : > { %1515 = vmatpush2.bf16.msra.mxu0 %v5507_v59 }
 0x2b7   : > { %1516 = vmatprep.subr.bf16.mxu0 %v4798_v36 }
 0x2ba   : > { %1517 = vmatpush2.bf16.msra.mxu0 %v5515_v57 }
 0x2bb   : > { %2370 = vmatprep.subr.bf16.mxu0 %v4798_v36 }
 0x2bd   : > { %1519 = vmatmul.mubr.bf16.vlgmr.msra.gmra.mxu0 %v4544_v11 }
 0x2be   : > { %4058 = vmatprep.mubr.msk.bf16.mxu0 %vm1452_vm2, %v4547_v13 }
 0x2c5   : > { %1527 = vmatmul.mubr.bf16.gmra.mxu0 %v4549_v17 }
 0x2c6   : > { %4059 = vmatprep.mubr.msk.bf16.mxu0 %vm1452_vm2, %v4550_v18 }
 0x2cd   : > { %1535 = vmatmul.mubr.bf16.gmra.mxu0 %v4552_v20 }
 0x2ce   : > { %4060 = vmatprep.mubr.msk.bf16.mxu0 %vm1452_vm2, %v4553_v21 }
 0x2d5   : > { %1543 = vmatmul.mubr.bf16.gmra.mxu0 %v4555_v23 }
 0x2d6   : > { %4061 = vmatprep.mubr.msk.bf16.mxu0 %vm1452_vm2, %v4556_v33 }
 0x2dd   : > { %1551 = vmatmul.mubr.bf16.gmra.mxu0 %v4558_v34 }
 0x2de   : > { %4062 = vmatprep.mubr.msk.bf16.mxu0 %vm1452_vm2, %v4559_v35 }
 0x2e5   : > { %1559 = vmatmul.mubr.bf16.gmra.mxu0 %v4561_v38 }
 0x2e6   : > { %4063 = vmatprep.mubr.msk.bf16.mxu0 %vm1452_vm2, %v4562_v39 }
 0x2ed   : > { %1567 = vmatmul.mubr.bf16.gmra.mxu0 %v4564_v40 }
 0x2ee   : > { %4064 = vmatprep.mubr.msk.bf16.mxu0 %vm1452_vm2, %v4565_v41 }
 0x2f5   : > { %1575 = vmatmul.mubr.bf16.gmra.mxu0 %v4567_v58 }
 0x2f6   : > { %4065 = vmatprep.mubr.msk.bf16.mxu0 %vm1452_vm2, %v4568_v63 }
 0x2fd   : > { %1583 = vmatmul.mubr.bf16.gmra.mxu0 %v4570_v52 }
 0x2fe   : > { %4066 = vmatprep.mubr.msk.bf16.mxu0 %vm1452_vm2, %v4571_v1 }
 0x305   : > { %1591 = vmatmul.mubr.bf16.gmra.mxu0 %v4573_v43 }
 0x306   : > { %4067 = vmatprep.mubr.msk.bf16.mxu0 %vm1452_vm2, %v4574_v2 }
 0x30d   : > { %1599 = vmatmul.mubr.bf16.gmra.mxu0 %v4576_v37 }
 0x37d   : > { %v1520_v4 = vpop.f32.mrf.mxu0 }
 0x37e   : > { %v1607_v25 = vmax.f32 %v1520_v4, 0.0 }
 0x37f   : > { %v1522_v5 = vpop.f32.mrf.mxu0 }
 0x381   : > { %v1523_v8 = vpop.f32.mrf.mxu0 }
 0x382   : > { %v1608_v3 = vmax.f32 %v1523_v8, 0.0 }
 0x383   : > { %v1525_v9 = vpop.f32.mrf.mxu0 }
 0x384   : > { %v5593_v10 = vpack.c.bf16 %v1608_v3, %v1607_v25 }
 0x385   : > { %v1528_v12 = vpop.f32.mrf.mxu0 }
 0x386   : > { %v1609_v15 = vmax.f32 %v1528_v12, 0.0 }
 0x387   : > { %v1530_v42 = vpop.f32.mrf.mxu0 }
 0x389   : > { %v1531_v14 = vpop.f32.mrf.mxu0 }
 0x38a   : > { %v1610_v19 = vmax.f32 %v1531_v14, 0.0 }
 0x38b   : > { %v1533_v22 = vpop.f32.mrf.mxu0 }
 0x38c   : > { %v5595_v24 = vpack.c.bf16 %v1610_v19, %v1609_v15 }
 0x38d   : > { %v1536_v28 = vpop.f32.mrf.mxu0 }
 0x38e   : > { %v1611_v42 = vmax.f32 %v1536_v28, 0.0 }
 0x38f   : > { %v1538_v46 = vpop.f32.mrf.mxu0 }
 0x391   : > { %v1539_v30 = vpop.f32.mrf.mxu0 }
 0x392   : > { %v1612_v3 = vmax.f32 %v1539_v30, 0.0 }
 0x393   : > { %v1541_v32 = vpop.f32.mrf.mxu0 }
 0x394   : > { %v1653_v15 = vpack.c.bf16 %v1612_v3, %v1611_v42 }
 0x395   : > { %v1544_v44 = vpop.f32.mrf.mxu0 }
 0x396   : > { %v1613_v8 = vmax.f32 %v1544_v44, 0.0 }
 0x397   : > { %v1546_v45 = vpop.f32.mrf.mxu0 }
 0x399   : > { %v1547_v53 = vpop.f32.mrf.mxu0 }
 0x39a   : > { %v1614_v27 = vmax.f32 %v1547_v53, 0.0 }
 0x39b   : > { %v1549_v48 = vpop.f32.mrf.mxu0 }
 0x39c   : > { %v1654_v9 = vpack.c.bf16 %v1614_v27, %v1613_v8 }
 0x39d   : > { %v1552_v49 = vpop.f32.mrf.mxu0 }
 0x39e   : > { %v1615_v2 = vmax.f32 %v1552_v49, 0.0  ;;  %v4577_v49 = vld [vmem:[%s6487_s6] ss:$8 sps:$4 sm:$0xff]  }
 0x39f   : > { %v1554_v50 = vpop.f32.mrf.mxu0 }
 0x3a0   : > { %v4582_v50 = vld [vmem:[%s6487_s6 + $0x10] ss:$8 sps:$4 sm:$0xff]  }
 0x3a1   : > { %v1555_v31 = vpop.f32.mrf.mxu0 }
 0x3a2   : > { %v1616_v52 = vmax.f32 %v1555_v31, 0.0  ;;  %v4583_v31 = vld [vmem:[%s6487_s6 + $0x24] ss:$8 sps:$4 sm:$0xff]  }
 0x3a3   : > { %v1557_v47 = vpop.f32.mrf.mxu0 }
 0x3a4   : > { %v1655_v4 = vpack.c.bf16 %v1616_v52, %v1615_v2  ;;  %v4585_v47 = vld [vmem:[%s6487_s6 + $0x20] ss:$8 sps:$4 sm:$0xff]  }
 0x3a5   : > { %v1560_v29 = vpop.f32.mrf.mxu0 }
 0x3a6   : > { %v1617_v58 = vmax.f32 %v1560_v29, 0.0  ;;  %v4586_v29 = vld [vmem:[%s6487_s6 + $0x34] ss:$8 sps:$4 sm:$0xff]  }
 0x3a7   : > { %v1562_v60 = vpop.f32.mrf.mxu0 }
 0x3a8   : > { %v4588_v60 = vld [vmem:[%s6487_s6 + $0x30] ss:$8 sps:$4 sm:$0xff]  }
 0x3a9   : > { %v1563_v55 = vpop.f32.mrf.mxu0 }
 0x3aa   : > { %v1618_v39 = vmax.f32 %v1563_v55, 0.0  ;;  %v4589_v55 = vld [vmem:[%s6487_s6 + $0x44] ss:$8 sps:$4 sm:$0xff]  }
 0x3ab   : > { %v1565_v54 = vpop.f32.mrf.mxu0 }
 0x3ac   : > { %v1656_v1 = vpack.c.bf16 %v1618_v39, %v1617_v58  ;;  %v4591_v54 = vld [vmem:[%s6487_s6 + $0x40] ss:$8 sps:$4 sm:$0xff]  }
 0x3ad   : > { %v1568_v26 = vpop.f32.mrf.mxu0 }
 0x3ae   : > { %v1619_v35 = vmax.f32 %v1568_v26, 0.0  ;;  %v4592_v26 = vld [vmem:[%s6487_s6 + $0x54] ss:$8 sps:$4 sm:$0xff]  }
 0x3af   : > { %v1570_v51 = vpop.f32.mrf.mxu0 }
 0x3b0   : > { %v4594_v51 = vld [vmem:[%s6487_s6 + $0x50] ss:$8 sps:$4 sm:$0xff]  }
 0x3b1   : > { %v1571_v56 = vpop.f32.mrf.mxu0 }
 0x3b2   : > { %v1620_v23 = vmax.f32 %v1571_v56, 0.0  ;;  %v4595_v56 = vld [vmem:[%s6487_s6 + $0x64] ss:$8 sps:$4 sm:$0xff]  }
 0x3b3   : > { %v1573_v61 = vpop.f32.mrf.mxu0 }
 0x3b4   : > { %v1657_v40 = vpack.c.bf16 %v1620_v23, %v1619_v35  ;;  %v4597_v61 = vld [vmem:[%s6487_s6 + $0x60] ss:$8 sps:$4 sm:$0xff]   ;;  %v4607_v23 = vld [vmem:[%s6487_s6 + $0xa4] ss:$8 sps:$4 sm:$0xff]  }
 0x3b5   : > { %v1576_v11 = vpop.f32.mrf.mxu0 }
 0x3b6   : > { %v1621_v18 = vmax.f32 %v1576_v11, 0.0  ;;  %v4598_v11 = vld [vmem:[%s6487_s6 + $0x74] ss:$8 sps:$4 sm:$0xff]  }
 0x3b7   : > { %v1578_v13 = vpop.f32.mrf.mxu0 }
 0x3b8   : > { %v4600_v13 = vld [vmem:[%s6487_s6 + $0x70] ss:$8 sps:$4 sm:$0xff]  }
 0x3b9   : > { %v1579_v17 = vpop.f32.mrf.mxu0 }
 0x3ba   : > { %v1622_v20 = vmax.f32 %v1579_v17, 0.0  ;;  %v4601_v17 = vld [vmem:[%s6487_s6 + $0x84] ss:$8 sps:$4 sm:$0xff]  }
 0x3bb   : > { %v1581_v21 = vpop.f32.mrf.mxu0 }
 0x3bc   : > { %v1658_v33 = vpack.c.bf16 %v1622_v20, %v1621_v18  ;;  %v4603_v18 = vld [vmem:[%s6487_s6 + $0x80] ss:$8 sps:$4 sm:$0xff]   ;;  %v4604_v20 = vld [vmem:[%s6487_s6 + $0x94] ss:$8 sps:$4 sm:$0xff]   ;;  %v4606_v21 = vld [vmem:[%s6487_s6 + $0x90] ss:$8 sps:$4 sm:$0xff]  }
 0x3bd   : > { %v1584_v34 = vpop.f32.mrf.mxu0 }
 0x3be   : > { %1927 = vmatpush1.bf16.msra.mxu1 %v1658_v33  ;;  %v1623_v45 = vmax.f32 %v1584_v34, 0.0  ;;  %v4609_v33 = vld [vmem:[%s6487_s6 + $0xa0] ss:$8 sps:$4 sm:$0xff]   ;;  %v5683_v34 = vpop.permute.xlu0 %1746 }
 0x3bf   : > { %v1586_v38 = vpop.f32.mrf.mxu0  ;;  %1928 = vmatprep.subr.bf16.mxu1 %v4798_v36 }
 0x3c0   : > { %v5687_v38 = vpop.permute.xlu1 %1751 }
 0x3c1   : > { %v1587_v41 = vpop.f32.mrf.mxu0 }
 0x3c2   : > { %1929 = vmatpush1.bf16.msra.mxu1 %v1657_v40  ;;  %v1624_v53 = vmax.f32 %v1587_v41, 0.0  ;;  %v5685_v35 = vpop.permute.xlu0 %1786 }
 0x3c3   : > { %v1589_v63 = vpop.f32.mrf.mxu0  ;;  %1930 = vmatprep.subr.bf16.mxu1 %v4798_v36 }
 0x3c4   : > { %v5691_v40 = vpop.permute.xlu1 %1791 }
 0x3c5   : > { %v1592_v43 = vpop.f32.mrf.mxu0 }
 0x3c6   : > { %1931 = vmatpush1.bf16.msra.mxu1 %v1656_v1  ;;  %v1625_v28 = vmax.f32 %v1592_v43, 0.0  ;;  %v5689_v39 = vpop.permute.xlu0 %1736 }
 0x3c7   : > { %v1594_v37 = vpop.f32.mrf.mxu0  ;;  %1932 = vmatprep.subr.bf16.mxu1 %v4798_v36 }
 0x3c8   : > { %v5695_v58 = vpop.permute.xlu1 %1741 }
 0x3c9   : > { %v1595_v5 = vpop.f32.mrf.mxu0 }
 0x3ca   : > { %1933 = vmatpush1.bf16.msra.mxu1 %v1655_v4  ;;  %v1626_v30 = vmax.f32 %v1595_v5, 0.0  ;;  %v5693_v41 = vpop.permute.xlu0 %1776 }
 0x3cb   : > { %v1597_v25 = vpop.f32.mrf.mxu0  ;;  %1934 = vmatprep.subr.bf16.mxu1 %v4798_v36 }
 0x3cc   : > { %v1660_v48 = vpack.c.bf16 %v1626_v30, %v1625_v28  ;;  %v5699_v52 = vpop.permute.xlu1 %1781 }
 0x3cd   : > { %v1600_v12 = vpop.f32.mrf.mxu0 }
 0x3ce   : > { %1935 = vmatpush1.bf16.msra.mxu1 %v1654_v9  ;;  %v1627_v46 = vmax.f32 %v1600_v12, 0.0  ;;  %v5697_v63 = vpop.permute.xlu0 %1726 }
 0x3cf   : > { %v1602_v14 = vpop.f32.mrf.mxu0  ;;  %1936 = vmatprep.subr.bf16.mxu1 %v4798_v36 }
 0x3d0   : > { %v5703_v43 = vpop.permute.xlu1 %1731 }
 0x3d1   : > { %v1603_v19 = vpop.f32.mrf.mxu0 }
 0x3d2   : > { %1937 = vmatpush1.bf16.msra.mxu1 %v1653_v15  ;;  %v1628_v32 = vmax.f32 %v1603_v19, 0.0  ;;  %v5701_v1 = vpop.permute.xlu0 %1766 }
 0x3d3   : > { %v1605_v22 = vpop.f32.mrf.mxu0  ;;  %1938 = vmatprep.subr.bf16.mxu1 %v4798_v36 }
 0x3d4   : > { %v1661_v44 = vpack.c.bf16 %v1628_v32, %v1627_v46  ;;  %v5707_v37 = vpop.permute.xlu1 %1771 }
 0x3d6   : > { %1939 = vmatpush1.bf16.msra.mxu1 %v5595_v24  ;;  %v1659_v24 = vpack.c.bf16 %v1624_v53, %v1623_v45  ;;  %v5705_v2 = vpop.permute.xlu0 %1721  ;;  %v4612_v53 = vld [vmem:[%s6489_s8 + $0x4] ss:$8 sps:$4 sm:$0xff]  }
 0x3d7   : > { %1940 = vmatprep.subr.bf16.mxu1 %v4798_v36  ;;  %4145 = vmatprep.mubr.msk.bf16.mxu0 %vm1452_vm2, %v4612_v53 }
 0x3d8   : > { %v5711_v4 = vpop.permute.xlu1 %1761 }
 0x3da   : > { %1941 = vmatpush1.bf16.msra.mxu1 %v5593_v10  ;;  %v4580_v10 = vld [vmem:[%s6487_s6 + $0x14] ss:$8 sps:$4 sm:$0xff]   ;;  %v5709_v27 = vpop.permute.xlu0 %1756 }
 0x3db   : > { %1952 = vmatprep.subr.bf16.mxu1 %v4798_v36 }
 0x3dc   : > { %v1712_v8 = vpop.permute.xlu1 %1711 }
 0x3de   : > { %1953 = vmatpush2.bf16.msra.mxu1 %v1661_v44  ;;  %v1717_v5 = vpop.permute.xlu0 %1716 }
 0x3df   : > { %1954 = vmatprep.subr.bf16.mxu1 %v4798_v36 }
 0x3e0   : > { %v1702_v9 = vpop.permute.xlu1 %1701 }
 0x3e2   : > { %1955 = vmatpush2.bf16.msra.mxu1 %v1660_v48  ;;  %v1707_v3 = vpop.permute.xlu0 %1706 }
 0x3e3   : > { %1956 = vmatprep.subr.bf16.mxu1 %v4798_v36 }
 0x3e4   : > { %v1692_v19 = vpop.permute.xlu1 %1691 }
 0x3e6   : > { %1957 = vmatpush2.bf16.msra.mxu1 %v1659_v24  ;;  %v1697_v15 = vpop.permute.xlu0 %1696 }
 0x3e7   : > { %3393 = vmatprep.subr.bf16.mxu1 %v4798_v36 }
 0x3e9   : > { %1959 = vmatmul.mubr.bf16.vlgmr.msra.gmra.mxu1 %v4577_v49 }
 0x3ea   : > { %4091 = vmatprep.mubr.msk.bf16.mxu1 %vm1161_vm1, %v4580_v10 }
 0x3f1   : > { %1967 = vmatmul.mubr.bf16.gmra.mxu1 %v4582_v50 }
 0x3f2   : > { %4092 = vmatprep.mubr.msk.bf16.mxu1 %vm1161_vm1, %v4583_v31 }
 0x3f9   : > { %1975 = vmatmul.mubr.bf16.gmra.mxu1 %v4585_v47 }
 0x3fa   : > { %4093 = vmatprep.mubr.msk.bf16.mxu1 %vm1161_vm1, %v4586_v29 }
 0x401   : > { %1983 = vmatmul.mubr.bf16.gmra.mxu1 %v4588_v60 }
 0x402   : > { %4094 = vmatprep.mubr.msk.bf16.mxu1 %vm1161_vm1, %v4589_v55 }
 0x409   : > { %1991 = vmatmul.mubr.bf16.gmra.mxu1 %v4591_v54 }
 0x40a   : > { %4095 = vmatprep.mubr.msk.bf16.mxu1 %vm1161_vm1, %v4592_v26 }
 0x411   : > { %1999 = vmatmul.mubr.bf16.gmra.mxu1 %v4594_v51 }
 0x412   : > { %4096 = vmatprep.mubr.msk.bf16.mxu1 %vm1161_vm1, %v4595_v56 }
 0x419   : > { %2007 = vmatmul.mubr.bf16.gmra.mxu1 %v4597_v61 }
 0x41a   : > { %4097 = vmatprep.mubr.msk.bf16.mxu1 %vm1161_vm1, %v4598_v11 }
 0x421   : > { %2015 = vmatmul.mubr.bf16.gmra.mxu1 %v4600_v13 }
 0x422   : > { %4098 = vmatprep.mubr.msk.bf16.mxu1 %vm1161_vm1, %v4601_v17 }
 0x429   : > { %2023 = vmatmul.mubr.bf16.gmra.mxu1 %v4603_v18 }
 0x42a   : > { %4099 = vmatprep.mubr.msk.bf16.mxu1 %vm1161_vm1, %v4604_v20 }
 0x431   : > { %2031 = vmatmul.mubr.bf16.gmra.mxu1 %v4606_v21 }
 0x432   : > { %4100 = vmatprep.mubr.msk.bf16.mxu1 %vm1161_vm1, %v4607_v23 }
 0x439   : > { %2039 = vmatmul.mubr.bf16.gmra.mxu1 %v4609_v33 }
 0x4a9   : > { %v5713_v25 = vpop.f32.mrf.mxu1 }
 0x4ab   : > { %v1962_v12 = vpop.f32.mrf.mxu1 }
 0x4ad   : > { %v1963_v42 = vpop.f32.mrf.mxu1 }
 0x4ae   : > { %v5715_v46 = vadd.f32 %v1963_v42, %v1692_v19 }
 0x4af   : > { %v1965_v14 = vpop.f32.mrf.mxu1 }
 0x4b1   : > { %v1968_v22 = vpop.f32.mrf.mxu1 }
 0x4b2   : > { %v5717_v32 = vadd.f32 %v1968_v22, %v1697_v15 }
 0x4b3   : > { %v1970_v28 = vpop.f32.mrf.mxu1 }
 0x4b4   : > { %v2055_v30 = vpack.c.bf16 %v5717_v32, %v5715_v46  ;;  %v4625_v46 = vld [vmem:[%s6489_s8 + $0x54] ss:$8 sps:$4 sm:$0xff]   ;;  %v4627_v32 = vld [vmem:[%s6489_s8 + $0x50] ss:$8 sps:$4 sm:$0xff]  }
 0x4b5   : > { %v1971_v44 = vpop.f32.mrf.mxu1 }
 0x4b6   : > { %v5724_v24 = vadd.f32 %v1971_v44, %v1702_v9 }
 0x4b7   : > { %v1973_v45 = vpop.f32.mrf.mxu1 }
 0x4b9   : > { %v1976_v48 = vpop.f32.mrf.mxu1 }
 0x4ba   : > { %v5726_v49 = vadd.f32 %v1976_v48, %v1707_v3 }
 0x4bb   : > { %v1978_v10 = vpop.f32.mrf.mxu1 }
 0x4bc   : > { %v2056_v50 = vpack.c.bf16 %v5726_v49, %v5724_v24  ;;  %v4630_v24 = vld [vmem:[%s6489_s8 + $0x60] ss:$8 sps:$4 sm:$0xff]   ;;  %v4631_v49 = vld [vmem:[%s6489_s8 + $0x74] ss:$8 sps:$4 sm:$0xff]  }
 0x4bd   : > { %v1979_v31 = vpop.f32.mrf.mxu1 }
 0x4be   : > { %v5731_v60 = vadd.f32 %v1979_v31, %v1712_v8 }
 0x4bf   : > { %v1981_v47 = vpop.f32.mrf.mxu1 }
 0x4c1   : > { %v1984_v29 = vpop.f32.mrf.mxu1 }
 0x4c2   : > { %v5733_v55 = vadd.f32 %v1984_v29, %v1717_v5 }
 0x4c3   : > { %v1986_v54 = vpop.f32.mrf.mxu1 }
 0x4c4   : > { %v2057_v26 = vpack.c.bf16 %v5733_v55, %v5731_v60  ;;  %v4634_v60 = vld [vmem:[%s6489_s8 + $0x84] ss:$8 sps:$4 sm:$0xff]   ;;  %v4636_v55 = vld [vmem:[%s6489_s8 + $0x80] ss:$8 sps:$4 sm:$0xff]  }
 0x4c5   : > { %v1987_v51 = vpop.f32.mrf.mxu1 }
 0x4c7   : > { %v1989_v56 = vpop.f32.mrf.mxu1 }
 0x4c9   : > { %v1992_v61 = vpop.f32.mrf.mxu1 }
 0x4cb   : > { %v1994_v11 = vpop.f32.mrf.mxu1 }
 0x4cd   : > { %v1995_v13 = vpop.f32.mrf.mxu1 }
 0x4cf   : > { %v1997_v17 = vpop.f32.mrf.mxu1 }
 0x4d1   : > { %v2000_v18 = vpop.f32.mrf.mxu1 }
 0x4d3   : > { %v2002_v20 = vpop.f32.mrf.mxu1 }
 0x4d5   : > { %v2003_v21 = vpop.f32.mrf.mxu1 }
 0x4d7   : > { %v2005_v23 = vpop.f32.mrf.mxu1 }
 0x4d8   : > { %v2004_v23 = vadd.f32 %v2003_v21, %v5695_v58 }
 0x4d9   : > { %v2008_v33 = vpop.f32.mrf.mxu1 }
 0x4da   : > { %v2009_v54 = vadd.f32 %v2008_v33, %v5683_v34  ;;  %v1996_v34 = vadd.f32 %v1995_v13, %v5703_v43  ;;  %v4642_v33 = vld [vmem:[%s6489_s8 + $0xa0] ss:$8 sps:$4 sm:$0xff]  }
 0x4db   : > { %v2010_v3 = vpop.f32.mrf.mxu1 }
 0x4dd   : > { %v2011_v8 = vpop.f32.mrf.mxu1 }
 0x4de   : > { %v2012_v56 = vadd.f32 %v2011_v8, %v5687_v38  ;;  %v4643_v8 = vld [vmem:[%s6489_s8 + $0xb4] ss:$8 sps:$4 sm:$0xff]  }
 0x4df   : > { %v2013_v9 = vpop.f32.mrf.mxu1 }
 0x4e1   : > { %v2016_v5 = vpop.f32.mrf.mxu1 }
 0x4e3   : > { %v2018_v12 = vpop.f32.mrf.mxu1 }
 0x4e5   : > { %v2019_v42 = vpop.f32.mrf.mxu1 }
 0x4e7   : > { %v2021_v14 = vpop.f32.mrf.mxu1 }
 0x4e8   : > { %v2001_v14 = vadd.f32 %v2000_v18, %v5689_v39  ;;  %v1988_v39 = vadd.f32 %v1987_v51, %v5705_v2  ;;  %v4639_v51 = vld [vmem:[%s6489_s8 + $0x90] ss:$8 sps:$4 sm:$0xff]  }
 0x4e9   : > { %v2024_v15 = vpop.f32.mrf.mxu1 }
 0x4ea   : > { %v2025_v38 = vadd.f32 %v2024_v15, %v5701_v1  ;;  %v2017_v1 = vadd.f32 %v2016_v5, %v5709_v27  ;;  %v4645_v5 = vld [vmem:[%s6489_s8 + $0xb0] ss:$8 sps:$4 sm:$0xff]   ;;  %v4648_v15 = vld [vmem:[%s6489_s8 + $0xc0] ss:$8 sps:$4 sm:$0xff]  }
 0x4eb   : > { %v2026_v19 = vpop.f32.mrf.mxu1 }
 0x4ed   : > { %v2027_v22 = vpop.f32.mrf.mxu1 }
 0x4ef   : > { %v2029_v28 = vpop.f32.mrf.mxu1 }
 0x4f1   : > { %v2032_v44 = vpop.f32.mrf.mxu1 }
 0x4f2   : > { %v2033_v3 = vadd.f32 %v2032_v44, %v5693_v41  ;;  %v2020_v41 = vadd.f32 %v2019_v42, %v5711_v4  ;;  %v4622_v4 = vld [vmem:[%s6489_s8 + $0x44] ss:$8 sps:$4 sm:$0xff]   ;;  %v4651_v44 = vld [vmem:[%s6489_s8 + $0xd0] ss:$8 sps:$4 sm:$0xff]  }
 0x4f3   : > { %v2034_v45 = vpop.f32.mrf.mxu1  ;;  %v4646_v42 = vld [vmem:[%s6489_s8 + $0xc4] ss:$8 sps:$4 sm:$0xff]  }
 0x4f4   : > { %v4652_v45 = vld [vmem:[%s6489_s8 + $0xe4] ss:$8 sps:$4 sm:$0xff]  }
 0x4f5   : > { %v2035_v53 = vpop.f32.mrf.mxu1 }
 0x4f6   : > { %v2036_v11 = vadd.f32 %v2035_v53, %v5699_v52  ;;  %v2050_v52 = vmax.f32 %v2001_v14, %v2033_v3  ;;  %v4654_v53 = vld [vmem:[%s6489_s8 + $0xe0] ss:$8 sps:$4 sm:$0xff]  }
 0x4f7   : > { %v2037_v48 = vpop.f32.mrf.mxu1  ;;  %v4672_v3 = vld [vmem:[%s6489_s8 + $0x140] ss:$8 sps:$4 sm:$0xff]  }
 0x4f8   : > { %v2051_v19 = vmax.f32 %v2004_v23, %v2036_v11  ;;  %v4655_v48 = vld [vmem:[%s6489_s8 + $0xf4] ss:$8 sps:$4 sm:$0xff]   ;;  %v4666_v11 = vld [vmem:[%s6489_s8 + $0x120] ss:$8 sps:$4 sm:$0xff]   ;;  %v4670_v23 = vld [vmem:[%s6489_s8 + $0x144] ss:$8 sps:$4 sm:$0xff]  }
 0x4f9   : > { %v2040_v10 = vpop.f32.mrf.mxu1 }
 0x4fa   : > { %v2041_v47 = vadd.f32 %v2040_v10, %v5685_v35  ;;  %v2028_v35 = vadd.f32 %v2027_v22, %v5707_v37  ;;  %v2060_v21 = vpack.c.bf16 %v2051_v19, %v2050_v52  ;;  %v2047_v37 = vmax.f32 %v1988_v39, %v2020_v41  ;;  %v4649_v22 = vld [vmem:[%s6489_s8 + $0xd4] ss:$8 sps:$4 sm:$0xff]   ;;  %v4657_v10 = vld [vmem:[%s6489_s8 + $0xf0] ss:$8 sps:$4 sm:$0xff]  }
 0x4fb   : > { %v2042_v31 = vpop.f32.mrf.mxu1 }
 0x4fc   : > { %v2052_v9 = vmax.f32 %v2009_v54, %v2041_v47  ;;  %v2049_v58 = vmax.f32 %v1996_v34, %v2028_v35  ;;  %v2058_v13 = vpack.c.bf16 %v2047_v37, %v2017_v1  ;;  %v4658_v31 = vld [vmem:[%s6489_s8 + $0x104] ss:$8 sps:$4 sm:$0xff]   ;;  %v4660_v47 = vld [vmem:[%s6489_s8 + $0x100] ss:$8 sps:$4 sm:$0xff]   ;;  %v4663_v54 = vld [vmem:[%s6489_s8 + $0x110] ss:$8 sps:$4 sm:$0xff]  }
 0x4fd   : > { %v2043_v29 = vpop.f32.mrf.mxu1 }
 0x4fe   : > { %v2044_v17 = vadd.f32 %v2043_v29, %v5691_v40  ;;  %v1993_v40 = vadd.f32 %v1992_v61, %v5697_v63  ;;  %v1687_v63 = vpop.permute.xlu1 %1686  ;;  %v4640_v61 = vld [vmem:[%s6489_s8 + $0xa4] ss:$8 sps:$4 sm:$0xff]   ;;  %v4661_v29 = vld [vmem:[%s6489_s8 + $0x114] ss:$8 sps:$4 sm:$0xff]  }
 0x4ff   : > { %v2045_v20 = vpop.f32.mrf.mxu1  ;;  %v1961_v2 = vadd.f32 %v5713_v25, %v1687_v63  ;;  %v4624_v25 = vld [vmem:[%s6489_s8 + $0x40] ss:$8 sps:$4 sm:$0xff]  }
 0x500   : > { %v2053_v12 = vmax.f32 %v2012_v56, %v2044_v17  ;;  %v2048_v18 = vmax.f32 %v1993_v40, %v2025_v38  ;;  %v4664_v56 = vld [vmem:[%s6489_s8 + $0x124] ss:$8 sps:$4 sm:$0xff]   ;;  %v4667_v17 = vld [vmem:[%s6489_s8 + $0x134] ss:$8 sps:$4 sm:$0xff]   ;;  %v4669_v20 = vld [vmem:[%s6489_s8 + $0x130] ss:$8 sps:$4 sm:$0xff]  }
 0x501   : > { %v2054_v27 = vpack.c.bf16 %v1961_v2, %v4796_v16  ;;  %v4610_v16 = vld [vmem:[%s6489_s8] ss:$8 sps:$4 sm:$0xff]  }
 0x502   : > { %v2061_v28 = vpack.c.bf16 %v2053_v12, %v2052_v9  ;;  %v2059_v43 = vpack.c.bf16 %v2049_v58, %v2048_v18  ;;  %v4673_v9 = vld [vmem:[%s6489_s8 + $0x154] ss:$8 sps:$4 sm:$0xff]   ;;  %v4675_v12 = vld [vmem:[%s6489_s8 + $0x150] ss:$8 sps:$4 sm:$0xff]  }
 0x504   : > { %2371 = vmatpush1.bf16.msra.mxu0 %v2061_v28 }
 0x505   : > { %2372 = vmatprep.subr.bf16.mxu0 %v4798_v36 }
 0x508   : > { %2373 = vmatpush1.bf16.msra.mxu0 %v2060_v21 }
 0x509   : > { %2374 = vmatprep.subr.bf16.mxu0 %v4798_v36 }
 0x50c   : > { %2375 = vmatpush1.bf16.msra.mxu0 %v2059_v43 }
 0x50d   : > { %2376 = vmatprep.subr.bf16.mxu0 %v4798_v36 }
 0x510   : > { %2377 = vmatpush1.bf16.msra.mxu0 %v2058_v13 }
 0x511   : > { %2378 = vmatprep.subr.bf16.mxu0 %v4798_v36 }
 0x514   : > { %2379 = vmatpush1.bf16.msra.mxu0 %v2057_v26  ;;  %v4637_v26 = vld [vmem:[%s6489_s8 + $0x94] ss:$8 sps:$4 sm:$0xff]  }
 0x515   : > { %2380 = vmatprep.subr.bf16.mxu0 %v4798_v36 }
 0x518   : > { %2381 = vmatpush1.bf16.msra.mxu0 %v2056_v50  ;;  %v4633_v50 = vld [vmem:[%s6489_s8 + $0x70] ss:$8 sps:$4 sm:$0xff]  }
 0x519   : > { %2382 = vmatprep.subr.bf16.mxu0 %v4798_v36 }
 0x51c   : > { %2383 = vmatpush1.bf16.msra.mxu0 %v2055_v30  ;;  %v4628_v30 = vld [vmem:[%s6489_s8 + $0x64] ss:$8 sps:$4 sm:$0xff]  }
 0x51d   : > { %2384 = vmatprep.subr.bf16.mxu0 %v4798_v36 }
 0x520   : > { %2385 = vmatpush1.bf16.msra.mxu0 %v2054_v27 }
 0x521   : > { %2390 = vmatprep.subr.bf16.mxu0 %v4798_v36 }
 0x524   : > { %2391 = vmatpush2.bf16.msra.mxu0 %v5487_v62  ;;  %v4613_v62 = vld [vmem:[%s6489_s8 + $0x14] ss:$8 sps:$4 sm:$0xff]  }
 0x525   : > { %2392 = vmatprep.subr.bf16.mxu0 %v4798_v36 }
 0x528   : > { %2393 = vmatpush2.bf16.msra.mxu0 %v5492_v0  ;;  %v4615_v0 = vld [vmem:[%s6489_s8 + $0x10] ss:$8 sps:$4 sm:$0xff]  }
 0x529   : > { %2394 = vmatprep.subr.bf16.mxu0 %v4798_v36 }
 0x52c   : > { %2395 = vmatpush2.bf16.msra.mxu0 %v5497_v6  ;;  %v4616_v6 = vld [vmem:[%s6489_s8 + $0x24] ss:$8 sps:$4 sm:$0xff]  }
 0x52d   : > { %2396 = vmatprep.subr.bf16.mxu0 %v4798_v36 }
 0x530   : > { %2397 = vmatpush2.bf16.msra.mxu0 %v5502_v7  ;;  %v4618_v7 = vld [vmem:[%s6489_s8 + $0x20] ss:$8 sps:$4 sm:$0xff]  }
 0x531   : > { %2398 = vmatprep.subr.bf16.mxu0 %v4798_v36 }
 0x534   : > { %2399 = vmatpush2.bf16.msra.mxu0 %v5507_v59  ;;  %v4619_v59 = vld [vmem:[%s6489_s8 + $0x34] ss:$8 sps:$4 sm:$0xff]  }
 0x535   : > { %2400 = vmatprep.subr.bf16.mxu0 %v4798_v36 }
 0x538   : > { %2401 = vmatpush2.bf16.msra.mxu0 %v5515_v57  ;;  %v4621_v57 = vld [vmem:[%s6489_s8 + $0x30] ss:$8 sps:$4 sm:$0xff]  }
 0x53b   : > { %2403 = vmatmul.mubr.bf16.vlgmr.msra.gmra.mxu0 %v4610_v16 }
 0x53c   : > { %4146 = vmatprep.mubr.msk.bf16.mxu0 %vm1452_vm2, %v4613_v62  ;;  %v4678_v62 = vld [vmem:[%s6490_s9 + $0x4] ss:$12 sps:$4 sm:$0xff]  }
 0x53d   : > { %3425 = vmatprep.mubr.bf16.mxu1 %v4678_v62 }
 0x543   : > { %2411 = vmatmul.mubr.bf16.gmra.mxu0 %v4615_v0 }
 0x544   : > { %4147 = vmatprep.mubr.msk.bf16.mxu0 %vm1452_vm2, %v4616_v6 }
 0x54b   : > { %2419 = vmatmul.mubr.bf16.gmra.mxu0 %v4618_v7 }
 0x54c   : > { %4148 = vmatprep.mubr.msk.bf16.mxu0 %vm1452_vm2, %v4619_v59 }
 0x553   : > { %2427 = vmatmul.mubr.bf16.gmra.mxu0 %v4621_v57 }
 0x554   : > { %4149 = vmatprep.mubr.msk.bf16.mxu0 %vm1452_vm2, %v4622_v4 }
 0x55b   : > { %2435 = vmatmul.mubr.bf16.gmra.mxu0 %v4624_v25 }
 0x55c   : > { %4150 = vmatprep.mubr.msk.bf16.mxu0 %vm1452_vm2, %v4625_v46 }
 0x563   : > { %2443 = vmatmul.mubr.bf16.gmra.mxu0 %v4627_v32 }
 0x564   : > { %4151 = vmatprep.mubr.msk.bf16.mxu0 %vm1452_vm2, %v4628_v30 }
 0x56b   : > { %2451 = vmatmul.mubr.bf16.gmra.mxu0 %v4630_v24 }
 0x56c   : > { %4152 = vmatprep.mubr.msk.bf16.mxu0 %vm1452_vm2, %v4631_v49 }
 0x573   : > { %2459 = vmatmul.mubr.bf16.gmra.mxu0 %v4633_v50 }
 0x574   : > { %4153 = vmatprep.mubr.msk.bf16.mxu0 %vm1452_vm2, %v4634_v60 }
 0x57b   : > { %2467 = vmatmul.mubr.bf16.gmra.mxu0 %v4636_v55 }
 0x57c   : > { %4154 = vmatprep.mubr.msk.bf16.mxu0 %vm1452_vm2, %v4637_v26 }
 0x583   : > { %2475 = vmatmul.mubr.bf16.gmra.mxu0 %v4639_v51 }
 0x584   : > { %4155 = vmatprep.mubr.msk.bf16.mxu0 %vm1452_vm2, %v4640_v61 }
 0x58b   : > { %2483 = vmatmul.mubr.bf16.gmra.mxu0 %v4642_v33 }
 0x58c   : > { %4156 = vmatprep.mubr.msk.bf16.mxu0 %vm1452_vm2, %v4643_v8 }
 0x593   : > { %2491 = vmatmul.mubr.bf16.gmra.mxu0 %v4645_v5 }
 0x594   : > { %4157 = vmatprep.mubr.msk.bf16.mxu0 %vm1452_vm2, %v4646_v42 }
 0x59b   : > { %2499 = vmatmul.mubr.bf16.gmra.mxu0 %v4648_v15 }
 0x59c   : > { %4158 = vmatprep.mubr.msk.bf16.mxu0 %vm1452_vm2, %v4649_v22 }
 0x5a3   : > { %2507 = vmatmul.mubr.bf16.gmra.mxu0 %v4651_v44 }
 0x5a4   : > { %4159 = vmatprep.mubr.msk.bf16.mxu0 %vm1452_vm2, %v4652_v45 }
 0x5ab   : > { %2515 = vmatmul.mubr.bf16.gmra.mxu0 %v4654_v53 }
 0x5ac   : > { %4160 = vmatprep.mubr.msk.bf16.mxu0 %vm1452_vm2, %v4655_v48 }
 0x5b3   : > { %2523 = vmatmul.mubr.bf16.gmra.mxu0 %v4657_v10 }
 0x5b4   : > { %4161 = vmatprep.mubr.msk.bf16.mxu0 %vm1452_vm2, %v4658_v31 }
 0x5bb   : > { %2531 = vmatmul.mubr.bf16.gmra.mxu0 %v4660_v47 }
 0x5bc   : > { %4162 = vmatprep.mubr.msk.bf16.mxu0 %vm1452_vm2, %v4661_v29  ;;  %v4694_v29 = vld [vmem:[%s6490_s9 + $0x8] ss:$12 sps:$4 sm:$0xff]  }
 0x5c3   : > { %2539 = vmatmul.mubr.bf16.gmra.mxu0 %v4663_v54 }
 0x5c4   : > { %4163 = vmatprep.mubr.msk.bf16.mxu0 %vm1452_vm2, %v4664_v56 }
 0x5cb   : > { %2547 = vmatmul.mubr.bf16.gmra.mxu0 %v4666_v11 }
 0x5cc   : > { %4164 = vmatprep.mubr.msk.bf16.mxu0 %vm1452_vm2, %v4667_v17 }
 0x5d3   : > { %2555 = vmatmul.mubr.bf16.gmra.mxu0 %v4669_v20 }
 0x5d4   : > { %4165 = vmatprep.mubr.msk.bf16.mxu0 %vm1452_vm2, %v4670_v23 }
 0x5db   : > { %2563 = vmatmul.mubr.bf16.gmra.mxu0 %v4672_v3 }
 0x5dc   : > { %4166 = vmatprep.mubr.msk.bf16.mxu0 %vm1452_vm2, %v4673_v9 }
 0x5e3   : > { %2571 = vmatmul.mubr.bf16.gmra.mxu0 %v4675_v12 }
 0x5e4   : > { %4400 = vmatprep.mubr.msk.bf16.mxu0 %vm1452_vm2, %v4694_v29 }
 0x5fb   : > { %v2404_v14 = vpop.f32.mrf.mxu0 }
 0x5fc   : > { %v2579_v28 = vmax.f32 %v2404_v14, 0.0 }
 0x5fd   : > { %v2406_v35 = vpop.f32.mrf.mxu0 }
 0x5ff   : > { %v2407_v19 = vpop.f32.mrf.mxu0 }
 0x600   : > { %v2580_v34 = vmax.f32 %v2407_v19, 0.0 }
 0x601   : > { %v2409_v38 = vpop.f32.mrf.mxu0 }
 0x602   : > { %v5932_v52 = vpack.c.bf16 %v2580_v34, %v2579_v28 }
 0x603   : > { %v2412_v40 = vpop.f32.mrf.mxu0 }
 0x604   : > { %v2581_v21 = vmax.f32 %v2412_v40, 0.0 }
 0x605   : > { %v2414_v41 = vpop.f32.mrf.mxu0 }
 0x607   : > { %v2415_v58 = vpop.f32.mrf.mxu0 }
 0x608   : > { %v2582_v39 = vmax.f32 %v2415_v58, 0.0 }
 0x609   : > { %v2417_v18 = vpop.f32.mrf.mxu0 }
 0x60a   : > { %v5934_v37 = vpack.c.bf16 %v2582_v39, %v2581_v21 }
 0x60b   : > { %v5936_v43 = vpop.f32.mrf.mxu0 }
 0x60c   : > { %v2583_v58 = vmax.f32 %v5936_v43, 0.0 }
 0x60d   : > { %v2422_v1 = vpop.f32.mrf.mxu0 }
 0x60f   : > { %v5938_v13 = vpop.f32.mrf.mxu0 }
 0x610   : > { %v2584_v34 = vmax.f32 %v5938_v13, 0.0 }
 0x611   : > { %v2425_v63 = vpop.f32.mrf.mxu0 }
 0x612   : > { %v2713_v39 = vpack.c.bf16 %v2584_v34, %v2583_v58  ;;  %v4676_v34 = vld [vmem:[%s6490_s9] ss:$12 sps:$4 sm:$0xff]  }
 0x613   : > { %v2428_v2 = vpop.f32.mrf.mxu0 }
 0x614   : > { %v2585_v14 = vmax.f32 %v2428_v2, 0.0 }
 0x615   : > { %v2430_v27 = vpop.f32.mrf.mxu0 }
 0x617   : > { %v2431_v16 = vpop.f32.mrf.mxu0 }
 0x618   : > { %v2586_v3 = vmax.f32 %v2431_v16, 0.0 }
 0x619   : > { %v2433_v0 = vpop.f32.mrf.mxu0 }
 0x61a   : > { %v2714_v38 = vpack.c.bf16 %v2586_v3, %v2585_v14 }
 0x61b   : > { %v2436_v6 = vpop.f32.mrf.mxu0 }
 0x61c   : > { %v2587_v20 = vmax.f32 %v2436_v6, 0.0 }
 0x61d   : > { %v2438_v7 = vpop.f32.mrf.mxu0 }
 0x61f   : > { %v2439_v59 = vpop.f32.mrf.mxu0 }
 0x620   : > { %v2588_v54 = vmax.f32 %v2439_v59, 0.0 }
 0x621   : > { %v2441_v57 = vpop.f32.mrf.mxu0 }
 0x622   : > { %v2715_v9 = vpack.c.bf16 %v2588_v54, %v2587_v20 }
 0x623   : > { %v2444_v4 = vpop.f32.mrf.mxu0 }
 0x624   : > { %v2589_v48 = vmax.f32 %v2444_v4, 0.0 }
 0x625   : > { %v2446_v25 = vpop.f32.mrf.mxu0 }
 0x627   : > { %v2447_v46 = vpop.f32.mrf.mxu0 }
 0x628   : > { %v2590_v44 = vmax.f32 %v2447_v46, 0.0 }
 0x629   : > { %v2449_v32 = vpop.f32.mrf.mxu0 }
 0x62a   : > { %v2716_v56 = vpack.c.bf16 %v2590_v44, %v2589_v48 }
 0x62b   : > { %v2452_v30 = vpop.f32.mrf.mxu0 }
 0x62c   : > { %v2591_v15 = vmax.f32 %v2452_v30, 0.0 }
 0x62d   : > { %v2454_v24 = vpop.f32.mrf.mxu0 }
 0x62f   : > { %v2455_v49 = vpop.f32.mrf.mxu0 }
 0x630   : > { %v2592_v8 = vmax.f32 %v2455_v49, 0.0 }
 0x631   : > { %v2457_v50 = vpop.f32.mrf.mxu0 }
 0x632   : > { %v2717_v45 = vpack.c.bf16 %v2592_v8, %v2591_v15 }
 0x633   : > { %v2460_v60 = vpop.f32.mrf.mxu0 }
 0x634   : > { %v2593_v51 = vmax.f32 %v2460_v60, 0.0 }
 0x635   : > { %v2462_v55 = vpop.f32.mrf.mxu0 }
 0x637   : > { %v2463_v26 = vpop.f32.mrf.mxu0 }
 0x638   : > { %v2594_v61 = vmax.f32 %v2463_v26, 0.0 }
 0x639   : > { %v2465_v33 = vpop.f32.mrf.mxu0 }
 0x63a   : > { %v2718_v5 = vpack.c.bf16 %v2594_v61, %v2593_v51 }
 0x63b   : > { %v2468_v42 = vpop.f32.mrf.mxu0 }
 0x63c   : > { %3394 = vmatpush1.bf16.msra.mxu1 %v2718_v5  ;;  %v2595_v10 = vmax.f32 %v2468_v42, 0.0 }
 0x63d   : > { %v2470_v22 = vpop.f32.mrf.mxu0  ;;  %3395 = vmatprep.subr.bf16.mxu1 %v4798_v36 }
 0x63f   : > { %v2471_v53 = vpop.f32.mrf.mxu0 }
 0x640   : > { %v2596_v31 = vmax.f32 %v2471_v53, 0.0  ;;  %3396 = vmatpush1.bf16.msra.mxu1 %v2717_v45 }
 0x641   : > { %v2473_v47 = vpop.f32.mrf.mxu0  ;;  %3397 = vmatprep.subr.bf16.mxu1 %v4798_v36 }
 0x642   : > { %v5948_v11 = vpack.c.bf16 %v2596_v31, %v2595_v10 }
 0x643   : > { %v2476_v17 = vpop.f32.mrf.mxu0 }
 0x644   : > { %3398 = vmatpush1.bf16.msra.mxu1 %v2716_v56  ;;  %v2597_v35 = vmax.f32 %v2476_v17, 0.0 }
 0x645   : > { %v2478_v23 = vpop.f32.mrf.mxu0  ;;  %3399 = vmatprep.subr.bf16.mxu1 %v4798_v36 }
 0x647   : > { %v2479_v12 = vpop.f32.mrf.mxu0 }
 0x648   : > { %v2598_v19 = vmax.f32 %v2479_v12, 0.0  ;;  %3400 = vmatpush1.bf16.msra.mxu1 %v2715_v9 }
 0x649   : > { %v2481_v28 = vpop.f32.mrf.mxu0  ;;  %3401 = vmatprep.subr.bf16.mxu1 %v4798_v36 }
 0x64a   : > { %v5954_v40 = vpack.c.bf16 %v2598_v19, %v2597_v35 }
 0x64b   : > { %v5956_v41 = vpop.f32.mrf.mxu0 }
 0x64c   : > { %3402 = vmatpush1.bf16.msra.mxu1 %v2714_v38  ;;  %v2599_v23 = vmax.f32 %v5956_v41, 0.0  ;;  %v4679_v38 = vld [vmem:[%s6490_s9 + $0x1c] ss:$12 sps:$4 sm:$0xff]  }
 0x64d   : > { %v2486_v21 = vpop.f32.mrf.mxu0  ;;  %3403 = vmatprep.subr.bf16.mxu1 %v4798_v36 }
 0x64f   : > { %v5960_v18 = vpop.f32.mrf.mxu0 }
 0x650   : > { %3404 = vmatpush1.bf16.msra.mxu1 %v2713_v39  ;;  %v2600_v56 = vmax.f32 %v5960_v18, 0.0  ;;  %v4684_v39 = vld [vmem:[%s6490_s9 + $0x34] ss:$12 sps:$4 sm:$0xff]  }
 0x651   : > { %v2489_v1 = vpop.f32.mrf.mxu0  ;;  %3405 = vmatprep.subr.bf16.mxu1 %v4798_v36 }
 0x652   : > { %v2721_v9 = vpack.c.bf16 %v2600_v56, %v2599_v23  ;;  %v4711_v56 = vld [vmem:[%s6490_s9 + $0xd8] ss:$12 sps:$4 sm:$0xff]  }
 0x653   : > { %v2492_v63 = vpop.f32.mrf.mxu0  ;;  %v4719_v23 = vld [vmem:[%s6490_s9 + $0xf8] ss:$12 sps:$4 sm:$0xff]  }
 0x654   : > { %3406 = vmatpush1.bf16.msra.mxu1 %v5934_v37  ;;  %v2601_v29 = vmax.f32 %v2492_v63, 0.0 }
 0x655   : > { %v2494_v13 = vpop.f32.mrf.mxu0  ;;  %3407 = vmatprep.subr.bf16.mxu1 %v4798_v36 }
 0x657   : > { %v2495_v2 = vpop.f32.mrf.mxu0 }
 0x658   : > { %3408 = vmatpush1.bf16.msra.mxu1 %v5932_v52  ;;  %v2602_v10 = vmax.f32 %v2495_v2, 0.0 }
 0x659   : > { %v2497_v43 = vpop.f32.mrf.mxu0  ;;  %3409 = vmatprep.subr.bf16.mxu1 %v4798_v36 }
 0x65a   : > { %v2722_v17 = vpack.c.bf16 %v2602_v10, %v2601_v29  ;;  %v4709_v10 = vld [vmem:[%s6490_s9 + $0x98] ss:$12 sps:$4 sm:$0xff]   ;;  %v4713_v29 = vld [vmem:[%s6490_s9 + $0xdc] ss:$12 sps:$4 sm:$0xff]  }
 0x65b   : > { %v2500_v27 = vpop.f32.mrf.mxu0 }
 0x65c   : > { %v2603_v53 = vmax.f32 %v2500_v27, 0.0  ;;  %v4682_v27 = vld [vmem:[%s6490_s9 + $0x30] ss:$12 sps:$4 sm:$0xff]  }
 0x65d   : > { %v2502_v16 = vpop.f32.mrf.mxu0 }
 0x65f   : > { %v2503_v62 = vpop.f32.mrf.mxu0 }
 0x660   : > { %v2604_v22 = vmax.f32 %v2503_v62, 0.0  ;;  %v4687_v62 = vld [vmem:[%s6490_s9 + $0x4c] ss:$12 sps:$4 sm:$0xff]  }
 0x661   : > { %v2505_v0 = vpop.f32.mrf.mxu0 }
 0x662   : > { %v2723_v31 = vpack.c.bf16 %v2604_v22, %v2603_v53  ;;  %v4703_v22 = vld [vmem:[%s6490_s9 + $0xac] ss:$12 sps:$4 sm:$0xff]  }
 0x663   : > { %v2508_v6 = vpop.f32.mrf.mxu0  ;;  %v4705_v53 = vld [vmem:[%s6490_s9 + $0x80] ss:$12 sps:$4 sm:$0xff]  }
 0x664   : > { %v2605_v42 = vmax.f32 %v2508_v6, 0.0 }
 0x665   : > { %v2510_v7 = vpop.f32.mrf.mxu0 }
 0x667   : > { %v2511_v59 = vpop.f32.mrf.mxu0 }
 0x668   : > { %v2606_v33 = vmax.f32 %v2511_v59, 0.0 }
 0x669   : > { %v2513_v57 = vpop.f32.mrf.mxu0 }
 0x66a   : > { %v2724_v44 = vpack.c.bf16 %v2606_v33, %v2605_v42  ;;  %v4691_v33 = vld [vmem:[%s6490_s9 + $0x78] ss:$12 sps:$4 sm:$0xff]   ;;  %v4696_v42 = vld [vmem:[%s6490_s9 + $0x90] ss:$12 sps:$4 sm:$0xff]  }
 0x66b   : > { %v2516_v4 = vpop.f32.mrf.mxu0 }
 0x66c   : > { %v2607_v51 = vmax.f32 %v2516_v4, 0.0 }
 0x66d   : > { %v2518_v25 = vpop.f32.mrf.mxu0 }
 0x66f   : > { %v2519_v37 = vpop.f32.mrf.mxu0 }
 0x670   : > { %v2608_v60 = vmax.f32 %v2519_v37, 0.0 }
 0x671   : > { %v2521_v46 = vpop.f32.mrf.mxu0 }
 0x672   : > { %v2725_v8 = vpack.c.bf16 %v2608_v60, %v2607_v51  ;;  %v4685_v46 = vld [vmem:[%s6490_s9 + $0x48] ss:$12 sps:$4 sm:$0xff]  }
 0x673   : > { %v2524_v32 = vpop.f32.mrf.mxu0  ;;  %v4693_v51 = vld [vmem:[%s6490_s9 + $0x7c] ss:$12 sps:$4 sm:$0xff]  }
 0x674   : > { %v2609_v49 = vmax.f32 %v2524_v32, 0.0  ;;  %v4690_v32 = vld [vmem:[%s6490_s9 + $0x64] ss:$12 sps:$4 sm:$0xff]  }
 0x675   : > { %v2526_v30 = vpop.f32.mrf.mxu0 }
 0x677   : > { %v2527_v24 = vpop.f32.mrf.mxu0 }
 0x678   : > { %v2610_v52 = vmax.f32 %v2527_v24, 0.0 }
 0x679   : > { %v2529_v50 = vpop.f32.mrf.mxu0 }
 0x67a   : > { %v2726_v55 = vpack.c.bf16 %v2610_v52, %v2609_v49  ;;  %v4688_v50 = vld [vmem:[%s6490_s9 + $0x60] ss:$12 sps:$4 sm:$0xff]  }
 0x67b   : > { %v5967_v26 = vpop.f32.mrf.mxu0 }
 0x67c   : > { %3410 = vmatpush2.bf16.msra.mxu1 %v2726_v55  ;;  %v2611_v60 = vmax.f32 %v5967_v26, 0.0  ;;  %v4695_v26 = vld [vmem:[%s6490_s9 + $0x20] ss:$12 sps:$4 sm:$0xff]  }
 0x67d   : > { %v2534_v61 = vpop.f32.mrf.mxu0  ;;  %3411 = vmatprep.subr.bf16.mxu1 %v4798_v36 }
 0x67f   : > { %v5970_v5 = vpop.f32.mrf.mxu0 }
 0x680   : > { %3412 = vmatpush2.bf16.msra.mxu1 %v2725_v8  ;;  %v2612_v55 = vmax.f32 %v5970_v5, 0.0  ;;  %v4698_v8 = vld [vmem:[%s6490_s9 + $0x94] ss:$12 sps:$4 sm:$0xff]   ;;  %v4699_v5 = vld [vmem:[%s6490_s9 + $0x38] ss:$12 sps:$4 sm:$0xff]  }
 0x681   : > { %v2537_v15 = vpop.f32.mrf.mxu0  ;;  %3413 = vmatprep.subr.bf16.mxu1 %v4798_v36 }
 0x682   : > { %v2727_v61 = vpack.c.bf16 %v2612_v55, %v2611_v60  ;;  %v4700_v15 = vld [vmem:[%s6490_s9 + $0x50] ss:$12 sps:$4 sm:$0xff]   ;;  %v4753_v55 = vld [vmem:[%s6490_s9 + $0x1c8] ss:$12 sps:$4 sm:$0xff]  }
 0x683   : > { %v5973_v45 = vpop.f32.mrf.mxu0 }
 0x684   : > { %3414 = vmatpush2.bf16.msra.mxu1 %v2724_v44  ;;  %v2613_v30 = vmax.f32 %v5973_v45, 0.0  ;;  %v4704_v44 = vld [vmem:[%s6490_s9 + $0x68] ss:$12 sps:$4 sm:$0xff]  }
 0x685   : > { %v2542_v48 = vpop.f32.mrf.mxu0  ;;  %3415 = vmatprep.subr.bf16.mxu1 %v4798_v36  ;;  %v4701_v45 = vld [vmem:[%s6490_s9 + $0xa8] ss:$12 sps:$4 sm:$0xff]  }
 0x686   : > { %v4708_v48 = vld [vmem:[%s6490_s9 + $0xc4] ss:$12 sps:$4 sm:$0xff]  }
 0x687   : > { %v5976_v47 = vpop.f32.mrf.mxu0 }
 0x688   : > { %3416 = vmatpush2.bf16.msra.mxu1 %v2723_v31  ;;  %v2614_v24 = vmax.f32 %v5976_v47, 0.0  ;;  %v4706_v31 = vld [vmem:[%s6490_s9 + $0xc0] ss:$12 sps:$4 sm:$0xff]   ;;  %v4710_v47 = vld [vmem:[%s6490_s9 + $0xb0] ss:$12 sps:$4 sm:$0xff]  }
 0x689   : > { %v2545_v54 = vpop.f32.mrf.mxu0  ;;  %3417 = vmatprep.subr.bf16.mxu1 %v4798_v36 }
 0x68a   : > { %v2728_v52 = vpack.c.bf16 %v2614_v24, %v2613_v30  ;;  %v4714_v54 = vld [vmem:[%s6490_s9 + $0xc8] ss:$12 sps:$4 sm:$0xff]   ;;  %v4748_v24 = vld [vmem:[%s6490_s9 + $0x1b0] ss:$12 sps:$4 sm:$0xff]  }
 0x68b   : > { %v2548_v20 = vpop.f32.mrf.mxu0 }
 0x68c   : > { %3418 = vmatpush2.bf16.msra.mxu1 %v2722_v17  ;;  %v2615_v4 = vmax.f32 %v2548_v20, 0.0  ;;  %v4715_v17 = vld [vmem:[%s6490_s9 + $0xe0] ss:$12 sps:$4 sm:$0xff]  }
 0x68d   : > { %v2550_v3 = vpop.f32.mrf.mxu0  ;;  %3419 = vmatprep.subr.bf16.mxu1 %v4798_v36  ;;  %v4718_v20 = vld [vmem:[%s6490_s9 + $0xf4] ss:$12 sps:$4 sm:$0xff]  }
 0x68e   : > { %v4716_v3 = vld [vmem:[%s6490_s9 + $0xf0] ss:$12 sps:$4 sm:$0xff]  }
 0x68f   : > { %v2551_v12 = vpop.f32.mrf.mxu0 }
 0x690   : > { %3420 = vmatpush2.bf16.msra.mxu1 %v2721_v9  ;;  %v2616_v25 = vmax.f32 %v2551_v12, 0.0  ;;  %v4720_v9 = vld [vmem:[%s6490_s9 + $0x110] ss:$12 sps:$4 sm:$0xff]   ;;  %v4723_v12 = vld [vmem:[%s6490_s9 + $0x10c] ss:$12 sps:$4 sm:$0xff]  }
 0x691   : > { %v2553_v14 = vpop.f32.mrf.mxu0  ;;  %3421 = vmatprep.subr.bf16.mxu1 %v4798_v36 }
 0x692   : > { %v2729_v49 = vpack.c.bf16 %v2616_v25, %v2615_v4  ;;  %v4727_v14 = vld [vmem:[%s6490_s9 + $0x128] ss:$12 sps:$4 sm:$0xff]  }
 0x693   : > { %v2556_v35 = vpop.f32.mrf.mxu0 }
 0x694   : > { %3422 = vmatpush2.bf16.msra.mxu1 %v5954_v40  ;;  %v2617_v6 = vmax.f32 %v2556_v35, 0.0  ;;  %v4721_v35 = vld [vmem:[%s6490_s9 + $0x108] ss:$12 sps:$4 sm:$0xff]  }
 0x695   : > { %v2558_v19 = vpop.f32.mrf.mxu0  ;;  %3423 = vmatprep.subr.bf16.mxu1 %v4798_v36  ;;  %v4681_v36 = vld [vmem:[%s6490_s9 + $0x18] ss:$12 sps:$4 sm:$0xff]  }
 0x696   : > { %v4726_v19 = vld [vmem:[%s6490_s9 + $0x124] ss:$12 sps:$4 sm:$0xff]  }
 0x697   : > { %v2559_v28 = vpop.f32.mrf.mxu0 }
 0x698   : > { %3424 = vmatpush2.bf16.msra.mxu1 %v5948_v11  ;;  %v2618_v7 = vmax.f32 %v2559_v28, 0.0  ;;  %v4728_v28 = vld [vmem:[%s6490_s9 + $0x140] ss:$12 sps:$4 sm:$0xff]  }
 0x699   : > { %v2561_v41 = vpop.f32.mrf.mxu0 }
 0x69a   : > { %v2730_v37 = vpack.c.bf16 %v2618_v7, %v2617_v6  ;;  %v4731_v41 = vld [vmem:[%s6490_s9 + $0x13c] ss:$12 sps:$4 sm:$0xff]   ;;  %v4740_v7 = vld [vmem:[%s6490_s9 + $0x180] ss:$12 sps:$4 sm:$0xff]  }
 0x69b   : > { %v2564_v58 = vpop.f32.mrf.mxu0  ;;  %3426 = vmatmul.mubr.bf16.vlgmr.msra.gmra.mxu1 %v4676_v34  ;;  %v4735_v34 = vld [vmem:[%s6490_s9 + $0x158] ss:$12 sps:$4 sm:$0xff]  }
 0x69c   : > { %3433 = vmatprep.mubr.bf16.mxu1 %v4679_v38  ;;  %v2619_v63 = vmax.f32 %v2564_v58, 0.0  ;;  %v4724_v38 = vld [vmem:[%s6490_s9 + $0x120] ss:$12 sps:$4 sm:$0xff]   ;;  %v4736_v58 = vld [vmem:[%s6490_s9 + $0x170] ss:$12 sps:$4 sm:$0xff]  }
 0x69d   : > { %v2566_v21 = vpop.f32.mrf.mxu0 }
 0x69e   : > { %v4743_v21 = vld [vmem:[%s6490_s9 + $0x188] ss:$12 sps:$4 sm:$0xff]  }
 0x69f   : > { %v2567_v40 = vpop.f32.mrf.mxu0 }
 0x6a0   : > { %v2620_v13 = vmax.f32 %v2567_v40, 0.0  ;;  %v4729_v40 = vld [vmem:[%s6490_s9 + $0x138] ss:$12 sps:$4 sm:$0xff]  }
 0x6a1   : > { %v2569_v18 = vpop.f32.mrf.mxu0 }
 0x6a2   : > { %v2731_v59 = vpack.c.bf16 %v2620_v13, %v2619_v63  ;;  %v4751_v18 = vld [vmem:[%s6490_s9 + $0x1b8] ss:$12 sps:$4 sm:$0xff]   ;;  %v4752_v63 = vld [vmem:[%s6490_s9 + $0x1d0] ss:$12 sps:$4 sm:$0xff]   ;;  %v4759_v13 = vld [vmem:[%s6490_s9 + $0x1e8] ss:$12 sps:$4 sm:$0xff]  }
 0x6a3   : > { %v2572_v11 = vpop.f32.mrf.mxu0  ;;  %3434 = vmatmul.mubr.bf16.gmra.mxu1 %v4681_v36  ;;  %v4734_v36 = vld [vmem:[%s6490_s9 + $0x154] ss:$12 sps:$4 sm:$0xff]  }
 0x6a4   : > { %3441 = vmatprep.mubr.bf16.mxu1 %v4684_v39  ;;  %v2621_v2 = vmax.f32 %v2572_v11, 0.0  ;;  %v4744_v39 = vld [vmem:[%s6490_s9 + $0x1a0] ss:$12 sps:$4 sm:$0xff]   ;;  %v4732_v11 = vld [vmem:[%s6490_s9 + $0x150] ss:$12 sps:$4 sm:$0xff]  }
 0x6a5   : > { %v2574_v1 = vpop.f32.mrf.mxu0 }
 0x6a6   : > { %v4739_v1 = vld [vmem:[%s6490_s9 + $0x16c] ss:$12 sps:$4 sm:$0xff]  }
 0x6a7   : > { %v2575_v43 = vpop.f32.mrf.mxu0 }
 0x6a8   : > { %v2622_v16 = vmax.f32 %v2575_v43, 0.0  ;;  %v4737_v43 = vld [vmem:[%s6490_s9 + $0x168] ss:$12 sps:$4 sm:$0xff]  }
 0x6a9   : > { %v2577_v0 = vpop.f32.mrf.mxu0 }
 0x6aa   : > { %v2732_v57 = vpack.c.bf16 %v2622_v16, %v2621_v2  ;;  %v6158_v2 = vpop.permute.xlu0 %2909  ;;  %v4742_v16 = vld [vmem:[%s6490_s9 + $0x184] ss:$12 sps:$4 sm:$0xff]  }
 0x6ab   : > { %3442 = vmatmul.mubr.bf16.gmra.mxu1 %v4682_v27  ;;  %6511 = vst [vmem:[#allocation4_spill] sm:$0xff] %v6158_v2  ;;  %v6165_v27 = vpop.permute.xlu1 %2914 }
 0x6ac   : > { %4388 = vmatprep.subr.bf16.mxu0 %v2732_v57  ;;  %3449 = vmatprep.mubr.bf16.mxu1 %v4687_v62  ;;  %6512 = vst [vmem:[#allocation5_spill] sm:$0xff] %v6165_v27  ;;  %v4760_v62 = vld [vmem:[%s6490_s9 + $0x200] ss:$12 sps:$4 sm:$0xff]  }
 0x6ad   : > { %4389 = vmatpush3.bf16.msra.mxu0 %v2732_v57  ;;  %v4747_v57 = vld [vmem:[%s6490_s9 + $0x19c] ss:$12 sps:$4 sm:$0xff]  }
 0x6ae   : > { %4390 = vmatprep.subr.bf16.mxu0 %v2731_v59  ;;  %v6173_v0 = vpop.permute.xlu0 %2989 }
 0x6af   : > { %v6176_v6 = vpop.permute.xlu1 %2994 }
 0x6b0   : > { %6513 = vst [vmem:[#allocation6_spill] sm:$0xff] %v6176_v6 }
 0x6b1   : > { %4391 = vmatpush3.bf16.msra.mxu0 %v2731_v59 }
 0x6b2   : > { %4392 = vmatprep.subr.bf16.mxu0 %v2730_v37  ;;  %v6181_v59 = vpop.permute.xlu0 %2839 }
 0x6b3   : > { %3450 = vmatmul.mubr.bf16.gmra.mxu1 %v4685_v46  ;;  %v6186_v4 = vpop.permute.xlu1 %2844  ;;  %v4750_v46 = vld [vmem:[%s6490_s9 + $0x1b4] ss:$12 sps:$4 sm:$0xff]  }
 0x6b4   : > { %3457 = vmatprep.mubr.bf16.mxu1 %v4690_v32 }
 0x6b5   : > { %4393 = vmatpush3.bf16.msra.mxu0 %v2730_v37  ;;  %v4745_v37 = vld [vmem:[%s6490_s9 + $0x198] ss:$12 sps:$4 sm:$0xff]  }
 0x6b6   : > { %4394 = vmatprep.subr.bf16.mxu0 %v2729_v49  ;;  %v6188_v25 = vpop.permute.xlu0 %2899 }
 0x6b7   : > { %v6196_v32 = vpop.permute.xlu1 %2904 }
 0x6b9   : > { %4395 = vmatpush3.bf16.msra.mxu0 %v2729_v49 }
 0x6ba   : > { %4396 = vmatprep.subr.bf16.mxu0 %v2728_v52  ;;  %v6198_v30 = vpop.permute.xlu0 %2979 }
 0x6bb   : > { %3458 = vmatmul.mubr.bf16.gmra.mxu1 %v4688_v50  ;;  %v6203_v49 = vpop.permute.xlu1 %2984 }
 0x6bc   : > { %3465 = vmatprep.mubr.bf16.mxu1 %v4693_v51 }
 0x6bd   : > { %4397 = vmatpush3.bf16.msra.mxu0 %v2728_v52  ;;  %v4755_v52 = vld [vmem:[%s6490_s9 + $0x1cc] ss:$12 sps:$4 sm:$0xff]  }
 0x6be   : > { %4398 = vmatprep.subr.bf16.mxu0 %v2727_v61  ;;  %v6208_v50 = vpop.permute.xlu0 %2829 }
 0x6bf   : > { %v6210_v60 = vpop.permute.xlu1 %2834 }
 0x6c1   : > { %4399 = vmatpush3.bf16.msra.mxu0 %v2727_v61  ;;  %v4758_v61 = vld [vmem:[%s6490_s9 + $0x1e4] ss:$12 sps:$4 sm:$0xff]  }
 0x6c2   : > { %v6215_v51 = vpop.permute.xlu0 %2889 }
 0x6c3   : > { %3466 = vmatmul.mubr.bf16.gmra.mxu1 %v4691_v33  ;;  %v6220_v33 = vpop.permute.xlu1 %2894 }
 0x6c4   : > { %4401 = vmatmul.mubr.msk.bf16.vlgmr.msra.gmra.mxu0 %vm1452_vm2, %v4695_v26  ;;  %3473 = vmatprep.mubr.bf16.mxu1 %v4698_v8  ;;  %v4756_v8 = vld [vmem:[%s6490_s9 + $0x1e0] ss:$12 sps:$4 sm:$0xff]  }
 0x6c5   : > { %4404 = vmatprep.mubr.msk.bf16.mxu0 %vm1452_vm2, %v4699_v5  ;;  %v4763_v5 = vld [vmem:[%s6490_s9 + $0x1fc] ss:$12 sps:$4 sm:$0xff]  }
 0x6c6   : > { %v6222_v26 = vpop.permute.xlu0 %2969 }
 0x6cb   : > { %3474 = vmatmul.mubr.bf16.gmra.mxu1 %v4696_v42  ;;  %v6230_v42 = vpop.permute.xlu1 %2974 }
 0x6cc   : > { %4405 = vmatmul.mubr.msk.bf16.gmra.mxu0 %vm1452_vm2, %v4700_v15  ;;  %3481 = vmatprep.mubr.bf16.mxu1 %v4703_v22  ;;  %v6232_v15 = vpop.permute.xlu0 %2819  ;;  %v4761_v22 = vld [vmem:[%s6490_s9 + $0x1f8] ss:$12 sps:$4 sm:$0xff]  }
 0x6cd   : > { %4408 = vmatprep.mubr.msk.bf16.mxu0 %vm1452_vm2, %v4704_v44 }
 0x6cf   : > { %v6237_v44 = vpop.permute.xlu1 %2824 }
 0x6d3   : > { %3482 = vmatmul.mubr.bf16.gmra.mxu1 %v4701_v45  ;;  %v6239_v45 = vpop.permute.xlu0 %2879 }
 0x6d4   : > { %4409 = vmatmul.mubr.msk.bf16.gmra.mxu0 %vm1452_vm2, %v4705_v53  ;;  %3489 = vmatprep.mubr.bf16.mxu1 %v4708_v48  ;;  %v6241_v53 = vpop.permute.xlu1 %2884 }
 0x6d5   : > { %4412 = vmatprep.mubr.msk.bf16.mxu0 %vm1452_vm2, %v4709_v10 }
 0x6d7   : > { %v6243_v48 = vpop.permute.xlu0 %2959 }
 0x6d8   : > { %v6245_v10 = vpop.permute.xlu1 %2964 }
 0x6db   : > { %3490 = vmatmul.mubr.bf16.gmra.mxu1 %v4706_v31  ;;  %v2810_v31 = vpop.permute.xlu0 %2809 }
 0x6dc   : > { %4413 = vmatmul.mubr.msk.bf16.gmra.mxu0 %vm1452_vm2, %v4710_v47  ;;  %3497 = vmatprep.mubr.bf16.mxu1 %v4713_v29  ;;  %v6247_v47 = vpop.permute.xlu1 %2814 }
 0x6dd   : > { %4416 = vmatprep.mubr.msk.bf16.mxu0 %vm1452_vm2, %v4714_v54 }
 0x6df   : > { %v6249_v29 = vpop.permute.xlu0 %2869 }
 0x6e0   : > { %v6251_v54 = vpop.permute.xlu1 %2874 }
 0x6e3   : > { %3498 = vmatmul.mubr.bf16.gmra.mxu1 %v4711_v56  ;;  %v6253_v56 = vpop.permute.xlu0 %2949 }
 0x6e4   : > { %4417 = vmatmul.mubr.msk.bf16.gmra.mxu0 %vm1452_vm2, %v4715_v17  ;;  %3505 = vmatprep.mubr.bf16.mxu1 %v4718_v20 }
 0x6e5   : > { %4420 = vmatprep.mubr.msk.bf16.mxu0 %vm1452_vm2, %v4719_v23  ;;  %v6255_v23 = vpop.permute.xlu1 %2954 }
 0x6eb   : > { %3506 = vmatmul.mubr.bf16.gmra.mxu1 %v4716_v3 }
 0x6ec   : > { %4421 = vmatmul.mubr.msk.bf16.gmra.mxu0 %vm1452_vm2, %v4720_v9  ;;  %3513 = vmatprep.mubr.bf16.mxu1 %v4723_v12  ;;  %v2800_v9 = vpop.permute.xlu0 %2799 }
 0x6ed   : > { %4424 = vmatprep.mubr.msk.bf16.mxu0 %vm1452_vm2, %v4727_v14 }
 0x6f3   : > { %3514 = vmatmul.mubr.bf16.gmra.mxu1 %v4721_v35  ;;  %v2805_v35 = vpop.permute.xlu1 %2804 }
 0x6f4   : > { %3521 = vmatprep.mubr.bf16.mxu1 %v4726_v19  ;;  %4425 = vmatmul.mubr.msk.bf16.gmra.mxu0 %vm1452_vm2, %v4728_v28  ;;  %v6257_v28 = vpop.permute.xlu0 %2859 }
 0x6f5   : > { %4428 = vmatprep.mubr.msk.bf16.mxu0 %vm1452_vm2, %v4735_v34 }
 0x6fb   : > { %3522 = vmatmul.mubr.bf16.gmra.mxu1 %v4724_v38 }
 0x6fc   : > { %3529 = vmatprep.mubr.bf16.mxu1 %v4731_v41  ;;  %4429 = vmatmul.mubr.msk.bf16.gmra.mxu0 %vm1452_vm2, %v4736_v58  ;;  %v6259_v41 = vpop.permute.xlu1 %2864 }
 0x6fd   : > { %4432 = vmatprep.mubr.msk.bf16.mxu0 %vm1452_vm2, %v4743_v21  ;;  %v6261_v21 = vpop.permute.xlu0 %2939 }
 0x703   : > { %3530 = vmatmul.mubr.bf16.gmra.mxu1 %v4729_v40 }
 0x704   : > { %3537 = vmatprep.mubr.bf16.mxu1 %v4734_v36  ;;  %4433 = vmatmul.mubr.msk.bf16.gmra.mxu0 %vm1452_vm2, %v4744_v39  ;;  %v6263_v39 = vpop.permute.xlu1 %2944 }
 0x705   : > { %4436 = vmatprep.mubr.msk.bf16.mxu0 %vm1452_vm2, %v4751_v18 }
 0x70b   : > { %3538 = vmatmul.mubr.bf16.gmra.mxu1 %v4732_v11  ;;  %v2790_v11 = vpop.permute.xlu0 %2789 }
 0x70c   : > { %3545 = vmatprep.mubr.bf16.mxu1 %v4739_v1  ;;  %4437 = vmatmul.mubr.msk.bf16.gmra.mxu0 %vm1452_vm2, %v4752_v63 }
 0x70d   : > { %4440 = vmatprep.mubr.msk.bf16.mxu0 %vm1452_vm2, %v4759_v13  ;;  %v2795_v13 = vpop.permute.xlu1 %2794 }
 0x713   : > { %3546 = vmatmul.mubr.bf16.gmra.mxu1 %v4737_v43 }
 0x714   : > { %3553 = vmatprep.mubr.bf16.mxu1 %v4742_v16  ;;  %4441 = vmatmul.mubr.msk.bf16.gmra.mxu0 %vm1452_vm2, %v4760_v62  ;;  %v2850_v16 = vpop.permute.xlu0 %2849 }
 0x71b   : > { %3554 = vmatmul.mubr.bf16.gmra.mxu1 %v4740_v7 }
 0x71c   : > { %3561 = vmatprep.mubr.bf16.mxu1 %v4747_v57  ;;  %v6265_v57 = vpop.permute.xlu1 %2854 }
 0x723   : > { %3562 = vmatmul.mubr.bf16.gmra.mxu1 %v4745_v37 }
 0x724   : > { %3569 = vmatprep.mubr.bf16.mxu1 %v4750_v46  ;;  %v6267_v46 = vpop.permute.xlu0 %2929 }
 0x72b   : > { %3570 = vmatmul.mubr.bf16.gmra.mxu1 %v4748_v24 }
 0x72c   : > { %3577 = vmatprep.mubr.bf16.mxu1 %v4755_v52 }
 0x733   : > { %3578 = vmatmul.mubr.bf16.gmra.mxu1 %v4753_v55  ;;  %v6269_v55 = vpop.permute.xlu1 %2934 }
 0x734   : > { %3585 = vmatprep.mubr.bf16.mxu1 %v4758_v61 }
 0x73b   : > { %3586 = vmatmul.mubr.bf16.gmra.mxu1 %v4756_v8 }
 0x73c   : > { %3593 = vmatprep.mubr.bf16.mxu1 %v4763_v5  ;;  %v2780_v5 = vpop.permute.xlu0 %2779 }
 0x743   : > { %3594 = vmatmul.mubr.bf16.gmra.mxu1 %v4761_v22 }
 0x75b   : > { %v3427_v17 = vpop.f32.mrf.mxu1 }
 0x75d   : > { %v3429_v20 = vpop.f32.mrf.mxu1 }
 0x75e   : > { %v3428_v20 = vadd.f32 %v3427_v17, %v2780_v5 }
 0x75f   : > { %v3430_v3 = vpop.f32.mrf.mxu1 }
 0x761   : > { %v3432_v12 = vpop.f32.mrf.mxu1 }
 0x763   : > { %v3435_v14 = vpop.f32.mrf.mxu1 }
 0x764   : > { %v3436_v61 = vadd.f32 %v3435_v14, %v2790_v11 }
 0x765   : > { %v3437_v19 = vpop.f32.mrf.mxu1 }
 0x767   : > { %v3438_v34 = vpop.f32.mrf.mxu1 }
 0x769   : > { %v3440_v38 = vpop.f32.mrf.mxu1 }
 0x76b   : > { %v3443_v58 = vpop.f32.mrf.mxu1 }
 0x76d   : > { %v3445_v40 = vpop.f32.mrf.mxu1 }
 0x76e   : > { %v3439_v40 = vadd.f32 %v3438_v34, %v2795_v13 }
 0x76f   : > { %v3446_v36 = vpop.f32.mrf.mxu1 }
 0x771   : > { %v3448_v18 = vpop.f32.mrf.mxu1 }
 0x773   : > { %v3451_v1 = vpop.f32.mrf.mxu1 }
 0x774   : > { %v3452_v14 = vadd.f32 %v3451_v1, %v2810_v31 }
 0x775   : > { %v3453_v63 = vpop.f32.mrf.mxu1 }
 0x777   : > { %v3454_v43 = vpop.f32.mrf.mxu1 }
 0x779   : > { %v3456_v62 = vpop.f32.mrf.mxu1 }
 0x77a   : > { %v2785_v62 = vpop.permute.xlu1 %2784 }
 0x77b   : > { %v3459_v7 = vpop.f32.mrf.mxu1  ;;  %v3431_v6 = vadd.f32 %v3430_v3, %v2785_v62 }
 0x77d   : > { %v3461_v37 = vpop.f32.mrf.mxu1 }
 0x77f   : > { %v3462_v24 = vpop.f32.mrf.mxu1 }
 0x781   : > { %v3464_v52 = vpop.f32.mrf.mxu1 }
 0x783   : > { %v3467_v8 = vpop.f32.mrf.mxu1 }
 0x784   : > { %v4402_v22 = vpop.f32.mrf.mxu0 }
 0x785   : > { %v6271_v12 = vadd.f32 %v4402_v22, %v3436_v61  ;;  %v3469_v19 = vpop.f32.mrf.mxu1  ;;  %v3444_v22 = vadd.f32 %v3443_v58, %v2800_v9  ;;  %v3468_v9 = vadd.f32 %v3467_v8, %v6208_v50 }
 0x786   : > { %v3636_v38 = vpop.f32.mrf.mxu0  ;;  %v3455_v19 = vadd.f32 %v3454_v43, %v6247_v47  ;;  %v3460_v47 = vadd.f32 %v3459_v7, %v6232_v15 }
 0x787   : > { %6514 = vst [vmem:[#allocation7_spill] sm:$0xff] %v6271_v12  ;;  %v6273_v18 = vadd.f32 %v3636_v38, %v3428_v20  ;;  %v3470_v63 = vpop.f32.mrf.mxu1 }
 0x788   : > { %v4403_v37 = vpop.f32.mrf.mxu0 }
 0x789   : > { %6515 = vst [vmem:[#allocation8_spill] sm:$0xff] %v6273_v18  ;;  %v6275_v27 = vadd.f32 %v4403_v37, %v3439_v40  ;;  %v3472_v52 = vpop.f32.mrf.mxu1  ;;  %v3447_v40 = vadd.f32 %v3446_v36, %v2805_v35 }
 0x78a   : > { %v3639_v2 = vpop.f32.mrf.mxu0 }
 0x78b   : > { %6516 = vst [vmem:[#allocation9_spill] sm:$0xff] %v6275_v27  ;;  %v6279_v17 = vadd.f32 %v3639_v2, %v3431_v6  ;;  %v3475_v61 = vpop.f32.mrf.mxu1 }
 0x78c   : > { %v4406_v5 = vpop.f32.mrf.mxu0 }
 0x78d   : > { %6517 = vst [vmem:[#allocation10_spill] sm:$0xff] %v6279_v17  ;;  %v6283_v13 = vadd.f32 %v4406_v5, %v3452_v14  ;;  %v3477_v20 = vpop.f32.mrf.mxu1  ;;  %v2920_v17 = vpop.permute.xlu0 %2919 }
 0x78e   : > { %v3652_v3 = vpop.f32.mrf.mxu0 }
 0x78f   : > { %6518 = vst [vmem:[#allocation11_spill] sm:$0xff] %v6283_v13  ;;  %v6286_v38 = vadd.f32 %v3652_v3, %v3444_v22  ;;  %v3478_v31 = vpop.f32.mrf.mxu1  ;;  %v3471_v22 = vadd.f32 %v3470_v63, %v6210_v60  ;;  %v3463_v3 = vadd.f32 %v3462_v24, %v6237_v44 }
 0x790   : > { %v4407_v1 = vpop.f32.mrf.mxu0 }
 0x791   : > { %6519 = vst [vmem:[#allocation12_spill] sm:$0xff] %v6286_v38  ;;  %v6288_v62 = vadd.f32 %v4407_v1, %v3455_v19  ;;  %v3480_v2 = vpop.f32.mrf.mxu1 }
 0x792   : > { %v3655_v6 = vpop.f32.mrf.mxu0 }
 0x793   : > { %6520 = vst [vmem:[#allocation13_spill] sm:$0xff] %v6288_v62  ;;  %v6293_v37 = vadd.f32 %v3655_v6, %v3447_v40  ;;  %v3483_v52 = vpop.f32.mrf.mxu1 }
 0x794   : > { %v4410_v14 = vpop.f32.mrf.mxu0  ;;  %v3484_v15 = vadd.f32 %v3483_v52, %v2850_v16  ;;  %v3476_v16 = vadd.f32 %v3475_v61, %v6181_v59  ;;  %v3479_v52 = vadd.f32 %v3478_v31, %v6186_v4 }
 0x795   : > { %6521 = vst [vmem:[#allocation14_spill] sm:$0xff] %v6293_v37  ;;  %v6298_v5 = vadd.f32 %v4410_v14, %v3468_v9  ;;  %v3485_v35 = vpop.f32.mrf.mxu1 }
 0x796   : > { %v3668_v36 = vpop.f32.mrf.mxu0 }
 0x797   : > { %6522 = vst [vmem:[#allocation15_spill] sm:$0xff] %v6298_v5  ;;  %v6301_v20 = vadd.f32 %v3668_v36, %v3460_v47  ;;  %v3486_v50 = vpop.f32.mrf.mxu1 }
 0x798   : > { %v4411_v8 = vpop.f32.mrf.mxu0  ;;  %v3487_v44 = vadd.f32 %v3486_v50, %v6265_v57 }
 0x799   : > { %6523 = vst [vmem:[#allocation16_spill] sm:$0xff] %v6301_v20  ;;  %v6304_v19 = vadd.f32 %v4411_v8, %v3471_v22  ;;  %v3488_v1 = vpop.f32.mrf.mxu1 }
 0x79a   : > { %v3671_v40 = vpop.f32.mrf.mxu0 }
 0x79b   : > { %6524 = vst [vmem:[#allocation17_spill] sm:$0xff] %v6304_v19  ;;  %v6308_v2 = vadd.f32 %v3671_v40, %v3463_v3  ;;  %v3491_v6 = vpop.f32.mrf.mxu1 }
 0x79c   : > { %v4414_v9 = vpop.f32.mrf.mxu0  ;;  %v3492_v57 = vadd.f32 %v3491_v6, %v6257_v28 }
 0x79d   : > { %6525 = vst [vmem:[#allocation18_spill] sm:$0xff] %v6308_v2  ;;  %v6312_v63 = vadd.f32 %v4414_v9, %v3484_v15  ;;  %v3493_v14 = vpop.f32.mrf.mxu1 }
 0x79e   : > { %v3684_v47 = vpop.f32.mrf.mxu0 }
 0x79f   : > { %v3494_v24 = vpop.f32.mrf.mxu1  ;;  %v6319_v3 = vadd.f32 %v3684_v47, %v3476_v16 }
 0x7a0   : > { %v4415_v35 = vpop.f32.mrf.mxu0 }
 0x7a1   : > { %v6317_v36 = vadd.f32 %v4415_v35, %v3487_v44  ;;  %v3496_v22 = vpop.f32.mrf.mxu1  ;;  %6526 = vst [vmem:[#allocation19_spill] sm:$0xff] %v6319_v3  ;;  %v3495_v44 = vadd.f32 %v3494_v24, %v6259_v41 }
 0x7a2   : > { %v3687_v8 = vpop.f32.mrf.mxu0 }
 0x7a3   : > { %v6321_v1 = vadd.f32 %v3687_v8, %v3479_v52  ;;  %v3499_v40 = vpop.f32.mrf.mxu1  ;;  %v6345_v52 = vld [vmem:[%s6492_s11] sm:$0xff] }
 0x7a4   : > { %v3500_v15 = vadd.f32 %v3499_v40, %v6249_v29  ;;  %v4418_v9 = vpop.f32.mrf.mxu0  ;;  %6528 = vst [vmem:[#allocation21_spill] sm:$0xff] %v6345_v52  ;;  %v4256_v8 = vcombine.high %v6345_v52, %v6345_v52 }
 0x7a5   : > { %6527 = vst [vmem:[#allocation20_spill] sm:$0xff] %v6321_v1  ;;  %v3501_v59 = vpop.f32.mrf.mxu1 }
 0x7a6   : > { %v6327_v61 = vadd.f32 %v4418_v9, %v3500_v15  ;;  %v3700_v4 = vpop.f32.mrf.mxu0  ;;  %3887 = vmatprep.mubr.bf16.mxu1 %v4256_v8 }
 0x7a7   : > { %v6329_v31 = vadd.f32 %v3700_v4, %v3492_v57  ;;  %v6331_v14 = vpop.f32.mrf.mxu1 }
 0x7a8   : > { %v6333_v47 = vpop.f32.mrf.mxu0 }
 0x7a9   : > { %v3504_v35 = vpop.f32.mrf.mxu1 }
 0x7aa   : > { %v3703_v29 = vpop.f32.mrf.mxu0 }
 0x7ab   : > { %v6336_v16 = vadd.f32 %v3703_v29, %v3495_v44  ;;  %v6338_v28 = vpop.f32.mrf.mxu1 }
 0x7ac   : > { %v6340_v6 = vpop.f32.mrf.mxu0 }
 0x7ad   : > { %v3509_v22 = vpop.f32.mrf.mxu1 }
 0x7ae   : > { %v6349_v40 = vpop.f32.mrf.mxu0 }
 0x7af   : > { %v6351_v41 = vpop.f32.mrf.mxu1 }
 0x7b0   : > { %v6353_v24 = vpop.f32.mrf.mxu0 }
 0x7b1   : > { %v3512_v15 = vpop.f32.mrf.mxu1 }
 0x7b2   : > { %v6355_v9 = vpop.f32.mrf.mxu0 }
 0x7b3   : > { %v6357_v57 = vpop.f32.mrf.mxu1 }
 0x7b4   : > { %v6359_v4 = vpop.f32.mrf.mxu0 }
 0x7b5   : > { %v3517_v59 = vpop.f32.mrf.mxu1 }
 0x7b6   : > { %v6363_v29 = vpop.f32.mrf.mxu0 }
 0x7b7   : > { %v6361_v44 = vpop.f32.mrf.mxu1 }
 0x7b8   : > { %v6367_v11 = vpop.f32.mrf.mxu0 }
 0x7b9   : > { %v3520_v35 = vpop.f32.mrf.mxu1 }
 0x7ba   : > { %v6371_v43 = vpop.f32.mrf.mxu0 }
 0x7bb   : > { %v6365_v22 = vpop.f32.mrf.mxu1 }
 0x7bc   : > { %v4430_v59 = vpop.f32.mrf.mxu0 }
 0x7bd   : > { %v3525_v34 = vpop.f32.mrf.mxu1 }
 0x7be   : > { %v3748_v50 = vpop.f32.mrf.mxu0  ;;  %v2925_v34 = vpop.permute.xlu1 %2924 }
 0x7bf   : > { %v6369_v8 = vpop.f32.mrf.mxu1 }
 0x7c0   : > { %v4431_v18 = vpop.f32.mrf.mxu0 }
 0x7c1   : > { %v3528_v15 = vpop.f32.mrf.mxu1 }
 0x7c2   : > { %v3751_v37 = vpop.f32.mrf.mxu0 }
 0x7c3   : > { %v6373_v58 = vpop.f32.mrf.mxu1 }
 0x7c5   : > { %v3533_v60 = vpop.f32.mrf.mxu1 }
 0x7c6   : > { %v4434_v60 = vpop.f32.mrf.mxu0 }
 0x7c7   : > { %v6375_v7 = vpop.f32.mrf.mxu1 }
 0x7c8   : > { %v3764_v1 = vpop.f32.mrf.mxu0 }
 0x7c9   : > { %v3536_v35 = vpop.f32.mrf.mxu1 }
 0x7cb   : > { %v3539_v52 = vpop.f32.mrf.mxu1 }
 0x7cc   : > { %v3540_v27 = vadd.f32 %v3539_v52, %v2920_v17 }
 0x7cd   : > { %v3541_v12 = vpop.f32.mrf.mxu1 }
 0x7ce   : > { %v6377_v62 = vadd.f32 %v3748_v50, %v3540_v27 }
 0x7cf   : > { %v3542_v38 = vpop.f32.mrf.mxu1 }
 0x7d0   : > { %v3543_v13 = vadd.f32 %v3542_v38, %v2925_v34 }
 0x7d1   : > { %v3544_v15 = vpop.f32.mrf.mxu1 }
 0x7d2   : > { %v6379_v20 = vadd.f32 %v3751_v37, %v3543_v13  ;;  %v4435_v13 = vpop.f32.mrf.mxu0 }
 0x7d3   : > { %v3547_v2 = vpop.f32.mrf.mxu1 }
 0x7d4   : > { %v3548_v35 = vadd.f32 %v3547_v2, %v6267_v46 }
 0x7d5   : > { %v3549_v19 = vpop.f32.mrf.mxu1 }
 0x7d6   : > { %v3757_v3 = vadd.f32 %v4430_v59, %v3548_v35  ;;  %v3767_v19 = vpop.f32.mrf.mxu0 }
 0x7d7   : > { %v3550_v12 = vpop.f32.mrf.mxu1 }
 0x7d8   : > { %v3811_v17 = vmax.f32 %v6312_v63, %v3757_v3  ;;  %v3551_v38 = vadd.f32 %v3550_v12, %v6269_v55  ;;  %v4438_v55 = vpop.f32.mrf.mxu0 }
 0x7d9   : > { %v3552_v52 = vpop.f32.mrf.mxu1 }
 0x7da   : > { %v3760_v27 = vadd.f32 %v4431_v18, %v3551_v38 }
 0x7db   : > { %v3555_v50 = vpop.f32.mrf.mxu1 }
 0x7dc   : > { %v3812_v37 = vmax.f32 %v6317_v36, %v3760_v27  ;;  %v3556_v34 = vadd.f32 %v3555_v50, %v6261_v21  ;;  %v3503_v21 = vadd.f32 %v6331_v14, %v6251_v54  ;;  %v3508_v54 = vadd.f32 %v6338_v28, %v6239_v45 }
 0x7dd   : > { %v3557_v15 = vpop.f32.mrf.mxu1  ;;  %v3511_v14 = vadd.f32 %v6351_v41, %v6241_v53  ;;  %v3516_v41 = vadd.f32 %v6357_v57, %v6215_v51 }
 0x7de   : > { %v6388_v5 = vpack.c.bf16 %v3812_v37, %v3811_v17  ;;  %v3765_v2 = vadd.f32 %v3764_v1, %v3556_v34  ;;  %v3780_v1 = vpop.f32.mrf.mxu0  ;;  %v3712_v37 = vadd.f32 %v6333_v47, %v3503_v21 }
 0x7df   : > { %v3558_v46 = vpop.f32.mrf.mxu1 }
 0x7e0   : > { %v3559_v59 = vadd.f32 %v3558_v46, %v6263_v39  ;;  %v3813_v18 = vmax.f32 %v6329_v31, %v3765_v2  ;;  %v4439_v15 = vpop.f32.mrf.mxu0 }
 0x7e1   : > { %v3560_v35 = vpop.f32.mrf.mxu1 }
 0x7e2   : > { %v3768_v63 = vadd.f32 %v3767_v19, %v3559_v59  ;;  %v3783_v2 = vpop.f32.mrf.mxu0  ;;  %v3720_v35 = vadd.f32 %v6355_v9, %v3511_v14 }
 0x7e3   : > { %v3563_v3 = vpop.f32.mrf.mxu1 }
 0x7e4   : > { %v3814_v12 = vmax.f32 %v6336_v16, %v3768_v63  ;;  %v3564_v36 = vadd.f32 %v3563_v3, %v6253_v56  ;;  %v4442_v3 = vpop.f32.mrf.mxu0 }
 0x7e5   : > { %v3565_v38 = vpop.f32.mrf.mxu1 }
 0x7e6   : > { %v6396_v17 = vpack.c.bf16 %v3814_v12, %v3813_v18  ;;  %v3773_v27 = vadd.f32 %v4434_v60, %v3564_v36  ;;  %v3519_v12 = vadd.f32 %v6361_v44, %v6220_v33  ;;  %v3796_v38 = vpop.f32.mrf.mxu0  ;;  %v3524_v33 = vadd.f32 %v6365_v22, %v6188_v25 }
 0x7e7   : > { %v3566_v52 = vpop.f32.mrf.mxu1  ;;  %v3527_v44 = vadd.f32 %v6369_v8, %v6196_v32  ;;  %v6530_v8 = vld [vmem:[#allocation5_spill] sm:$0xff] }
 0x7e8   : > { %v3567_v39 = vadd.f32 %v3566_v52, %v6255_v23  ;;  %v3815_v16 = vmax.f32 %v6327_v61, %v3773_v27  ;;  %v3717_v61 = vadd.f32 %v6349_v40, %v3508_v54  ;;  %v3725_v52 = vadd.f32 %v6340_v6, %v3516_v41  ;;  %v6529_v54 = vld [vmem:[#allocation4_spill] sm:$0xff]  ;;  %v6542_v41 = vld [vmem:[#allocation11_spill] sm:$0xff] }
 0x7e9   : > { %v3568_v50 = vpop.f32.mrf.mxu1  ;;  %v3532_v32 = vadd.f32 %v6373_v58, %v6529_v54  ;;  %v3535_v14 = vadd.f32 %v6375_v7, %v6530_v8  ;;  %v6533_v58 = vld [vmem:[#allocation19_spill] sm:$0xff]  ;;  %v6535_v7 = vld [vmem:[#allocation17_spill] sm:$0xff] }
 0x7ea   : > { %v3776_v34 = vadd.f32 %v4435_v13, %v3567_v39  ;;  %v4443_v39 = vpop.f32.mrf.mxu0 }
 0x7eb   : > { %v3571_v31 = vpop.f32.mrf.mxu1 }
 0x7ec   : > { %v3816_v56 = vmax.f32 %v3712_v37, %v3776_v34  ;;  %v3572_v46 = vadd.f32 %v3571_v31, %v6243_v48  ;;  %v3799_v34 = vpop.f32.mrf.mxu0 }
 0x7ed   : > { %v3573_v19 = vpop.f32.mrf.mxu1 }
 0x7ee   : > { %v6406_v60 = vpack.c.bf16 %v3816_v56, %v3815_v16  ;;  %v3781_v47 = vadd.f32 %v3780_v1, %v3572_v46  ;;  %v3728_v1 = vadd.f32 %v6353_v24, %v3519_v12  ;;  %v3736_v16 = vadd.f32 %v6371_v43, %v3527_v44 }
 0x7ef   : > { %v3574_v23 = vpop.f32.mrf.mxu1  ;;  %v3741_v43 = vadd.f32 %v6359_v4, %v3532_v32  ;;  %v6539_v4 = vld [vmem:[#allocation16_spill] sm:$0xff] }
 0x7f0   : > { %v3575_v13 = vadd.f32 %v3574_v23, %v6245_v10  ;;  %v3817_v18 = vmax.f32 %v3717_v61, %v3781_v47  ;;  %v6531_v47 = vld [vmem:[#allocation6_spill] sm:$0xff] }
 0x7f1   : > { %v3576_v59 = vpop.f32.mrf.mxu1 }
 0x7f2   : > { %v3784_v48 = vadd.f32 %v3783_v2, %v3575_v13  ;;  %v3744_v59 = vadd.f32 %v6367_v11, %v3535_v14  ;;  %v6541_v11 = vld [vmem:[#allocation13_spill] sm:$0xff] }
 0x7f3   : > { %v3579_v63 = vpop.f32.mrf.mxu1  ;;  %v6543_v12 = vpack.c.bf16 %v6541_v11, %v6542_v41 }
 0x7f4   : > { %v3818_v45 = vmax.f32 %v3720_v35, %v3784_v48  ;;  %v3580_v28 = vadd.f32 %v3579_v63, %v6222_v26  ;;  %v6532_v63 = vld [vmem:[#allocation20_spill] sm:$0xff] }
 0x7f5   : > { %v3581_v53 = vpop.f32.mrf.mxu1 }
 0x7f6   : > { %v3838_v10 = vpack.c.bf16 %v3818_v45, %v3817_v18  ;;  %v3789_v40 = vadd.f32 %v4438_v55, %v3580_v28  ;;  %v6534_v18 = vpack.c.bf16 %v6532_v63, %v6533_v58  ;;  %v6536_v45 = vld [vmem:[#allocation15_spill] sm:$0xff]  ;;  %v6538_v28 = vld [vmem:[#allocation18_spill] sm:$0xff] }
 0x7f7   : > { %v3582_v36 = vpop.f32.mrf.mxu1  ;;  %v6540_v53 = vpack.c.bf16 %v6538_v28, %v6539_v4 }
 0x7f8   : > { %v3583_v9 = vadd.f32 %v3582_v36, %v6230_v42  ;;  %v3819_v50 = vmax.f32 %v3725_v52, %v3789_v40  ;;  %v6544_v36 = vld [vmem:[#allocation14_spill] sm:$0xff] }
 0x7f9   : > { %v3584_v21 = vpop.f32.mrf.mxu1 }
 0x7fa   : > { %v3792_v27 = vadd.f32 %v4439_v15, %v3583_v9  ;;  %v3733_v15 = vadd.f32 %v6363_v29, %v3524_v33  ;;  %v6547_v9 = vld [vmem:[#allocation9_spill] sm:$0xff]  ;;  %v6548_v21 = vld [vmem:[#allocation7_spill] sm:$0xff] }
 0x7fb   : > { %v3587_v26 = vpop.f32.mrf.mxu1  ;;  %v6549_v52 = vpack.c.bf16 %v6547_v9, %v6548_v21 }
 0x7fc   : > { %v3820_v37 = vmax.f32 %v3728_v1, %v3792_v27  ;;  %v3588_v51 = vadd.f32 %v3587_v26, %v6198_v30  ;;  %v6550_v1 = vld [vmem:[#allocation10_spill] sm:$0xff]  ;;  %v6553_v26 = vpack.c.bf16 %v6379_v20, %v6377_v62 }
 0x7fd   : > { %v3589_v57 = vpop.f32.mrf.mxu1 }
 0x7fe   : > { %v3839_v42 = vpack.c.bf16 %v3820_v37, %v3819_v50  ;;  %v3797_v6 = vadd.f32 %v3796_v38, %v3588_v51  ;;  %v6545_v38 = vld [vmem:[#allocation12_spill] sm:$0xff]  ;;  %v4799_v50 = vmov 0.0|0.0   ;;  %v3846_v51 = vpop.permute.xlu0 %3845 }
 0x7ff   : > { %v3590_v55 = vpop.f32.mrf.mxu1  ;;  %v6546_v40 = vpack.c.bf16 %v6544_v36, %v6545_v38 }
 0x800   : > { %v3591_v24 = vadd.f32 %v3590_v55, %v6203_v49  ;;  %v3821_v46 = vmax.f32 %v3733_v15, %v3797_v6 }
 0x801   : > { %v3592_v31 = vpop.f32.mrf.mxu1 }
 0x802   : > { %v3800_v56 = vadd.f32 %v3799_v34, %v3591_v24 }
 0x803   : > { %v3595_v30 = vpop.f32.mrf.mxu1 }
 0x804   : > { %v3822_v19 = vmax.f32 %v3736_v16, %v3800_v56  ;;  %v3596_v25 = vadd.f32 %v3595_v30, %v6173_v0 }
 0x805   : > { %v3597_v22 = vpop.f32.mrf.mxu1 }
 0x806   : > { %v3840_v23 = vpack.c.bf16 %v3822_v19, %v3821_v46  ;;  %v3805_v2 = vadd.f32 %v4442_v3, %v3596_v25  ;;  %v6537_v3 = vpack.c.bf16 %v6535_v7, %v6536_v45 }
 0x807   : > { %v3598_v49 = vpop.f32.mrf.mxu1 }
 0x808   : > { %v3599_v29 = vadd.f32 %v3598_v49, %v6531_v47  ;;  %v3823_v35 = vmax.f32 %v3741_v43, %v3805_v2 }
 0x809   : > { %v3600_v13 = vpop.f32.mrf.mxu1 }
 0x80a   : > { %v3808_v61 = vadd.f32 %v4443_v39, %v3599_v29 }
 0x80c   : > { %v3824_v0 = vmax.f32 %v3744_v59, %v3808_v61 }
 0x80e   : > { %v3841_v48 = vpack.c.bf16 %v3824_v0, %v3823_v35 }
 0x810   : > { %4306 = vmatprep.subr.bf16.mxu1 %v3841_v48 }
 0x811   : > { %4307 = vmatpush3.bf16.msra.mxu1 %v6534_v18 }
 0x812   : > { %4308 = vmatprep.subr.bf16.mxu1 %v3840_v23 }
 0x815   : > { %4309 = vmatpush3.bf16.msra.mxu1 %v6537_v3 }
 0x816   : > { %4310 = vmatprep.subr.bf16.mxu1 %v3839_v42 }
 0x819   : > { %4311 = vmatpush3.bf16.msra.mxu1 %v6540_v53 }
 0x81a   : > { %4312 = vmatprep.subr.bf16.mxu1 %v3838_v10  ;;  %v6551_v10 = vld [vmem:[#allocation8_spill] sm:$0xff] }
 0x81b   : > { %v6552_v27 = vpack.c.bf16 %v6550_v1, %v6551_v10 }
 0x81d   : > { %4313 = vmatpush3.bf16.msra.mxu1 %v6543_v12 }
 0x81e   : > { %4314 = vmatprep.subr.bf16.mxu1 %v6406_v60  ;;  %v6554_v60 = vld [vmem:[#allocation21_spill] sm:$0xff] }
 0x81f   : > { %v4255_v39 = vcombine.low %v6554_v60, %v6554_v60 }
 0x821   : > { %4315 = vmatpush3.bf16.msra.mxu1 %v6546_v40 }
 0x822   : > { %4316 = vmatprep.subr.bf16.mxu1 %v6396_v17 }
 0x825   : > { %4317 = vmatpush3.bf16.msra.mxu1 %v6549_v52 }
 0x826   : > { %4318 = vmatprep.subr.bf16.mxu1 %v6388_v5 }
 0x829   : > { %4319 = vmatpush3.bf16.msra.mxu1 %v6552_v27 }
 0x82a   : > { %4320 = vmatprep.subr.bf16.mxu1 %v6553_v26 }
 0x82d   : > { %4321 = vmatpush3.bf16.msra.mxu1 %v4799_v50 }
 0x830   : > { %3888 = vmatmul.mubr.bf16.vlgmr.msra.gmra.mxu1 %v4255_v39 }
 0x8f0   : > { %v4322_v17 = vpop.f32.mrf.mxu1 }
 0x8f2   : > { %v4323_v5 = vpop.f32.mrf.mxu1 }
 0x8f3   : > { %v4324_v37 = vadd.f32 %v4323_v5, %v4322_v17 }
 0x8f4   : > { %v4325_v62 = vpop.f32.mrf.mxu1 }
 0x8f5   : > { %v3890_v20 = vadd.f32 %v4324_v37, %v3846_v51 }
 0x8f6   : > { %v4326_v57 = vpop.f32.mrf.mxu1 }
 0x8f7   : > { %3895 = vst [vmem:[%s600_s17] sm:$0xff] %v3890_v20 }
 0x8f8 PF: > { %p20_p9 = scmp.ge.s32.totalorder %s4887_s29, 4   ;;  %s6555_s25 = smov %s4790_s26 }
 0x8f9   : > { %s6556_s26 = smov %s4896_s15  ;;  %s6557_s27 = smov %s4887_s29 }
 0x8fa   :  { %22 = sbr.rel (!%p20_p9) target bundleno = 2 (0x2), region = 197 }

</bundles_post_ra>
